<compile_context>
chip_gen: v6e
topology: v6e:2x2x1
jax: 0.10.0
libtpu: 0.0.40
codegen_flags: <defaults>
</compile_context>

<pallas_src>
import functools

import jax
import jax.numpy as jnp
import numpy as np
from jax import lax
from jax.experimental import pallas as pl
from jax.experimental.pallas import tpu as pltpu

C_IN = 728    # channels fixed by the module definition
C_PAD = 768   # padded to a multiple of 128 (lane width)
K = 3         # depthwise kernel size


def _shift_rows(h, direction):
    """Rows shifted so result[l] = h[l - direction]; wrapped rows are masked
    by the caller, so rotation (wraparound) semantics are fine."""
    m = h.shape[0]
    if m % 8 == 0:
        # XLU sublane rotation: runs on the otherwise-idle XLU slot and avoids
        # a full shifted-copy through the VPU / store path.
        return pltpu.roll(h, direction % m, axis=0)
    # Fallback for blocks whose row count is not sublane aligned.
    zero = jnp.zeros((1, h.shape[1]), h.dtype)
    if direction == 1:
        return jnp.concatenate([zero, h[:-1, :]], axis=0)
    return jnp.concatenate([h[1:, :], zero], axis=0)


def middleflow_kernel(x_ref,
                      dw1_w, dw1_b, pw1_w, pw1_b,
                      dw2_w, dw2_b, pw2_w, pw2_b,
                      dw3_w, dw3_b, pw3_w, pw3_b,
                      o_ref, *, seq_len):
    """One block = NB batches flattened to (M, C_PAD) rows, M = NB * seq_len."""
    m = x_ref.shape[0]

    # Position of each row inside its own batch (rows are NB stacked batches
    # of length seq_len).  Used to mask the depthwise neighbours at batch
    # edges so each batch sees its own zero padding (computed once, reused 3x).
    local_l = lax.broadcasted_iota(jnp.int32, (m, 1), 0) % seq_len
    has_prev = local_l != 0                           # row l-1 exists in batch
    has_next = local_l != (seq_len - 1)               # row l+1 exists in batch

    def sepconv_relu(h, dw_w_ref, dw_b_ref, pw_w_ref, pw_b_ref):
        h = jnp.maximum(h, 0.0)                       # ReLU (f32)
        # 32-bit sublane rolls; rows that wrapped around are zeroed below.
        h_prev = jnp.where(has_prev, _shift_rows(h, 1), 0.0)
        h_next = jnp.where(has_next, _shift_rows(h, -1), 0.0)
        dw = dw_w_ref[...]                            # (K, C_PAD)
        cdt = dw.dtype                                # bf16 on v6e/v7x, f32 on v5e
        # depthwise: y[l,c] = w0*x[l-1,c] + w1*x[l,c] + w2*x[l+1,c] + b[c]
        y = (dw[0:1, :] * h_prev.astype(cdt)
             + dw[1:2, :] * h.astype(cdt)
             + dw[2:3, :] * h_next.astype(cdt)
             + dw_b_ref[...])
        # pointwise 1x1 conv on the MXU: bf16 operands, f32 accumulation.
        z = jnp.dot(y.astype(jnp.bfloat16), pw_w_ref[...],
                    preferred_element_type=jnp.float32)
        return z + pw_b_ref[...]                      # f32

    h = sepconv_relu(x_ref[...], dw1_w, dw1_b, pw1_w, pw1_b)
    h = sepconv_relu(h, dw2_w, dw2_b, pw2_w, pw2_b)
    h = sepconv_relu(h, dw3_w, dw3_b, pw3_w, pw3_b)
    # Residual straight from the ref (keeps one fewer (M,768) f32 temp live).
    o_ref[...] = x_ref[...] + h


def _chip_config():
    """Per-generation tuning: (target_rows, vmem_limit_bytes, bf16_depthwise)."""
    kind = jax.devices()[0].device_kind.lower()
    # bf16 VALU exists on v6e and later; on v5e/v5p/v4 it only adds pack work.
    bf16_valu = not any(t in kind for t in ("v2", "v3", "v4", "v5"))
    try:
        vmem_cap = int(pltpu.get_tpu_info().vmem_capacity_bytes)
        if vmem_cap < 16 * 1024 * 1024:
            raise ValueError("implausible VMEM capacity")
    except Exception:
        vmem_cap = (64 if "7" in kind else 128) * 1024 * 1024
    # Leave headroom for compiler scratch / semaphores (matters on v7x 64 MiB).
    vmem_limit = min(int(vmem_cap * 0.85), 112 * 1024 * 1024)
    target_rows = 1024 if vmem_cap <= 64 * 1024 * 1024 else 2048
    return target_rows, vmem_limit, bf16_valu


def _pick_batch_fold(n, seq_len, target_rows):
    """Choose how many batches (nb) to fold into one block.

    Preference order: block_rows <= target_rows, grid length >= 2 (keeps both
    v7x TensorCores and the DMA pipeline busy), largest block_rows (MXU M),
    then an even grid length.
    """
    best, best_key = n, None
    for nb in range(1, n + 1):
        if n % nb:
            continue
        rows = nb * seq_len
        if rows % 8 != 0 and nb != n:
            continue                              # illegal block shape
        grid = n // nb
        fits = rows <= target_rows
        key = (fits, grid >= 2, rows if fits else -rows, grid % 2 == 0)
        if best_key is None or key > best_key:
            best, best_key = nb, key
    return best


def middleflow(x_ncl, params, *, target_rows=None):
    """x_ncl: (N, C, L) float32 (PyTorch NCL layout). Returns (N, C, L)."""
    n, c, seq_len = x_ncl.shape
    assert c == C_IN
    pad = C_PAD - C_IN

    auto_rows, vmem_limit, bf16_dw = _chip_config()
    if target_rows is None:
        target_rows = auto_rows
    dw_dtype = jnp.bfloat16 if bf16_dw else jnp.float32

    # NCL -> NLC (C on the lane axis), zero-pad C to 768 lanes, and flatten
    # (N, L) into one row axis so whole batches fold into the matmul M dim.
    x_nlc = jnp.transpose(x_ncl, (0, 2, 1))                      # (N, L, C)
    x2d = jnp.pad(x_nlc, ((0, 0), (0, 0), (0, pad)))
    x2d = x2d.reshape(n * seq_len, C_PAD)                        # (N*L, 768)

    # Weights padded to 768 channels.  Pointwise weights bf16 (MXU operands),
    # depthwise chain in bf16 only when the chip has a bf16 VALU.
    def const_spec(shape, single_buffer=False):
        pm = pl.Buffered(1) if single_buffer else None
        return pl.BlockSpec(shape, lambda b: (0, 0), pipeline_mode=pm)

    weight_args, weight_specs = [], []
    for (dw_w, dw_b, pw_w, pw_b) in params:
        weight_args += [
            jnp.pad(dw_w, ((0, 0), (0, pad))).astype(dw_dtype),          # (K, 768)
            jnp.pad(dw_b, ((0, 0), (0, pad))).astype(dw_dtype),          # (1, 768)
            jnp.pad(pw_w, ((0, pad), (0, pad))).astype(jnp.bfloat16),    # (768, 768)
            jnp.pad(pw_b, ((0, 0), (0, pad))),                           # (1, 768) f32
        ]
        weight_specs += [
            const_spec((K, C_PAD)),
            const_spec((1, C_PAD)),
            const_spec((C_PAD, C_PAD), single_buffer=True),  # constant index_map
            const_spec((1, C_PAD)),
        ]

    nb = _pick_batch_fold(n, seq_len, target_rows)
    block_rows = nb * seq_len
    grid = (n // nb,)

    out2d = pl.pallas_call(
        functools.partial(middleflow_kernel, seq_len=seq_len),
        out_shape=jax.ShapeDtypeStruct((n * seq_len, C_PAD), jnp.float32),
        grid_spec=pltpu.PrefetchScalarGridSpec(
            num_scalar_prefetch=0,
            grid=grid,
            in_specs=[pl.BlockSpec((block_rows, C_PAD), lambda b: (b, 0))]
                     + weight_specs,
            out_specs=pl.BlockSpec((block_rows, C_PAD), lambda b: (b, 0)),
        ),
        compiler_params=pltpu.CompilerParams(
            dimension_semantics=("parallel",),          # independent batch blocks
            vmem_limit_bytes=vmem_limit,
        ),
    )(x2d, *weight_args)

    out = out2d.reshape(n, seq_len, C_PAD)[:, :, :C_IN]          # drop pad channels
    return jnp.transpose(out, (0, 2, 1))                         # back to (N, C, L)


def middleflow_ref(x_ncl, params):
    """Pure-JAX float32 reference of the same math (channels-last internally)."""
    x = jnp.transpose(x_ncl, (0, 2, 1))                          # (N, L, C)
    h = x
    for (dw_w, dw_b, pw_w, pw_b) in params:
        h = jnp.maximum(h, 0.0)
        zeros = jnp.zeros_like(h[:, :1, :])
        h_prev = jnp.concatenate([zeros, h[:, :-1, :]], axis=1)
        h_next = jnp.concatenate([h[:, 1:, :], zeros], axis=1)
        h = (dw_w[0][None, None, :] * h_prev
             + dw_w[1][None, None, :] * h
             + dw_w[2][None, None, :] * h_next
             + dw_b[None])
        h = jnp.einsum("nlc,cd->nld", h, pw_w) + pw_b[None]
    out = x + h
    return jnp.transpose(out, (0, 2, 1))


def init_params(key):
    """Deterministic params for 3 SeparableConv1d(728, 728, 3, 1, 1) layers.

    PyTorch shapes: depthwise weight (C, 1, 3) -> stored here as (3, C);
                    pointwise weight (C, C, 1) -> stored here as (Cin, Cout).
    """
    params = []
    for _ in range(3):
        k1, k2, k3, k4, key = jax.random.split(key, 5)
        dw_w = jax.random.normal(k1, (K, C_IN), jnp.float32) * 0.05
        dw_b = jax.random.normal(k2, (1, C_IN), jnp.float32) * 0.05
        pw_w = jax.random.normal(k3, (C_IN, C_IN), jnp.float32) * 0.02
        pw_b = jax.random.normal(k4, (1, C_IN), jnp.float32) * 0.05
        params.append((dw_w, dw_b, pw_w, pw_b))
    return params


if __name__ == "__main__":
    key = jax.random.PRNGKey(0)
    kx, kp = jax.random.split(key)

    N, L = 2, 16                                              # small batch / seq
    x = jax.random.normal(kx, (N, C_IN, L), jnp.float32)      # NCL like PyTorch
    params = init_params(kp)

    # Keep the NCL<->NLC transposes / pad / slice fused with the kernel in
    # one jit so they don't become standalone HBM round trips.
    fwd = jax.jit(middleflow)
    out = jax.block_until_ready(fwd(x, params))

    ref = middleflow_ref(x, params)
    # bf16 MXU operands (and bf16 depthwise on v6e/v7x) with f32 accumulation
    # -> slightly looser tolerance than the pure-f32 reference.
    np.testing.assert_allclose(np.asarray(out), np.asarray(ref),
                               rtol=2e-2, atol=2e-2)
    print("KERNEL_OK")
</pallas_src>

<mosaic_0001>
module attributes {stable_mosaic.version = 11 : i64} {
  func.func @middleflow_kernel(%arg0: i32, %arg1: memref<16x768xf32, #tpu.memory_space<vmem>>, %arg2: memref<3x768xbf16, #tpu.memory_space<vmem>>, %arg3: memref<1x768xbf16, #tpu.memory_space<vmem>>, %arg4: memref<768x768xbf16, #tpu.memory_space<vmem>>, %arg5: memref<1x768xf32, #tpu.memory_space<vmem>>, %arg6: memref<3x768xbf16, #tpu.memory_space<vmem>>, %arg7: memref<1x768xbf16, #tpu.memory_space<vmem>>, %arg8: memref<768x768xbf16, #tpu.memory_space<vmem>>, %arg9: memref<1x768xf32, #tpu.memory_space<vmem>>, %arg10: memref<3x768xbf16, #tpu.memory_space<vmem>>, %arg11: memref<1x768xbf16, #tpu.memory_space<vmem>>, %arg12: memref<768x768xbf16, #tpu.memory_space<vmem>>, %arg13: memref<1x768xf32, #tpu.memory_space<vmem>>, %arg14: memref<16x768xf32, #tpu.memory_space<vmem>>) attributes {dimension_semantics = [#tpu.dimension_semantics<parallel>], iteration_bounds = array<i64: 2>, scalar_prefetch = 0 : i64, scratch_operands = 0 : i64, tpu.core_type = #tpu.core_type<tc>, window_params = [{transform_indices = @transform_0, window_bounds = array<i64: 16, 768>}, {pipeline_mode = #tpu.pipeline_mode<synchronous>, transform_indices = @transform_1, window_bounds = array<i64: 3, 768>}, {pipeline_mode = #tpu.pipeline_mode<synchronous>, transform_indices = @transform_2, window_bounds = array<i64: 1, 768>}, {pipeline_mode = #tpu.pipeline_mode<synchronous>, transform_indices = @transform_3, window_bounds = array<i64: 768, 768>}, {pipeline_mode = #tpu.pipeline_mode<synchronous>, transform_indices = @transform_4, window_bounds = array<i64: 1, 768>}, {pipeline_mode = #tpu.pipeline_mode<synchronous>, transform_indices = @transform_5, window_bounds = array<i64: 3, 768>}, {pipeline_mode = #tpu.pipeline_mode<synchronous>, transform_indices = @transform_6, window_bounds = array<i64: 1, 768>}, {pipeline_mode = #tpu.pipeline_mode<synchronous>, transform_indices = @transform_7, window_bounds = array<i64: 768, 768>}, {pipeline_mode = #tpu.pipeline_mode<synchronous>, transform_indices = @transform_8, window_bounds = array<i64: 1, 768>}, {pipeline_mode = #tpu.pipeline_mode<synchronous>, transform_indices = @transform_9, window_bounds = array<i64: 3, 768>}, {pipeline_mode = #tpu.pipeline_mode<synchronous>, transform_indices = @transform_10, window_bounds = array<i64: 1, 768>}, {pipeline_mode = #tpu.pipeline_mode<synchronous>, transform_indices = @transform_11, window_bounds = array<i64: 768, 768>}, {pipeline_mode = #tpu.pipeline_mode<synchronous>, transform_indices = @transform_12, window_bounds = array<i64: 1, 768>}, {transform_indices = @transform_13, window_bounds = array<i64: 16, 768>}]} {
    %0 = tpu.iota {dimensions = array<i32: 0>} : vector<16x1xi32>
    %c16_i32 = arith.constant 16 : i32
    %c0_i32 = arith.constant 0 : i32
    %1 = arith.cmpi eq, %c16_i32, %c0_i32 : i32
    %c1_i32 = arith.constant 1 : i32
    %2 = arith.select %1, %c1_i32, %c16_i32 : i32
    %3 = vector.broadcast %2 : i32 to vector<16x1xi32>
    %4 = arith.remsi %0, %3 : vector<16x1xi32>
    %c0_i32_0 = arith.constant 0 : i32
    %5 = vector.broadcast %c0_i32_0 : i32 to vector<16x1xi32>
    %6 = arith.cmpi ne, %4, %5 : vector<16x1xi32>
    %c0_i32_1 = arith.constant 0 : i32
    %7 = vector.broadcast %c0_i32_1 : i32 to vector<16x1xi32>
    %8 = arith.cmpi slt, %4, %7 : vector<16x1xi32>
    %c0_i32_2 = arith.constant 0 : i32
    %9 = arith.cmpi slt, %2, %c0_i32_2 : i32
    %10 = vector.broadcast %9 : i1 to vector<16x1xi1>
    %11 = vector.broadcast %10 : vector<16x1xi1> to vector<16x1xi1>
    %12 = arith.xori %8, %11 : vector<16x1xi1>
    %13 = arith.andi %12, %6 : vector<16x1xi1>
    %14 = vector.broadcast %2 : i32 to vector<16x1xi32>
    %15 = arith.addi %4, %14 : vector<16x1xi32>
    %16 = arith.select %13, %15, %4 : vector<16x1xi1>, vector<16x1xi32>
    %c0_i32_3 = arith.constant 0 : i32
    %17 = vector.broadcast %c0_i32_3 : i32 to vector<16x1xi32>
    %18 = arith.cmpi ne, %16, %17 : vector<16x1xi32>
    %c15_i32 = arith.constant 15 : i32
    %19 = vector.broadcast %c15_i32 : i32 to vector<16x1xi32>
    %20 = arith.cmpi ne, %16, %19 : vector<16x1xi32>
    %c0 = arith.constant 0 : index
    %c0_4 = arith.constant 0 : index
    %21 = vector.load %arg1[%c0, %c0_4] : memref<16x768xf32, #tpu.memory_space<vmem>>, vector<16x768xf32>
    %cst = arith.constant 0.000000e+00 : f32
    %22 = vector.broadcast %cst : f32 to vector<16x768xf32>
    %23 = arith.maximumf %21, %22 : vector<16x768xf32>
    %c1_i32_5 = arith.constant 1 : i32
    %24 = tpu.dynamic_rotate %23 by %c1_i32_5 dim 0 : vector<16x768xf32>, i32 -> vector<16x768xf32>
    %cst_6 = arith.constant 0.000000e+00 : f32
    %25 = vector.shape_cast %18 : vector<16x1xi1> to vector<16x1xi1>
    %26 = vector.broadcast %25 : vector<16x1xi1> to vector<16x768xi1>
    %27 = vector.broadcast %cst_6 : f32 to vector<16x768xf32>
    %28 = arith.select %26, %24, %27 : vector<16x768xi1>, vector<16x768xf32>
    %c15_i32_7 = arith.constant 15 : i32
    %29 = tpu.dynamic_rotate %23 by %c15_i32_7 dim 0 : vector<16x768xf32>, i32 -> vector<16x768xf32>
    %cst_8 = arith.constant 0.000000e+00 : f32
    %30 = vector.shape_cast %20 : vector<16x1xi1> to vector<16x1xi1>
    %31 = vector.broadcast %30 : vector<16x1xi1> to vector<16x768xi1>
    %32 = vector.broadcast %cst_8 : f32 to vector<16x768xf32>
    %33 = arith.select %31, %29, %32 : vector<16x768xi1>, vector<16x768xf32>
    %c0_9 = arith.constant 0 : index
    %c0_10 = arith.constant 0 : index
    %34 = vector.load %arg2[%c0_9, %c0_10] : memref<3x768xbf16, #tpu.memory_space<vmem>>, vector<3x768xbf16>
    %35 = vector.extract_strided_slice %34 {offsets = [0, 0], sizes = [1, 768], strides = [1, 1]} : vector<3x768xbf16> to vector<1x768xbf16>
    %36 = arith.truncf %28 : vector<16x768xf32> to vector<16x768xbf16>
    %37 = vector.broadcast %35 : vector<1x768xbf16> to vector<16x768xbf16>
    %38 = arith.mulf %37, %36 : vector<16x768xbf16>
    %39 = vector.extract_strided_slice %34 {offsets = [1, 0], sizes = [1, 768], strides = [1, 1]} : vector<3x768xbf16> to vector<1x768xbf16>
    %40 = arith.truncf %23 : vector<16x768xf32> to vector<16x768xbf16>
    %41 = vector.broadcast %39 : vector<1x768xbf16> to vector<16x768xbf16>
    %42 = arith.mulf %41, %40 : vector<16x768xbf16>
    %43 = arith.addf %38, %42 : vector<16x768xbf16>
    %44 = vector.extract_strided_slice %34 {offsets = [2, 0], sizes = [1, 768], strides = [1, 1]} : vector<3x768xbf16> to vector<1x768xbf16>
    %45 = arith.truncf %33 : vector<16x768xf32> to vector<16x768xbf16>
    %46 = vector.broadcast %44 : vector<1x768xbf16> to vector<16x768xbf16>
    %47 = arith.mulf %46, %45 : vector<16x768xbf16>
    %48 = arith.addf %43, %47 : vector<16x768xbf16>
    %c0_11 = arith.constant 0 : index
    %c0_12 = arith.constant 0 : index
    %49 = vector.load %arg3[%c0_11, %c0_12] : memref<1x768xbf16, #tpu.memory_space<vmem>>, vector<1x768xbf16>
    %50 = vector.broadcast %49 : vector<1x768xbf16> to vector<16x768xbf16>
    %51 = arith.addf %48, %50 : vector<16x768xbf16>
    %c0_13 = arith.constant 0 : index
    %c0_14 = arith.constant 0 : index
    %52 = vector.load %arg4[%c0_13, %c0_14] : memref<768x768xbf16, #tpu.memory_space<vmem>>, vector<768x768xbf16>
    %cst_15 = arith.constant dense<0.000000e+00> : vector<16x768xf32>
    %53 = tpu.matmul %51, %52, %cst_15 {dimension_numbers = #tpu.dot_dimension_numbers<[1], [0], [0], [1], [0, 0, 1, 1], [], []>} : vector<16x768xbf16>, vector<768x768xbf16>, vector<16x768xf32> -> vector<16x768xf32>
    %c0_16 = arith.constant 0 : index
    %c0_17 = arith.constant 0 : index
    %54 = vector.load %arg5[%c0_16, %c0_17] : memref<1x768xf32, #tpu.memory_space<vmem>>, vector<1x768xf32>
    %55 = vector.broadcast %54 : vector<1x768xf32> to vector<16x768xf32>
    %56 = arith.addf %53, %55 : vector<16x768xf32>
    %cst_18 = arith.constant 0.000000e+00 : f32
    %57 = vector.broadcast %cst_18 : f32 to vector<16x768xf32>
    %58 = arith.maximumf %56, %57 : vector<16x768xf32>
    %c1_i32_19 = arith.constant 1 : i32
    %59 = tpu.dynamic_rotate %58 by %c1_i32_19 dim 0 : vector<16x768xf32>, i32 -> vector<16x768xf32>
    %cst_20 = arith.constant 0.000000e+00 : f32
    %60 = vector.shape_cast %18 : vector<16x1xi1> to vector<16x1xi1>
    %61 = vector.broadcast %60 : vector<16x1xi1> to vector<16x768xi1>
    %62 = vector.broadcast %cst_20 : f32 to vector<16x768xf32>
    %63 = arith.select %61, %59, %62 : vector<16x768xi1>, vector<16x768xf32>
    %c15_i32_21 = arith.constant 15 : i32
    %64 = tpu.dynamic_rotate %58 by %c15_i32_21 dim 0 : vector<16x768xf32>, i32 -> vector<16x768xf32>
    %cst_22 = arith.constant 0.000000e+00 : f32
    %65 = vector.shape_cast %20 : vector<16x1xi1> to vector<16x1xi1>
    %66 = vector.broadcast %65 : vector<16x1xi1> to vector<16x768xi1>
    %67 = vector.broadcast %cst_22 : f32 to vector<16x768xf32>
    %68 = arith.select %66, %64, %67 : vector<16x768xi1>, vector<16x768xf32>
    %c0_23 = arith.constant 0 : index
    %c0_24 = arith.constant 0 : index
    %69 = vector.load %arg6[%c0_23, %c0_24] : memref<3x768xbf16, #tpu.memory_space<vmem>>, vector<3x768xbf16>
    %70 = vector.extract_strided_slice %69 {offsets = [0, 0], sizes = [1, 768], strides = [1, 1]} : vector<3x768xbf16> to vector<1x768xbf16>
    %71 = arith.truncf %63 : vector<16x768xf32> to vector<16x768xbf16>
    %72 = vector.broadcast %70 : vector<1x768xbf16> to vector<16x768xbf16>
    %73 = arith.mulf %72, %71 : vector<16x768xbf16>
    %74 = vector.extract_strided_slice %69 {offsets = [1, 0], sizes = [1, 768], strides = [1, 1]} : vector<3x768xbf16> to vector<1x768xbf16>
    %75 = arith.truncf %58 : vector<16x768xf32> to vector<16x768xbf16>
    %76 = vector.broadcast %74 : vector<1x768xbf16> to vector<16x768xbf16>
    %77 = arith.mulf %76, %75 : vector<16x768xbf16>
    %78 = arith.addf %73, %77 : vector<16x768xbf16>
    %79 = vector.extract_strided_slice %69 {offsets = [2, 0], sizes = [1, 768], strides = [1, 1]} : vector<3x768xbf16> to vector<1x768xbf16>
    %80 = arith.truncf %68 : vector<16x768xf32> to vector<16x768xbf16>
    %81 = vector.broadcast %79 : vector<1x768xbf16> to vector<16x768xbf16>
    %82 = arith.mulf %81, %80 : vector<16x768xbf16>
    %83 = arith.addf %78, %82 : vector<16x768xbf16>
    %c0_25 = arith.constant 0 : index
    %c0_26 = arith.constant 0 : index
    %84 = vector.load %arg7[%c0_25, %c0_26] : memref<1x768xbf16, #tpu.memory_space<vmem>>, vector<1x768xbf16>
    %85 = vector.broadcast %84 : vector<1x768xbf16> to vector<16x768xbf16>
    %86 = arith.addf %83, %85 : vector<16x768xbf16>
    %c0_27 = arith.constant 0 : index
    %c0_28 = arith.constant 0 : index
    %87 = vector.load %arg8[%c0_27, %c0_28] : memref<768x768xbf16, #tpu.memory_space<vmem>>, vector<768x768xbf16>
    %cst_29 = arith.constant dense<0.000000e+00> : vector<16x768xf32>
    %88 = tpu.matmul %86, %87, %cst_29 {dimension_numbers = #tpu.dot_dimension_numbers<[1], [0], [0], [1], [0, 0, 1, 1], [], []>} : vector<16x768xbf16>, vector<768x768xbf16>, vector<16x768xf32> -> vector<16x768xf32>
    %c0_30 = arith.constant 0 : index
    %c0_31 = arith.constant 0 : index
    %89 = vector.load %arg9[%c0_30, %c0_31] : memref<1x768xf32, #tpu.memory_space<vmem>>, vector<1x768xf32>
    %90 = vector.broadcast %89 : vector<1x768xf32> to vector<16x768xf32>
    %91 = arith.addf %88, %90 : vector<16x768xf32>
    %cst_32 = arith.constant 0.000000e+00 : f32
    %92 = vector.broadcast %cst_32 : f32 to vector<16x768xf32>
    %93 = arith.maximumf %91, %92 : vector<16x768xf32>
    %c1_i32_33 = arith.constant 1 : i32
    %94 = tpu.dynamic_rotate %93 by %c1_i32_33 dim 0 : vector<16x768xf32>, i32 -> vector<16x768xf32>
    %cst_34 = arith.constant 0.000000e+00 : f32
    %95 = vector.shape_cast %18 : vector<16x1xi1> to vector<16x1xi1>
    %96 = vector.broadcast %95 : vector<16x1xi1> to vector<16x768xi1>
    %97 = vector.broadcast %cst_34 : f32 to vector<16x768xf32>
    %98 = arith.select %96, %94, %97 : vector<16x768xi1>, vector<16x768xf32>
    %c15_i32_35 = arith.constant 15 : i32
    %99 = tpu.dynamic_rotate %93 by %c15_i32_35 dim 0 : vector<16x768xf32>, i32 -> vector<16x768xf32>
    %cst_36 = arith.constant 0.000000e+00 : f32
    %100 = vector.shape_cast %20 : vector<16x1xi1> to vector<16x1xi1>
    %101 = vector.broadcast %100 : vector<16x1xi1> to vector<16x768xi1>
    %102 = vector.broadcast %cst_36 : f32 to vector<16x768xf32>
    %103 = arith.select %101, %99, %102 : vector<16x768xi1>, vector<16x768xf32>
    %c0_37 = arith.constant 0 : index
    %c0_38 = arith.constant 0 : index
    %104 = vector.load %arg10[%c0_37, %c0_38] : memref<3x768xbf16, #tpu.memory_space<vmem>>, vector<3x768xbf16>
    %105 = vector.extract_strided_slice %104 {offsets = [0, 0], sizes = [1, 768], strides = [1, 1]} : vector<3x768xbf16> to vector<1x768xbf16>
    %106 = arith.truncf %98 : vector<16x768xf32> to vector<16x768xbf16>
    %107 = vector.broadcast %105 : vector<1x768xbf16> to vector<16x768xbf16>
    %108 = arith.mulf %107, %106 : vector<16x768xbf16>
    %109 = vector.extract_strided_slice %104 {offsets = [1, 0], sizes = [1, 768], strides = [1, 1]} : vector<3x768xbf16> to vector<1x768xbf16>
    %110 = arith.truncf %93 : vector<16x768xf32> to vector<16x768xbf16>
    %111 = vector.broadcast %109 : vector<1x768xbf16> to vector<16x768xbf16>
    %112 = arith.mulf %111, %110 : vector<16x768xbf16>
    %113 = arith.addf %108, %112 : vector<16x768xbf16>
    %114 = vector.extract_strided_slice %104 {offsets = [2, 0], sizes = [1, 768], strides = [1, 1]} : vector<3x768xbf16> to vector<1x768xbf16>
    %115 = arith.truncf %103 : vector<16x768xf32> to vector<16x768xbf16>
    %116 = vector.broadcast %114 : vector<1x768xbf16> to vector<16x768xbf16>
    %117 = arith.mulf %116, %115 : vector<16x768xbf16>
    %118 = arith.addf %113, %117 : vector<16x768xbf16>
    %c0_39 = arith.constant 0 : index
    %c0_40 = arith.constant 0 : index
    %119 = vector.load %arg11[%c0_39, %c0_40] : memref<1x768xbf16, #tpu.memory_space<vmem>>, vector<1x768xbf16>
    %120 = vector.broadcast %119 : vector<1x768xbf16> to vector<16x768xbf16>
    %121 = arith.addf %118, %120 : vector<16x768xbf16>
    %c0_41 = arith.constant 0 : index
    %c0_42 = arith.constant 0 : index
    %122 = vector.load %arg12[%c0_41, %c0_42] : memref<768x768xbf16, #tpu.memory_space<vmem>>, vector<768x768xbf16>
    %cst_43 = arith.constant dense<0.000000e+00> : vector<16x768xf32>
    %123 = tpu.matmul %121, %122, %cst_43 {dimension_numbers = #tpu.dot_dimension_numbers<[1], [0], [0], [1], [0, 0, 1, 1], [], []>} : vector<16x768xbf16>, vector<768x768xbf16>, vector<16x768xf32> -> vector<16x768xf32>
    %c0_44 = arith.constant 0 : index
    %c0_45 = arith.constant 0 : index
    %124 = vector.load %arg13[%c0_44, %c0_45] : memref<1x768xf32, #tpu.memory_space<vmem>>, vector<1x768xf32>
    %125 = vector.broadcast %124 : vector<1x768xf32> to vector<16x768xf32>
    %126 = arith.addf %123, %125 : vector<16x768xf32>
    %c0_46 = arith.constant 0 : index
    %c0_47 = arith.constant 0 : index
    %127 = vector.load %arg1[%c0_46, %c0_47] : memref<16x768xf32, #tpu.memory_space<vmem>>, vector<16x768xf32>
    %128 = arith.addf %127, %126 : vector<16x768xf32>
    %c0_48 = arith.constant 0 : index
    %c0_49 = arith.constant 0 : index
    %129 = vector.load %arg14[%c0_48, %c0_49] : memref<16x768xf32, #tpu.memory_space<vmem>>, vector<16x768xf32>
    tpu.vector_store %arg14[%c0_48, %c0_49], %128 {strides = array<i32>} : memref<16x768xf32, #tpu.memory_space<vmem>>, vector<16x768xf32>,
    return
  }
  func.func @transform_0(%arg0: i32) -> (i32, i32) {
    %c0_i32 = arith.constant 0 : i32
    %c0_i32_0 = arith.constant 0 : i32
    return %arg0, %c0_i32 : i32, i32
  }
  func.func @transform_1(%arg0: i32) -> (i32, i32) {
    %c0_i32 = arith.constant 0 : i32
    %c0_i32_0 = arith.constant 0 : i32
    %c0_i32_1 = arith.constant 0 : i32
    return %c0_i32, %c0_i32_0 : i32, i32
  }
  func.func @transform_2(%arg0: i32) -> (i32, i32) {
    %c0_i32 = arith.constant 0 : i32
    %c0_i32_0 = arith.constant 0 : i32
    %c0_i32_1 = arith.constant 0 : i32
    return %c0_i32, %c0_i32_0 : i32, i32
  }
  func.func @transform_3(%arg0: i32) -> (i32, i32) {
    %c0_i32 = arith.constant 0 : i32
    %c0_i32_0 = arith.constant 0 : i32
    %c0_i32_1 = arith.constant 0 : i32
    return %c0_i32, %c0_i32_0 : i32, i32
  }
  func.func @transform_4(%arg0: i32) -> (i32, i32) {
    %c0_i32 = arith.constant 0 : i32
    %c0_i32_0 = arith.constant 0 : i32
    %c0_i32_1 = arith.constant 0 : i32
    return %c0_i32, %c0_i32_0 : i32, i32
  }
  func.func @transform_5(%arg0: i32) -> (i32, i32) {
    %c0_i32 = arith.constant 0 : i32
    %c0_i32_0 = arith.constant 0 : i32
    %c0_i32_1 = arith.constant 0 : i32
    return %c0_i32, %c0_i32_0 : i32, i32
  }
  func.func @transform_6(%arg0: i32) -> (i32, i32) {
    %c0_i32 = arith.constant 0 : i32
    %c0_i32_0 = arith.constant 0 : i32
    %c0_i32_1 = arith.constant 0 : i32
    return %c0_i32, %c0_i32_0 : i32, i32
  }
  func.func @transform_7(%arg0: i32) -> (i32, i32) {
    %c0_i32 = arith.constant 0 : i32
    %c0_i32_0 = arith.constant 0 : i32
    %c0_i32_1 = arith.constant 0 : i32
    return %c0_i32, %c0_i32_0 : i32, i32
  }
  func.func @transform_8(%arg0: i32) -> (i32, i32) {
    %c0_i32 = arith.constant 0 : i32
    %c0_i32_0 = arith.constant 0 : i32
    %c0_i32_1 = arith.constant 0 : i32
    return %c0_i32, %c0_i32_0 : i32, i32
  }
  func.func @transform_9(%arg0: i32) -> (i32, i32) {
    %c0_i32 = arith.constant 0 : i32
    %c0_i32_0 = arith.constant 0 : i32
    %c0_i32_1 = arith.constant 0 : i32
    return %c0_i32, %c0_i32_0 : i32, i32
  }
  func.func @transform_10(%arg0: i32) -> (i32, i32) {
    %c0_i32 = arith.constant 0 : i32
    %c0_i32_0 = arith.constant 0 : i32
    %c0_i32_1 = arith.constant 0 : i32
    return %c0_i32, %c0_i32_0 : i32, i32
  }
  func.func @transform_11(%arg0: i32) -> (i32, i32) {
    %c0_i32 = arith.constant 0 : i32
    %c0_i32_0 = arith.constant 0 : i32
    %c0_i32_1 = arith.constant 0 : i32
    return %c0_i32, %c0_i32_0 : i32, i32
  }
  func.func @transform_12(%arg0: i32) -> (i32, i32) {
    %c0_i32 = arith.constant 0 : i32
    %c0_i32_0 = arith.constant 0 : i32
    %c0_i32_1 = arith.constant 0 : i32
    return %c0_i32, %c0_i32_0 : i32, i32
  }
  func.func @transform_13(%arg0: i32) -> (i32, i32) {
    %c0_i32 = arith.constant 0 : i32
    %c0_i32_0 = arith.constant 0 : i32
    return %arg0, %c0_i32 : i32, i32
  }
}

</mosaic_0001>

<bundles_post_ra>
// kernel: middleflow.1
= control target key start
LH: loop header
LB: loop body
LE: loop exit
PB: predicated region body
PF: predicated region fallthrough
CT: control target
= control target key end

     0   :  { %s10409_s25 = smov 0   ;;  %s13768_s0 = inlined_call_operand.vmem [shape: f32[32,768], index: 0, kind: input, shape index: {}]   ;;  %s13769_s1 = inlined_call_operand.vmem [shape: bf16[3,768], index: 1, kind: input, shape index: {}]   ;;  %s13770_s2 = inlined_call_operand.vmem [shape: bf16[1,768], index: 2, kind: input, shape index: {}]   ;;  %s13771_s3 = inlined_call_operand.vmem [shape: bf16[768,768], index: 3, kind: input, shape index: {}]   ;;  %s13772_s4 = inlined_call_operand.vmem [shape: f32[1,768], index: 4, kind: input, shape index: {}]   ;;  %s13773_s5 = inlined_call_operand.vmem [shape: bf16[3,768], index: 5, kind: input, shape index: {}]   ;;  %s13774_s6 = inlined_call_operand.vmem [shape: bf16[1,768], index: 6, kind: input, shape index: {}]   ;;  %s13775_s7 = inlined_call_operand.vmem [shape: bf16[768,768], index: 7, kind: input, shape index: {}]   ;;  %s13776_s8 = inlined_call_operand.vmem [shape: f32[1,768], index: 8, kind: input, shape index: {}]   ;;  %s13777_s9 = inlined_call_operand.vmem [shape: bf16[3,768], index: 9, kind: input, shape index: {}]   ;;  %s13778_s10 = inlined_call_operand.vmem [shape: bf16[1,768], index: 10, kind: input, shape index: {}]   ;;  %s13779_s11 = inlined_call_operand.vmem [shape: bf16[768,768], index: 11, kind: input, shape index: {}]   ;;  %s13780_s12 = inlined_call_operand.vmem [shape: f32[1,768], index: 12, kind: input, shape index: {}]   ;;  %s13781_s13 = inlined_call_operand.vmem [shape: f32[32,768], index: 13, kind: output, shape index: {}]  }
   0x1 LB: > { %s8123_s26 = sadd.s32 4294967295, %s10335_s25   ;;  %p8127_p0 = scmp.ge.s32.totalorder %s10335_s25, 1  ;;  %s10335_s25 = sphi %s10409_s25, %s23_s25  }
   0x2   : > { %p389_p1 = scmp.lt.s32.totalorder %s10335_s25, 3 }
   0x4   : > { %p390_p2 = pnand %p8127_p0, %p389_p1 }
   0x5   : > { %s8128_s21 = sshll.u32 (!%p390_p2), %s8123_s26, 1 }
   0x6   : > { %393 = sbr.rel (%p390_p2) target bundleno = 1357 (0x54d), region = 72  ;;  %p436_p3 = scmp.lt.s32.totalorder (!%p390_p2), %s8128_s21, 3 }
   0xb   : > { %v9012_v0 = vld [vmem:[%s13771_s3 + $0x154] ss:$24 sps:$4 sm:$0xff]   ;;  %v9014_v1 = vld [vmem:[%s13771_s3 + $0x150] ss:$24 sps:$4 sm:$0xff]   ;;  %v9018_v4 = vld [vmem:[%s13771_s3 + $0x124] ss:$24 sps:$4 sm:$0xff]   ;;  %v449_v31 = vlaneseq }
   0xc   : > { %2628 = vmatprep.subr.bf16.mxu0 %v9012_v0  ;;  %v9015_v2 = vld [vmem:[%s13771_s3 + $0x454] ss:$24 sps:$4 sm:$0xff]   ;;  %v9017_v3 = vld [vmem:[%s13771_s3 + $0x450] ss:$24 sps:$4 sm:$0xff]   ;;  %v9020_v5 = vld [vmem:[%s13771_s3 + $0x120] ss:$24 sps:$4 sm:$0xff]  }
   0xd   : > { %2629 = vmatpush1.bf16.msra.mxu0 %v9014_v1  ;;  %2671 = vmatprep.subr.bf16.mxu1 %v9015_v2  ;;  %v9021_v6 = vld [vmem:[%s13771_s3 + $0x424] ss:$24 sps:$4 sm:$0xff]   ;;  %v9023_v7 = vld [vmem:[%s13771_s3 + $0x420] ss:$24 sps:$4 sm:$0xff]   ;;  %v9024_v8 = vld [vmem:[%s13771_s3 + $0xf4] ss:$24 sps:$4 sm:$0xff]  }
   0xe   : > { %2672 = vmatpush1.bf16.msra.mxu1 %v9017_v3  ;;  %2630 = vmatprep.subr.bf16.mxu0 %v9018_v4  ;;  %v9026_v9 = vld [vmem:[%s13771_s3 + $0xf0] ss:$24 sps:$4 sm:$0xff]   ;;  %v9027_v10 = vld [vmem:[%s13771_s3 + $0x3f4] ss:$24 sps:$4 sm:$0xff]   ;;  %v9030_v11 = vld [vmem:[%s13771_s3 + $0xc4] ss:$24 sps:$4 sm:$0xff]  }
   0xf   : > { %2673 = vmatprep.subr.bf16.mxu1 %v9021_v6  ;;  %v9029_v12 = vld [vmem:[%s13771_s3 + $0x3f0] ss:$24 sps:$4 sm:$0xff]   ;;  %v9033_v13 = vld [vmem:[%s13771_s3 + $0x3c4] ss:$24 sps:$4 sm:$0xff]   ;;  %v9032_v14 = vld [vmem:[%s13771_s3 + $0xc0] ss:$24 sps:$4 sm:$0xff]  }
  0x10   : > { %v9036_v15 = vld [vmem:[%s13771_s3 + $0x94] ss:$24 sps:$4 sm:$0xff]   ;;  %v9035_v16 = vld [vmem:[%s13771_s3 + $0x3c0] ss:$24 sps:$4 sm:$0xff]   ;;  %v9038_v18 = vld [vmem:[%s13771_s3 + $0x90] ss:$24 sps:$4 sm:$0xff]  }
  0x11   : > { %2631 = vmatpush1.bf16.msra.mxu0 %v9020_v5  ;;  %v9039_v17 = vld [vmem:[%s13771_s3 + $0x394] ss:$24 sps:$4 sm:$0xff]   ;;  %v9042_v19 = vld [vmem:[%s13771_s3 + $0x64] ss:$24 sps:$4 sm:$0xff]   ;;  %v9041_v20 = vld [vmem:[%s13771_s3 + $0x390] ss:$24 sps:$4 sm:$0xff]  }
  0x12   : > { %2632 = vmatprep.subr.bf16.mxu0 %v9024_v8  ;;  %2674 = vmatpush1.bf16.msra.mxu1 %v9023_v7  ;;  %v9045_v21 = vld [vmem:[%s13771_s3 + $0x364] ss:$24 sps:$4 sm:$0xff]   ;;  %v9044_v22 = vld [vmem:[%s13771_s3 + $0x60] ss:$24 sps:$4 sm:$0xff]   ;;  %v9048_v23 = vld [vmem:[%s13771_s3 + $0x34] ss:$24 sps:$4 sm:$0xff]  }
  0x13   : > { %2675 = vmatprep.subr.bf16.mxu1 %v9027_v10  ;;  %v9047_v24 = vld [vmem:[%s13771_s3 + $0x360] ss:$24 sps:$4 sm:$0xff]   ;;  %v9051_v25 = vld [vmem:[%s13771_s3 + $0x334] ss:$24 sps:$4 sm:$0xff]   ;;  %v9050_v26 = vld [vmem:[%s13771_s3 + $0x30] ss:$24 sps:$4 sm:$0xff]  }
  0x14   : > { %v9054_v27 = vld [vmem:[%s13771_s3 + $0x4] ss:$24 sps:$4 sm:$0xff]   ;;  %v9053_v28 = vld [vmem:[%s13771_s3 + $0x330] ss:$24 sps:$4 sm:$0xff]   ;;  %v9056_v30 = vld [vmem:[%s13771_s3] ss:$24 sps:$4 sm:$0xff]  }
  0x15   : > { %2633 = vmatpush1.bf16.msra.mxu0 %v9026_v9  ;;  %v9057_v29 = vld [vmem:[%s13771_s3 + $0x304] ss:$24 sps:$4 sm:$0xff]   ;;  %v9060_v32 = vld [vmem:[%s13771_s3 + $0x2d4] ss:$24 sps:$4 sm:$0xff]   ;;  %v9059_v33 = vld [vmem:[%s13771_s3 + $0x300] ss:$24 sps:$4 sm:$0xff]  }
  0x16   : > { %2634 = vmatprep.subr.bf16.mxu0 %v9030_v11  ;;  %2676 = vmatpush1.bf16.msra.mxu1 %v9029_v12  ;;  %v9063_v34 = vld [vmem:[%s13771_s3 + $0x5d4] ss:$24 sps:$4 sm:$0xff]   ;;  %v9062_v35 = vld [vmem:[%s13771_s3 + $0x2d0] ss:$24 sps:$4 sm:$0xff]   ;;  %s13787_s21 = smov (!%p436_p3, %s8128_s21), 3  ;;  %v10526_v36 = vshrl.u32 %v449_v31, 7 }
  0x17   : > { %2677 = vmatprep.subr.bf16.mxu1 %v9033_v13  ;;  %v9066_v37 = vld [vmem:[%s13771_s3 + $0x2a4] ss:$24 sps:$4 sm:$0xff]   ;;  %v10337_v38 = vmov 1983009808   ;;  %v10338_v40 = vmov 1966171168  }
  0x18   : > { %v598_v39 = vunpack.c.l.s4 %v10337_v38  ;;  %v775_v41 = vunpack.c.l.s4 %v10338_v40  ;;  %v9065_v42 = vld [vmem:[%s13771_s3 + $0x5d0] ss:$24 sps:$4 sm:$0xff]   ;;  %v451_v43 = vadd.s32 8, %v10526_v36  ;;  %v9069_v44 = vld [vmem:[%s13771_s3 + $0x5a4] ss:$24 sps:$4 sm:$0xff]   ;;  %s9001_s26 = smul.u32 48, %s13787_s21 }
  0x19   : > { %2635 = vmatpush1.bf16.msra.mxu0 %v9032_v14  ;;  %v9068_v45 = vld [vmem:[%s13771_s3 + $0x2a0] ss:$24 sps:$4 sm:$0xff]   ;;  %v9072_v46 = vld [vmem:[%s13771_s3 + $0x274] ss:$24 sps:$4 sm:$0xff]   ;;  %v456_v47 = vand.u32 15, %v10526_v36  ;;  %vm516_vm1 = vcmp.lt.s32.totalorder %v10526_v36, 1 }
  0x1a   : > { %2636 = vmatprep.subr.bf16.mxu0 %v9036_v15  ;;  %2678 = vmatpush1.bf16.msra.mxu1 %v9035_v16  ;;  %v599_v48 = vunpack.c.0.s8 %v598_v39  ;;  %v776_v49 = vunpack.c.0.s8 %v775_v41  ;;  %v9071_v50 = vld [vmem:[%s13771_s3 + $0x5a0] ss:$24 sps:$4 sm:$0xff]   ;;  %v463_v51 = vand.u32 15, %v451_v43  ;;  %v9075_v52 = vld [vmem:[%s13771_s3 + $0x574] ss:$24 sps:$4 sm:$0xff]   ;;  %s10563_s29 = scalar_lea.vmem %s13768_s0, %s9001_s26  ;;  %vm557_vm3 = vcmp.lt.s32.totalorder %v10526_v36, 7  ;;  %s13731_s19 = scalar_lea.vmem %s13781_s13, %s9001_s26 }
  0x1b   : > { %2679 = vmatprep.subr.bf16.mxu1 %v9039_v17  ;;  %v9074_v53 = vld [vmem:[%s13771_s3 + $0x270] ss:$24 sps:$4 sm:$0xff]   ;;  %v9078_v55 = vld [vmem:[%s13771_s3 + $0x244] ss:$24 sps:$4 sm:$0xff]   ;;  %vm10568_vm0 = vcmp.ne.s32.totalorder %v456_v47, 0  ;;  %v10593_v0 = vsub.s32 0, %v10526_v36 }
  0x1c   : > { %v9077_v54 = vld [vmem:[%s13771_s3 + $0x570] ss:$24 sps:$4 sm:$0xff]   ;;  %v10574_v57 = vsub.s32 %v599_v48, %v10526_v36  ;;  %v10577_v58 = vsub.s32 %v776_v49, %v10526_v36  ;;  %v9080_v59 = vld [vmem:[%s13771_s3 + $0x240] ss:$24 sps:$4 sm:$0xff]   ;;  %vm10582_vm2 = vcmp.ne.s32.totalorder %v463_v51, 15  ;;  %v10596_v1 = vsub.s32 1, %v10526_v36 }
  0x1d   : > { %2637 = vmatpush1.bf16.msra.mxu0 %v9038_v18  ;;  %v9081_v61 = vld [vmem:[%s13771_s3 + $0x544] ss:$24 sps:$4 sm:$0xff]   ;;  %v481_v62 = vld [vmem:[%s10563_s29 + $0x8] sm:$0xff]  ;;  %v9083_v2 = vld [vmem:[%s13771_s3 + $0x540] ss:$24 sps:$4 sm:$0xff]  }
  0x1e   : > { %2638 = vmatprep.subr.bf16.mxu0 %v9042_v19  ;;  %2680 = vmatpush1.bf16.msra.mxu1 %v9041_v20  ;;  %v487_v63 = vld [vmem:[%s10563_s29 + $0x38] sm:$0xff]  ;;  %v10601_v3 = vmax.f32 %v481_v62, 0.0  ;;  %v10608_v5 = vld [vmem:[%s13769_s1] sm:$0xff]  ;;  %v9084_v8 = vld [vmem:[%s13771_s3 + $0x214] ss:$24 sps:$4 sm:$0xff]  }
  0x1f   : > { %2681 = vmatprep.subr.bf16.mxu1 %v9045_v21  ;;  %v10603_v4 = vmax.f32 %v487_v63, 0.0  ;;  %v10613_v6 = vld [vmem:[%s13770_s2] sm:$0x3f]  ;;  %v10621_v9 = vrot.slane %v10608_v5, %v10574_v57  ;;  %v486_v11 = vld [vmem:[%s10563_s29 + $0x30] sm:$0xff]  ;;  %v596_v13 = vcombine.high %v10608_v5, %v10608_v5  ;;  %v483_v63 = vld [vmem:[%s10563_s29 + $0x18] sm:$0xff] }
  0x20   : > { %v480_v7 = vld [vmem:[%s10563_s29] sm:$0xff]  ;;  %v10625_v10 = vrot.slane %v10613_v6, %v10577_v58  ;;  %v505_v14 = vrot.slane %v10601_v3, 7  ;;  %v546_v16 = vrot.slane %v10601_v3, 1  ;;  %v9087_v18 = vld [vmem:[%s13771_s3 + $0x514] ss:$24 sps:$4 sm:$0xff]  }
  0x21   : > { %2639 = vmatpush1.bf16.msra.mxu0 %v9044_v22  ;;  %v10628_v12 = vmax.f32 %v480_v7, 0.0  ;;  %v511_v15 = vrot.slane %v10603_v4, 7  ;;  %v552_v17 = vrot.slane %v10603_v4, 1  ;;  %v611_v19 = vcombine.high %v10621_v9, %v10621_v9  ;;  %v9093_v39 = vld [vmem:[%s13771_s3 + $0x4e4] ss:$24 sps:$4 sm:$0xff]  }
  0x22   : > { %2640 = vmatprep.subr.bf16.mxu0 %v9048_v23  ;;  %2682 = vmatpush1.bf16.msra.mxu1 %v9047_v24  ;;  %v670_v20 = vpack.c.bf16 %v10603_v4, %v10601_v3  ;;  %v788_v21 = vcombine.high %v10625_v10, %v10625_v10  ;;  %v10645_v22 = vmax.f32 %v486_v11, 0.0  ;;  %v9086_v23 = vld [vmem:[%s13771_s3 + $0x210] ss:$24 sps:$4 sm:$0xff]   ;;  %v622_v48 = vpack.i.b16 %v10621_v9, %v10621_v9  ;;  %v9095_v49 = vld [vmem:[%s13771_s3 + $0x4e0] ss:$24 sps:$4 sm:$0xff]  }
  0x23   : > { %2683 = vmatprep.subr.bf16.mxu1 %v9051_v25  ;;  %v518_v24 = vsel %vm516_vm1, %v505_v14, %v511_v15  ;;  %v524_v25 = vsel %vm516_vm1, %v511_v15, %v505_v14  ;;  %v629_v31 = vpack.i.b16 %v611_v19, %v611_v19  ;;  %v504_v38 = vrot.slane %v10628_v12, 7  ;;  %v489_v11 = vld [vmem:[%s10563_s29 + $0x48] sm:$0xff] }
  0x24   : > { %v510_v43 = vrot.slane %v10645_v22, 7  ;;  %v551_v47 = vrot.slane %v10645_v22, 1  ;;  %v9098_v14 = vld [vmem:[%s13771_s3 + $0x1b0] ss:$24 sps:$4 sm:$0xff]   ;;  %v10120_v60 = vld [vmem:[%s13779_s11 + $0x78c] ss:$24 sps:$4 sm:$0xff]  }
  0x25   : > { %2641 = vmatpush1.bf16.msra.mxu0 %v9050_v26  ;;  %v559_v26 = vsel %vm557_vm3, %v546_v16, %v552_v17  ;;  %v634_v40 = vrot.slane %v629_v31, %v10593_v0 }
  0x26   : > { %2642 = vmatprep.subr.bf16.mxu0 %v9054_v27  ;;  %2684 = vmatpush1.bf16.msra.mxu1 %v9053_v28  ;;  %v565_v27 = vsel %vm557_vm3, %v552_v17, %v546_v16  ;;  %v9090_v28 = vld [vmem:[%s13771_s3 + $0x1e4] ss:$24 sps:$4 sm:$0xff]   ;;  %v669_v16 = vpack.c.bf16 %v10645_v22, %v10628_v12  ;;  %v675_v17 = vshrl.u32 %v10621_v9, 16  ;;  %v9101_v9 = vld [vmem:[%s13771_s3 + $0x4b0] ss:$24 sps:$4 sm:$0xff]  }
  0x27   : > { %2685 = vmatprep.subr.bf16.mxu1 %v9057_v29  ;;  %v534_v29 = vsel %vm10568_vm0, %v524_v25, 0.0  ;;  %v501_v25 = vmax.f32 %v489_v11, 0.0  ;;  %v9108_v11 = vld [vmem:[%s13771_s3 + $0x750] ss:$24 sps:$4 sm:$0xff]  }
  0x28   : > { %v676_v22 = vpack.i.b16 %v675_v17, %v675_v17 }
  0x29   : > { %2643 = vmatpush1.bf16.msra.mxu0 %v9056_v30  ;;  %v581_v30 = vsel %vm10582_vm2, %v565_v27, 0.0  ;;  %v9105_v27 = vld [vmem:[%s13771_s3 + $0x484] ss:$24 sps:$4 sm:$0xff]  }
  0x2a   : > { %2644 = vmatprep.subr.bf16.mxu0 %v9060_v32  ;;  %2686 = vmatpush1.bf16.msra.mxu1 %v9059_v33  ;;  %v682_v32 = vshrl.u32 %v611_v19, 16  ;;  %v9089_v33 = vld [vmem:[%s13771_s3 + $0x510] ss:$24 sps:$4 sm:$0xff]   ;;  %v9102_v19 = vld [vmem:[%s13771_s3 + $0x184] ss:$24 sps:$4 sm:$0xff]   ;;  %v681_v5 = vrot.slane %v676_v22, %v10593_v0 }
  0x2b   : > { %2687 = vmatprep.subr.bf16.mxu1 %v9063_v34  ;;  %v589_v34 = vpack.c.bf16 %v518_v24, %v534_v29  ;;  %v10727_v24 = vmax.f32 %v483_v63, 0.0 }
  0x2c   : > { %v683_v41 = vpack.i.b16 %v682_v32, %v682_v32 }
  0x2d   : > { %2645 = vmatpush2.bf16.msra.mxu0 %v9062_v35  ;;  %v730_v35 = vpack.c.bf16 %v581_v30, %v559_v26  ;;  %v664_v51 = vmul.bf16 %v634_v40, %v589_v34  ;;  %v10736_v26 = vrot.slane %v596_v13, %v10574_v57  ;;  %v513_v13 = vrot.slane %v501_v25, 7 }
  0x2e   : > { %2646 = vmatprep.subr.bf16.mxu0 %v9066_v37  ;;  %2688 = vmatpush2.bf16.msra.mxu1 %v9065_v42  ;;  %v10669_v37 = vrot.slane %v788_v21, %v10577_v58  ;;  %v742_v42 = vrot.slane %v629_v31, %v10596_v1  ;;  %v738_v21 = vrot.slane %v622_v48, %v10596_v1  ;;  %v507_v31 = vrot.slane %v10727_v24, 7 }
  0x2f   : > { %2689 = vmatprep.subr.bf16.mxu1 %v9069_v44  ;;  %v9092_v44 = vld [vmem:[%s13771_s3 + $0x1e0] ss:$24 sps:$4 sm:$0xff]   ;;  %v548_v32 = vrot.slane %v10727_v24, 1  ;;  %v612_v40 = vcombine.high %v10736_v26, %v10736_v26 }
  0x31   : > { %2647 = vmatpush2.bf16.msra.mxu0 %v9068_v45  ;;  %v828_v45 = vpack.i.b16 %v10669_v37, %v10669_v37 }
  0x32   : > { %2648 = vmatprep.subr.bf16.mxu0 %v9072_v46  ;;  %2690 = vmatpush2.bf16.msra.mxu1 %v9071_v50  ;;  %v545_v46 = vrot.slane %v10628_v12, 1  ;;  %v9096_v50 = vld [vmem:[%s13771_s3 + $0x1b4] ss:$24 sps:$4 sm:$0xff]  }
  0x33   : > { %2691 = vmatprep.subr.bf16.mxu1 %v9075_v52  ;;  %v688_v52 = vrot.slane %v683_v41, %v10593_v0  ;;  %v672_v41 = vpack.c.bf16 %v501_v25, %v10727_v24 }
  0x34   : > { %v564_v62 = vsel %vm557_vm3, %v551_v47, %v545_v46 }
  0x35   : > { %2649 = vmatpush2.bf16.msra.mxu0 %v9074_v53  ;;  %v760_v53 = vmul.bf16 %v742_v42, %v730_v35  ;;  %v718_v3 = vmul.bf16 %v688_v52, %v670_v20  ;;  %v580_v7 = vsel %vm10582_vm2, %v564_v62, 0.0  ;;  %v9107_v35 = vld [vmem:[%s13771_s3 + $0x480] ss:$24 sps:$4 sm:$0xff]   ;;  %v717_v42 = vmul.bf16 %v681_v5, %v669_v16  ;;  %v9114_v52 = vld [vmem:[%s13771_s3 + $0x15c] ss:$24 sps:$4 sm:$0xff]  }
  0x36   : > { %2650 = vmatprep.subr.bf16.mxu0 %v9078_v55  ;;  %2692 = vmatpush2.bf16.msra.mxu1 %v9077_v54  ;;  %v517_v54 = vsel %vm516_vm1, %v504_v38, %v510_v43  ;;  %v833_v55 = vrot.slane %v828_v45, %v10593_v0  ;;  %v636_v16 = vpack.i.b16 %v10736_v26, %v10736_v26 }
  0x37   : > { %2693 = vmatprep.subr.bf16.mxu1 %v9081_v61  ;;  %v558_v61 = vsel %vm557_vm3, %v545_v46, %v551_v47  ;;  %v724_v20 = vadd.bf16 %v718_v3, %v664_v51  ;;  %v482_v46 = vld [vmem:[%s10563_s29 + $0x10] sm:$0xff]  ;;  %v488_v47 = vld [vmem:[%s10563_s29 + $0x40] sm:$0xff]  ;;  %v696_v51 = vshrl.u32 %v612_v40, 16 }
  0x38   : > { %v641_v22 = vrot.slane %v636_v16, %v10593_v0 }
  0x39   : > { %2651 = vmatpush2.bf16.msra.mxu0 %v9080_v59  ;;  %v523_v59 = vsel %vm516_vm1, %v510_v43, %v504_v38  ;;  %v520_v43 = vsel %vm516_vm1, %v507_v31, %v513_v13  ;;  %v697_v62 = vpack.i.b16 %v696_v51, %v696_v51  ;;  %v9127_v51 = vld [vmem:[%s13771_s3 + $0x6c0] ss:$24 sps:$4 sm:$0xff]  }
  0x3a   : > { %2652 = vmatprep.subr.bf16.mxu0 %v9084_v8  ;;  %2694 = vmatpush2.bf16.msra.mxu1 %v9083_v2  ;;  %v9099_v2 = vld [vmem:[%s13771_s3 + $0x4b4] ss:$24 sps:$4 sm:$0xff]   ;;  %v533_v4 = vsel %vm10568_vm0, %v523_v59, 0.0  ;;  %v627_v8 = vrot.slane %v622_v48, %v10593_v0  ;;  %v819_v59 = vcombine.high %v10669_v37, %v10669_v37 }
  0x3b   : > { %2695 = vmatprep.subr.bf16.mxu1 %v9087_v18  ;;  %v588_v15 = vpack.c.bf16 %v517_v54, %v533_v4  ;;  %v729_v18 = vpack.c.bf16 %v580_v7, %v558_v61  ;;  %v494_v7 = vmax.f32 %v482_v46, 0.0  ;;  %v9121_v46 = vld [vmem:[%s13771_s3 + $0x6f0] ss:$24 sps:$4 sm:$0xff]  }
  0x3c   : > { %v842_v4 = vpack.i.b16 %v819_v59, %v819_v59  ;;  %v9120_v59 = vld [vmem:[%s13771_s3 + $0x12c] ss:$24 sps:$4 sm:$0xff]  }
  0x3d   : > { %2653 = vmatpush2.bf16.msra.mxu0 %v9086_v23  ;;  %v10725_v23 = vrot.slane %v10625_v10, %v10577_v58  ;;  %v663_v12 = vmul.bf16 %v627_v8, %v588_v15  ;;  %v9104_v10 = vld [vmem:[%s13771_s3 + $0x180] ss:$24 sps:$4 sm:$0xff]   ;;  %v759_v29 = vmul.bf16 %v738_v21, %v729_v18  ;;  %v500_v8 = vmax.f32 %v488_v47, 0.0  ;;  %v9117_v21 = vld [vmem:[%s13771_s3 + $0x724] ss:$24 sps:$4 sm:$0xff]  }
  0x3e   : > { %2654 = vmatprep.subr.bf16.mxu0 %v9090_v28  ;;  %2696 = vmatpush2.bf16.msra.mxu1 %v9089_v33  ;;  %v766_v28 = vadd.bf16 %v760_v53, %v724_v20  ;;  %v554_v33 = vrot.slane %v501_v25, 1  ;;  %v702_v15 = vrot.slane %v697_v62, %v10593_v0  ;;  %v847_v18 = vrot.slane %v842_v4, %v10593_v0 }
  0x3f   : > { %2697 = vmatprep.subr.bf16.mxu1 %v9093_v39  ;;  %v821_v30 = vpack.i.b16 %v10725_v23, %v10725_v23  ;;  %v9110_v39 = vld [vmem:[%s13771_s3 + $0x754] ss:$24 sps:$4 sm:$0xff]   ;;  %v723_v53 = vadd.bf16 %v717_v42, %v663_v12  ;;  %v512_v20 = vrot.slane %v500_v8, 7  ;;  %v553_v12 = vrot.slane %v500_v8, 1 }
  0x40   : > { %v10749_v34 = vadd.bf16 %v833_v55, %v766_v28  ;;  %v561_v45 = vsel %vm557_vm3, %v548_v32, %v554_v33  ;;  %v720_v24 = vmul.bf16 %v702_v15, %v672_v41  ;;  %v689_v28 = vshrl.u32 %v10736_v26, 16  ;;  %v9153_v15 = vld [vmem:[%s13771_s3 + $0x604] ss:$24 sps:$4 sm:$0xff]  }
  0x41   : > { %2655 = vmatpush2.bf16.msra.mxu0 %v9092_v44  ;;  %v826_v38 = vrot.slane %v821_v30, %v10593_v0  ;;  %v526_v44 = vsel %vm516_vm1, %v513_v13, %v507_v31  ;;  %v765_v3 = vadd.bf16 %v759_v29, %v723_v53  ;;  %v9115_v13 = vld [vmem:[%s13771_s3 + $0x720] ss:$24 sps:$4 sm:$0xff]   ;;  %v818_v41 = vcombine.high %v10725_v23, %v10725_v23  ;;  %v9135_v53 = vld [vmem:[%s13771_s3 + $0x694] ss:$24 sps:$4 sm:$0xff]  }
  0x42   : > { %2656 = vmatprep.subr.bf16.mxu0 %v9096_v50  ;;  %2698 = vmatpush2.bf16.msra.mxu1 %v9095_v49  ;;  %v536_v48 = vsel %vm10568_vm0, %v526_v44, 0.0  ;;  %v567_v49 = vsel %vm557_vm3, %v554_v33, %v548_v32  ;;  %v643_v50 = vpack.i.b16 %v612_v40, %v612_v40  ;;  %v690_v26 = vpack.i.b16 %v689_v28, %v689_v28  ;;  %v9136_v28 = vld [vmem:[%s13771_s3 + $0x98] ss:$24 sps:$4 sm:$0xff]  }
  0x43   : > { %2699 = vmatprep.subr.bf16.mxu1 %v9099_v2  ;;  %2660 = vmatprep.mubr.bf16.mxu0 %v10749_v34  ;;  %v583_v54 = vsel %vm10582_vm2, %v567_v49, 0.0  ;;  %v591_v55 = vpack.c.bf16 %v520_v43, %v536_v48  ;;  %v10789_v17 = vadd.bf16 %v826_v38, %v765_v3  ;;  %v9123_v38 = vld [vmem:[%s13771_s3 + $0x6f4] ss:$24 sps:$4 sm:$0xff]   ;;  %v9129_v49 = vld [vmem:[%s13771_s3 + $0x6c4] ss:$24 sps:$4 sm:$0xff]   ;;  %v773_v62 = vcombine.high %v10613_v6, %v10613_v6 }
  0x44   : > { %v648_v61 = vrot.slane %v643_v50, %v10593_v0  ;;  %v732_v63 = vpack.c.bf16 %v583_v54, %v561_v45  ;;  %v750_v2 = vrot.slane %v643_v50, %v10596_v1  ;;  %v695_v43 = vrot.slane %v690_v26, %v10593_v0  ;;  %v9112_v54 = vld [vmem:[%s13771_s3 + $0x158] ss:$24 sps:$4 sm:$0xff]   ;;  %v9126_v6 = vld [vmem:[%s13771_s3 + $0xfc] ss:$24 sps:$4 sm:$0xff]  }
  0x45   : > { %2657 = vmatpush2.bf16.msra.mxu0 %v9098_v14  ;;  %v835_v45 = vpack.i.b16 %v818_v41, %v818_v41  ;;  %v9139_v3 = vld [vmem:[%s13771_s3 + $0x660] ss:$24 sps:$4 sm:$0xff]   ;;  %v10864_v4 = vrot.slane %v773_v62, %v10577_v58 }
  0x46   : > { %2658 = vmatprep.subr.bf16.mxu0 %v9102_v19  ;;  %2700 = vmatpush2.bf16.msra.mxu1 %v9101_v9  ;;  %v666_v14 = vmul.bf16 %v648_v61, %v591_v55  ;;  %v762_v37 = vmul.bf16 %v750_v2, %v732_v63  ;;  %v506_v19 = vrot.slane %v494_v7, 7  ;;  %v547_v9 = vrot.slane %v494_v7, 1  ;;  %v9133_v61 = vld [vmem:[%s13771_s3 + $0x690] ss:$24 sps:$4 sm:$0xff]   ;;  %v9141_v63 = vld [vmem:[%s13771_s3 + $0x664] ss:$24 sps:$4 sm:$0xff]  }
  0x47   : > { %2701 = vmatprep.subr.bf16.mxu1 %v9105_v27  ;;  %v671_v27 = vpack.c.bf16 %v500_v8, %v494_v7  ;;  %v840_v50 = vrot.slane %v835_v45, %v10593_v0  ;;  %v9118_v2 = vld [vmem:[%s13771_s3 + $0x128] ss:$24 sps:$4 sm:$0xff]   ;;  %v9147_v7 = vld [vmem:[%s13771_s3 + $0x634] ss:$24 sps:$4 sm:$0xff]   ;;  %v9124_v8 = vld [vmem:[%s13771_s3 + $0xf8] ss:$24 sps:$4 sm:$0xff]  }
  0x48   : > { %v519_v25 = vsel %vm516_vm1, %v506_v19, %v512_v20  ;;  %v726_v29 = vadd.bf16 %v720_v24, %v666_v14  ;;  %v560_v31 = vsel %vm557_vm3, %v547_v9, %v553_v12  ;;  %v566_v5 = vsel %vm557_vm3, %v553_v12, %v547_v9  ;;  %v9145_v14 = vld [vmem:[%s13771_s3 + $0x630] ss:$24 sps:$4 sm:$0xff]   ;;  %v9138_v9 = vld [vmem:[%s13771_s3 + $0x9c] ss:$24 sps:$4 sm:$0xff]  }
  0x49   : > { %2659 = vmatpush2.bf16.msra.mxu0 %v9104_v10  ;;  %v525_v10 = vsel %vm516_vm1, %v512_v20, %v506_v19  ;;  %v582_v32 = vsel %vm10582_vm2, %v566_v5, 0.0  ;;  %v719_v47 = vmul.bf16 %v695_v43, %v671_v27  ;;  %v9130_v24 = vld [vmem:[%s13771_s3 + $0xc8] ss:$24 sps:$4 sm:$0xff]   ;;  %v490_v45 = vld [vmem:[%s10563_s29 + $0x50] sm:$0xff] }
  0x4a   : > { %2714 = vmatprep.subr.bf16.mxu0 %v9110_v39  ;;  %2702 = vmatpush2.bf16.msra.mxu1 %v9107_v35  ;;  %v535_v30 = vsel %vm10568_vm0, %v525_v10, 0.0  ;;  %v746_v35 = vrot.slane %v636_v16, %v10596_v1  ;;  %v768_v39 = vadd.bf16 %v762_v37, %v726_v29  ;;  %v731_v40 = vpack.c.bf16 %v582_v32, %v560_v31  ;;  %v485_v37 = vld [vmem:[%s10563_s29 + $0x28] sm:$0xff]  ;;  %v491_v16 = vld [vmem:[%s10563_s29 + $0x58] sm:$0xff] }
  0x4b   : > { %2757 = vmatprep.subr.bf16.mxu1 %v9114_v52  ;;  %v590_v33 = vpack.c.bf16 %v519_v25, %v535_v30  ;;  %v497_v19 = vmax.f32 %v485_v37, 0.0  ;;  %v503_v20 = vmax.f32 %v491_v16, 0.0  ;;  %v9151_v29 = vld [vmem:[%s13771_s3 + $0x600] ss:$24 sps:$4 sm:$0xff]   ;;  %v9159_v32 = vld [vmem:[%s13771_s3 + $0x8d4] ss:$24 sps:$4 sm:$0xff]  }
  0x4c   : > { %2661 = vmatmul.mubr.bf16.vlgmr.msra.gmra.mxu0 %v10789_v17  ;;  %v10820_v44 = vadd.bf16 %v847_v18, %v768_v39  ;;  %v761_v48 = vmul.bf16 %v746_v35, %v731_v40  ;;  %v789_v18 = vcombine.high %v10864_v4, %v10864_v4  ;;  %v484_v39 = vld [vmem:[%s10563_s29 + $0x20] sm:$0xff] }
  0x4d   : > { %2715 = vmatpush1.bf16.msra.mxu0 %v9108_v11  ;;  %v665_v42 = vmul.bf16 %v641_v22, %v590_v33  ;;  %v9132_v11 = vld [vmem:[%s13771_s3 + $0xcc] ss:$24 sps:$4 sm:$0xff]   ;;  %v509_v22 = vrot.slane %v497_v19, 7  ;;  %v515_v25 = vrot.slane %v503_v20, 7  ;;  %v550_v10 = vrot.slane %v497_v19, 1 }
  0x4e   : > { %2716 = vmatprep.subr.bf16.mxu0 %v9117_v21  ;;  %2703 = vmatprep.mubr.bf16.mxu1 %v10820_v44  ;;  %v10888_v21 = vld.sshfl [vmem:[%s13769_s1 + $0x8] sm:$0x33 pattern:$0x76325410]  ;;  %v556_v27 = vrot.slane %v503_v20, 1  ;;  %v674_v31 = vpack.c.bf16 %v503_v20, %v497_v19 }
  0x4f   : > { %v725_v23 = vadd.bf16 %v719_v47, %v665_v42  ;;  %v620_v12 = vcombine.high %v10888_v21, %v10888_v21  ;;  %v522_v33 = vsel %vm516_vm1, %v509_v22, %v515_v25  ;;  %v528_v26 = vsel %vm516_vm1, %v515_v25, %v509_v22  ;;  %v9156_v16 = vld [vmem:[%s13771_s3 + $0xc] ss:$24 sps:$4 sm:$0xff]   ;;  %v9169_v19 = vld [vmem:[%s13771_s3 + $0x870] ss:$24 sps:$4 sm:$0xff]  }
  0x50   : > { %v563_v35 = vsel %vm557_vm3, %v550_v10, %v556_v27  ;;  %v538_v40 = vsel %vm10568_vm0, %v528_v26, 0.0  ;;  %v9154_v25 = vld [vmem:[%s13771_s3 + $0x8] ss:$24 sps:$4 sm:$0xff]  }
  0x51   : > { %2717 = vmatpush1.bf16.msra.mxu0 %v9115_v13  ;;  %v767_v52 = vadd.bf16 %v761_v48, %v725_v23  ;;  %v657_v30 = vpack.i.b16 %v620_v12, %v620_v12  ;;  %v710_v5 = vshrl.u32 %v620_v12, 16  ;;  %v817_v13 = vrot.slane %v789_v18, %v10577_v58  ;;  %v9157_v23 = vld [vmem:[%s13771_s3 + $0x8d0] ss:$24 sps:$4 sm:$0xff]  }
  0x52   : > { %2718 = vmatprep.subr.bf16.mxu0 %v9123_v38  ;;  %v569_v38 = vsel %vm557_vm3, %v556_v27, %v550_v10  ;;  %v593_v47 = vpack.c.bf16 %v522_v33, %v538_v40  ;;  %v703_v18 = vshrl.u32 %v10888_v21, 16  ;;  %v9162_v10 = vld [vmem:[%s13771_s3 + $0x2dc] ss:$24 sps:$4 sm:$0xff]   ;;  %v650_v27 = vpack.i.b16 %v10888_v21, %v10888_v21 }
  0x53   : > { %v10839_v55 = vadd.bf16 %v840_v50, %v767_v52  ;;  %v585_v41 = vsel %vm10582_vm2, %v569_v38, 0.0  ;;  %v662_v42 = vrot.slane %v657_v30, %v10593_v0  ;;  %v711_v43 = vpack.i.b16 %v710_v5, %v710_v5  ;;  %v9165_v52 = vld [vmem:[%s13771_s3 + $0x8a4] ss:$24 sps:$4 sm:$0xff]   ;;  %v9183_v5 = vld [vmem:[%s13771_s3 + $0x814] ss:$24 sps:$4 sm:$0xff]  }
  0x54   : > { %v734_v48 = vpack.c.bf16 %v585_v41, %v563_v35  ;;  %v655_v26 = vrot.slane %v650_v27, %v10593_v0 }
  0x55   : > { %2719 = vmatpush1.bf16.msra.mxu0 %v9121_v46  ;;  %2704 = vmatmul.mubr.bf16.vlgmr.msra.gmra.mxu1 %v10839_v55  ;;  %v9144_v46 = vld [vmem:[%s13771_s3 + $0x6c] ss:$24 sps:$4 sm:$0xff]   ;;  %v716_v50 = vrot.slane %v711_v43, %v10593_v0  ;;  %v9166_v43 = vld [vmem:[%s13771_s3 + $0x2a8] ss:$24 sps:$4 sm:$0xff]  }
  0x56   : > { %2720 = vmatprep.subr.bf16.mxu0 %v9129_v49  ;;  %2758 = vmatpush1.bf16.msra.mxu1 %v9112_v54  ;;  %v758_v49 = vrot.slane %v657_v30, %v10596_v1  ;;  %v10934_v54 = vmax.f32 %v484_v39, 0.0  ;;  %v9181_v39 = vld [vmem:[%s13771_s3 + $0x810] ss:$24 sps:$4 sm:$0xff]  }
  0x57   : > { %2789 = vmatprep.mubr.bf16.mxu1 %v10749_v34  ;;  %2759 = vmatprep.subr.bf16.mxu1 %v9120_v59  ;;  %v10936_v59 = vmax.f32 %v490_v45, 0.0  ;;  %v722_v62 = vmul.bf16 %v716_v50, %v674_v31  ;;  %v803_v45 = vrot.slane %v10864_v4, %v10577_v58  ;;  %v9187_v50 = vld [vmem:[%s13771_s3 + $0x7e0] ss:$24 sps:$4 sm:$0xff]   ;;  %v9195_v4 = vld [vmem:[%s13771_s3 + $0x7b4] ss:$24 sps:$4 sm:$0xff]  }
  0x58   : > { %v549_v12 = vrot.slane %v10934_v54, 1 }
  0x59   : > { %2721 = vmatpush1.bf16.msra.mxu0 %v9127_v51  ;;  %v856_v51 = vpack.i.b16 %v817_v13, %v817_v13  ;;  %v555_v22 = vrot.slane %v10936_v59, 1  ;;  %v9160_v13 = vld [vmem:[%s13771_s3 + $0x2d8] ss:$24 sps:$4 sm:$0xff]   ;;  %v673_v35 = vpack.c.bf16 %v10936_v59, %v10934_v54 }
  0x5a   : > { %2722 = vmatprep.subr.bf16.mxu0 %v9135_v53  ;;  %2760 = vmatpush1.bf16.msra.mxu1 %v9118_v2  ;;  %v668_v53 = vmul.bf16 %v662_v42, %v593_v47  ;;  %v9150_v2 = vld [vmem:[%s13771_s3 + $0x3c] ss:$24 sps:$4 sm:$0xff]  }
  0x5b   : > { %2761 = vmatprep.subr.bf16.mxu1 %v9126_v6  ;;  %v9163_v6 = vld [vmem:[%s13771_s3 + $0x8a0] ss:$24 sps:$4 sm:$0xff]   ;;  %v568_v21 = vsel %vm557_vm3, %v555_v22, %v549_v12  ;;  %v562_v40 = vsel %vm557_vm3, %v549_v12, %v555_v22  ;;  %v9189_v42 = vld [vmem:[%s13771_s3 + $0x7e4] ss:$24 sps:$4 sm:$0xff]  }
  0x5c   : > { %v584_v41 = vsel %vm10582_vm2, %v568_v21, 0.0  ;;  %v9196_v12 = vld [vmem:[%s13771_s3 + $0x1b8] ss:$24 sps:$4 sm:$0xff]   ;;  %v9204_v22 = vld [vmem:[%s13771_s3 + $0x18c] ss:$24 sps:$4 sm:$0xff]  }
  0x5d   : > { %2723 = vmatpush1.bf16.msra.mxu0 %v9133_v61  ;;  %v9142_v61 = vld [vmem:[%s13771_s3 + $0x68] ss:$24 sps:$4 sm:$0xff]   ;;  %v9230_v21 = vld [vmem:[%s13771_s3 + $0x398] ss:$24 sps:$4 sm:$0xff]  }
  0x5e   : > { %2724 = vmatprep.subr.bf16.mxu0 %v9141_v63  ;;  %2762 = vmatpush1.bf16.msra.mxu1 %v9124_v8  ;;  %v764_v63 = vmul.bf16 %v758_v49, %v734_v48  ;;  %v9171_v8 = vld [vmem:[%s13771_s3 + $0x874] ss:$24 sps:$4 sm:$0xff]   ;;  %v733_v49 = vpack.c.bf16 %v584_v41, %v562_v40  ;;  %v9242_v40 = vld [vmem:[%s13771_s3 + $0x338] ss:$24 sps:$4 sm:$0xff]  }
  0x5f   : > { %2763 = vmatprep.subr.bf16.mxu1 %v9132_v11  ;;  %v508_v11 = vrot.slane %v10934_v54, 7  ;;  %v9250_v41 = vld [vmem:[%s13771_s3 + $0x30c] ss:$24 sps:$4 sm:$0xff]  }
  0x61   : > { %2725 = vmatpush1.bf16.msra.mxu0 %v9139_v3  ;;  %v728_v3 = vadd.bf16 %v722_v62, %v668_v53  ;;  %v9201_v62 = vld [vmem:[%s13771_s3 + $0x784] ss:$24 sps:$4 sm:$0xff]  }
  0x62   : > { %2726 = vmatprep.subr.bf16.mxu0 %v9147_v7  ;;  %2764 = vmatpush1.bf16.msra.mxu1 %v9130_v24  ;;  %v861_v7 = vrot.slane %v856_v51, %v10593_v0  ;;  %v9177_v24 = vld [vmem:[%s13771_s3 + $0x844] ss:$24 sps:$4 sm:$0xff]   ;;  %v9172_v51 = vld [vmem:[%s13771_s3 + $0x278] ss:$24 sps:$4 sm:$0xff]  }
  0x63   : > { %2765 = vmatprep.subr.bf16.mxu1 %v9138_v9  ;;  %v770_v37 = vadd.bf16 %v764_v63, %v728_v3  ;;  %v9178_v63 = vld [vmem:[%s13771_s3 + $0x248] ss:$24 sps:$4 sm:$0xff]  }
  0x65   : > { %2727 = vmatpush1.bf16.msra.mxu0 %v9145_v14  ;;  %v514_v14 = vrot.slane %v10936_v59, 7  ;;  %v10963_v20 = vadd.bf16 %v861_v7, %v770_v37  ;;  %v849_v59 = vpack.i.b16 %v803_v45, %v803_v45  ;;  %v9199_v7 = vld [vmem:[%s13771_s3 + $0x780] ss:$24 sps:$4 sm:$0xff]  }
  0x66   : > { %2728 = vmatprep.subr.bf16.mxu0 %v9153_v15  ;;  %2766 = vmatpush1.bf16.msra.mxu1 %v9136_v28  ;;  %v9148_v15 = vld [vmem:[%s13771_s3 + $0x38] ss:$24 sps:$4 sm:$0xff]   ;;  %v704_v28 = vpack.i.b16 %v703_v18, %v703_v18  ;;  %v9190_v18 = vld [vmem:[%s13771_s3 + $0x1e8] ss:$24 sps:$4 sm:$0xff]  }
  0x67   : > { %2767 = vmatprep.subr.bf16.mxu1 %v9144_v46  ;;  %v527_v9 = vsel %vm516_vm1, %v514_v14, %v508_v11  ;;  %2746 = vmatprep.mubr.bf16.mxu0 %v10963_v20  ;;  %v521_v30 = vsel %vm516_vm1, %v508_v11, %v514_v14  ;;  %v9174_v46 = vld [vmem:[%s13771_s3 + $0x27c] ss:$24 sps:$4 sm:$0xff]   ;;  %v854_v3 = vrot.slane %v849_v59, %v10593_v0  ;;  %v9184_v11 = vld [vmem:[%s13771_s3 + $0x218] ss:$24 sps:$4 sm:$0xff]   ;;  %v9192_v14 = vld [vmem:[%s13771_s3 + $0x1ec] ss:$24 sps:$4 sm:$0xff]  }
  0x68   : > { %v537_v31 = vsel %vm10568_vm0, %v527_v9, 0.0  ;;  %v709_v38 = vrot.slane %v704_v28, %v10593_v0  ;;  %v9206_v37 = vld [vmem:[%s13771_s3 + $0x458] ss:$24 sps:$4 sm:$0xff]   ;;  %v9220_v9 = vld [vmem:[%s13771_s3 + $0x3fc] ss:$24 sps:$4 sm:$0xff]  }
  0x69   : > { %2729 = vmatpush1.bf16.msra.mxu0 %v9151_v29  ;;  %v9175_v29 = vld [vmem:[%s13771_s3 + $0x840] ss:$24 sps:$4 sm:$0xff]   ;;  %v592_v33 = vpack.c.bf16 %v521_v30, %v537_v31  ;;  %v9211_v28 = vld [vmem:[%s13771_s3 + $0x75c] ss:$24 sps:$4 sm:$0xff]  }
  0x6a   : > { %2730 = vmatprep.subr.bf16.mxu0 %v9159_v32  ;;  %2768 = vmatpush1.bf16.msra.mxu1 %v9142_v61  ;;  %v9168_v32 = vld [vmem:[%s13771_s3 + $0x2ac] ss:$24 sps:$4 sm:$0xff]   ;;  %v721_v48 = vmul.bf16 %v709_v38, %v673_v35  ;;  %v9193_v61 = vld [vmem:[%s13771_s3 + $0x7b0] ss:$24 sps:$4 sm:$0xff]   ;;  %v9232_v30 = vld [vmem:[%s13771_s3 + $0x39c] ss:$24 sps:$4 sm:$0xff]  }
  0x6b   : > { %2769 = vmatprep.subr.bf16.mxu1 %v9150_v2  ;;  %v667_v47 = vmul.bf16 %v655_v26, %v592_v33  ;;  %v9186_v2 = vld [vmem:[%s13771_s3 + $0x21c] ss:$24 sps:$4 sm:$0xff]   ;;  %v9209_v31 = vld [vmem:[%s13771_s3 + $0x758] ss:$24 sps:$4 sm:$0xff]   ;;  %v9236_v26 = vld [vmem:[%s13771_s3 + $0x368] ss:$24 sps:$4 sm:$0xff]  }
  0x6c   : > { %v9223_v33 = vld [vmem:[%s13771_s3 + $0x6fc] ss:$24 sps:$4 sm:$0xff]   ;;  %v9221_v38 = vld [vmem:[%s13771_s3 + $0x6f8] ss:$24 sps:$4 sm:$0xff]   ;;  %v9248_v45 = vld [vmem:[%s13771_s3 + $0x308] ss:$24 sps:$4 sm:$0xff]  }
  0x6d   : > { %2731 = vmatpush2.bf16.msra.mxu0 %v9157_v23  ;;  %v754_v23 = vrot.slane %v650_v27, %v10596_v1  ;;  %v727_v53 = vadd.bf16 %v721_v48, %v667_v47  ;;  %v9202_v27 = vld [vmem:[%s13771_s3 + $0x188] ss:$24 sps:$4 sm:$0xff]   ;;  %v9244_v35 = vld [vmem:[%s13771_s3 + $0x33c] ss:$24 sps:$4 sm:$0xff]   ;;  %v9233_v47 = vld [vmem:[%s13771_s3 + $0x698] ss:$24 sps:$4 sm:$0xff]  }
  0x6e   : > { %2732 = vmatprep.subr.bf16.mxu0 %v9165_v52  ;;  %2770 = vmatpush1.bf16.msra.mxu1 %v9148_v15  ;;  %v9180_v52 = vld [vmem:[%s13771_s3 + $0x24c] ss:$24 sps:$4 sm:$0xff]   ;;  %v9266_v59 = vld [vmem:[%s13771_s3 + $0x578] ss:$24 sps:$4 sm:$0xff]  }
  0x6f   : > { %2771 = vmatprep.subr.bf16.mxu1 %v9156_v16  ;;  %v763_v54 = vmul.bf16 %v754_v23, %v733_v49  ;;  %v9214_v16 = vld [vmem:[%s13771_s3 + $0x42c] ss:$24 sps:$4 sm:$0xff]   ;;  %v9254_v49 = vld [vmem:[%s13771_s3 + $0x5d8] ss:$24 sps:$4 sm:$0xff]  }
  0x70   : > { %v9241_v48 = vld [vmem:[%s13771_s3 + $0x66c] ss:$24 sps:$4 sm:$0xff]  }
  0x71   : > { %2733 = vmatpush2.bf16.msra.mxu0 %v9163_v6  ;;  %v769_v6 = vadd.bf16 %v763_v54, %v727_v53  ;;  %v9262_v23 = vld [vmem:[%s13771_s3 + $0x5ac] ss:$24 sps:$4 sm:$0xff]   ;;  %v9245_v53 = vld [vmem:[%s13771_s3 + $0x638] ss:$24 sps:$4 sm:$0xff]  }
  0x72   : > { %2734 = vmatprep.subr.bf16.mxu0 %v9171_v8  ;;  %2772 = vmatpush1.bf16.msra.mxu1 %v9154_v25  ;;  %v9208_v8 = vld [vmem:[%s13771_s3 + $0x45c] ss:$24 sps:$4 sm:$0xff]   ;;  %v9218_v25 = vld [vmem:[%s13771_s3 + $0x3f8] ss:$24 sps:$4 sm:$0xff]   ;;  %v9253_v54 = vld [vmem:[%s13771_s3 + $0x60c] ss:$24 sps:$4 sm:$0xff]  }
  0x73   : > { %2773 = vmatprep.subr.bf16.mxu1 %v9162_v10  ;;  %v11059_v15 = vadd.bf16 %v854_v3, %v769_v6  ;;  %v9226_v10 = vld [vmem:[%s13771_s3 + $0x3cc] ss:$24 sps:$4 sm:$0xff]   ;;  %v9280_v6 = vld [vmem:[%s13771_s3 + $0x51c] ss:$24 sps:$4 sm:$0xff]   ;;  %v9257_v3 = vld [vmem:[%s13771_s3 + $0x8d8] ss:$24 sps:$4 sm:$0xff]  }
  0x75   : > { %2735 = vmatpush2.bf16.msra.mxu0 %v9169_v19  ;;  %v9198_v19 = vld [vmem:[%s13771_s3 + $0x1bc] ss:$24 sps:$4 sm:$0xff]  }
  0x76   : > { %2736 = vmatprep.subr.bf16.mxu0 %v9177_v24  ;;  %2774 = vmatpush2.bf16.msra.mxu1 %v9160_v13  ;;  %v9212_v24 = vld [vmem:[%s13771_s3 + $0x428] ss:$24 sps:$4 sm:$0xff]   ;;  %v9238_v13 = vld [vmem:[%s13771_s3 + $0x36c] ss:$24 sps:$4 sm:$0xff]  }
  0x77   : > { %2775 = vmatprep.subr.bf16.mxu1 %v9168_v32  ;;  %v9215_v32 = vld [vmem:[%s13771_s3 + $0x728] ss:$24 sps:$4 sm:$0xff]  }
  0x79   : > { %2737 = vmatpush2.bf16.msra.mxu0 %v9175_v29  ;;  %v9224_v29 = vld [vmem:[%s13771_s3 + $0x3c8] ss:$24 sps:$4 sm:$0xff]  }
  0x7a   : > { %2738 = vmatprep.subr.bf16.mxu0 %v9183_v5  ;;  %2776 = vmatpush2.bf16.msra.mxu1 %v9166_v43  ;;  %v9217_v5 = vld [vmem:[%s13771_s3 + $0x72c] ss:$24 sps:$4 sm:$0xff]   ;;  %v9235_v43 = vld [vmem:[%s13771_s3 + $0x69c] ss:$24 sps:$4 sm:$0xff]  }
  0x7b   : > { %2777 = vmatprep.subr.bf16.mxu1 %v9174_v46  ;;  %v9256_v46 = vld [vmem:[%s13771_s3 + $0x5dc] ss:$24 sps:$4 sm:$0xff]  }
  0x7d   : > { %2739 = vmatpush2.bf16.msra.mxu0 %v9181_v39  ;;  %v9229_v39 = vld [vmem:[%s13771_s3 + $0x6cc] ss:$24 sps:$4 sm:$0xff]  }
  0x7e   : > { %2740 = vmatprep.subr.bf16.mxu0 %v9189_v42  ;;  %2778 = vmatpush2.bf16.msra.mxu1 %v9172_v51  ;;  %v9227_v42 = vld [vmem:[%s13771_s3 + $0x6c8] ss:$24 sps:$4 sm:$0xff]  }
  0x7f   : > { %2779 = vmatprep.subr.bf16.mxu1 %v9180_v52  ;;  %v9260_v51 = vld [vmem:[%s13771_s3 + $0x5a8] ss:$24 sps:$4 sm:$0xff]   ;;  %v9268_v52 = vld [vmem:[%s13771_s3 + $0x57c] ss:$24 sps:$4 sm:$0xff]  }
  0x81   : > { %2741 = vmatpush2.bf16.msra.mxu0 %v9187_v50  ;;  %v9239_v50 = vld [vmem:[%s13771_s3 + $0x668] ss:$24 sps:$4 sm:$0xff]  }
  0x82   : > { %2742 = vmatprep.subr.bf16.mxu0 %v9195_v4  ;;  %2780 = vmatpush2.bf16.msra.mxu1 %v9178_v63  ;;  %v9247_v4 = vld [vmem:[%s13771_s3 + $0x63c] ss:$24 sps:$4 sm:$0xff]  }
  0x83   : > { %2781 = vmatprep.subr.bf16.mxu1 %v9186_v2  ;;  %v9259_v63 = vld [vmem:[%s13771_s3 + $0x8dc] ss:$24 sps:$4 sm:$0xff]   ;;  %v9272_v2 = vld [vmem:[%s13771_s3 + $0x548] ss:$24 sps:$4 sm:$0xff]  }
  0x85   : > { %2743 = vmatpush2.bf16.msra.mxu0 %v9193_v61  ;;  %v9274_v61 = vld [vmem:[%s13771_s3 + $0x54c] ss:$24 sps:$4 sm:$0xff]  }
  0x86   : > { %2744 = vmatprep.subr.bf16.mxu0 %v9201_v62  ;;  %2782 = vmatpush2.bf16.msra.mxu1 %v9184_v11  ;;  %v9251_v62 = vld [vmem:[%s13771_s3 + $0x608] ss:$24 sps:$4 sm:$0xff]   ;;  %v9286_v11 = vld [vmem:[%s13771_s3 + $0x4ec] ss:$24 sps:$4 sm:$0xff]  }
  0x87   : > { %2783 = vmatprep.subr.bf16.mxu1 %v9192_v14  ;;  %v9263_v14 = vld [vmem:[%s13771_s3 + $0x8a8] ss:$24 sps:$4 sm:$0xff]  }
  0x89   : > { %2745 = vmatpush2.bf16.msra.mxu0 %v9199_v7  ;;  %v9265_v7 = vld [vmem:[%s13771_s3 + $0x8ac] ss:$24 sps:$4 sm:$0xff]  }
  0x8a   : > { %2800 = vmatprep.subr.bf16.mxu0 %v9208_v8  ;;  %2784 = vmatpush2.bf16.msra.mxu1 %v9190_v18  ;;  %v9278_v8 = vld [vmem:[%s13771_s3 + $0x518] ss:$24 sps:$4 sm:$0xff]   ;;  %v9292_v18 = vld [vmem:[%s13771_s3 + $0x4bc] ss:$24 sps:$4 sm:$0xff]  }
  0x8b   : > { %2785 = vmatprep.subr.bf16.mxu1 %v9198_v19  ;;  %v9269_v19 = vld [vmem:[%s13771_s3 + $0x878] ss:$24 sps:$4 sm:$0xff]  }
  0x8c   : > { %2747 = vmatmul.mubr.bf16.vlgmr.msra.gmra.mxu0 %v11059_v15 }
  0x8d   : > { %2801 = vmatpush1.bf16.msra.mxu0 %v9206_v37  ;;  %2832 = vmatprep.mubr.bf16.mxu0 %v10820_v44  ;;  %v9271_v37 = vld [vmem:[%s13771_s3 + $0x87c] ss:$24 sps:$4 sm:$0xff]  }
  0x8e   : > { %2802 = vmatprep.subr.bf16.mxu0 %v9214_v16  ;;  %2786 = vmatpush2.bf16.msra.mxu1 %v9196_v12  ;;  %v9284_v16 = vld [vmem:[%s13771_s3 + $0x4e8] ss:$24 sps:$4 sm:$0xff]   ;;  %v9298_v12 = vld [vmem:[%s13771_s3 + $0x48c] ss:$24 sps:$4 sm:$0xff]  }
  0x8f   : > { %2787 = vmatprep.subr.bf16.mxu1 %v9204_v22  ;;  %v9275_v22 = vld [vmem:[%s13771_s3 + $0x848] ss:$24 sps:$4 sm:$0xff]  }
  0x91   : > { %2803 = vmatpush1.bf16.msra.mxu0 %v9212_v24  ;;  %v9277_v24 = vld [vmem:[%s13771_s3 + $0x84c] ss:$24 sps:$4 sm:$0xff]  }
  0x92   : > { %2804 = vmatprep.subr.bf16.mxu0 %v9220_v9  ;;  %2788 = vmatpush2.bf16.msra.mxu1 %v9202_v27  ;;  %v9290_v9 = vld [vmem:[%s13771_s3 + $0x4b8] ss:$24 sps:$4 sm:$0xff]   ;;  %v9304_v27 = vld [vmem:[%s13771_s3 + $0x164] ss:$24 sps:$4 sm:$0xff]  }
  0x93   : > { %2843 = vmatprep.subr.bf16.mxu1 %v9211_v28  ;;  %v9281_v28 = vld [vmem:[%s13771_s3 + $0x818] ss:$24 sps:$4 sm:$0xff]  }
  0x95   : > { %2805 = vmatpush1.bf16.msra.mxu0 %v9218_v25  ;;  %2790 = vmatmul.mubr.bf16.vlgmr.msra.gmra.mxu1 %v10789_v17  ;;  %v9283_v25 = vld [vmem:[%s13771_s3 + $0x81c] ss:$24 sps:$4 sm:$0xff]  }
  0x96   : > { %2806 = vmatprep.subr.bf16.mxu0 %v9226_v10  ;;  %2844 = vmatpush1.bf16.msra.mxu1 %v9209_v31  ;;  %v9296_v10 = vld [vmem:[%s13771_s3 + $0x488] ss:$24 sps:$4 sm:$0xff]   ;;  %v9310_v31 = vld [vmem:[%s13771_s3 + $0x134] ss:$24 sps:$4 sm:$0xff]  }
  0x97   : > { %2875 = vmatprep.mubr.bf16.mxu1 %v10963_v20  ;;  %2845 = vmatprep.subr.bf16.mxu1 %v9217_v5  ;;  %v9287_v5 = vld [vmem:[%s13771_s3 + $0x7e8] ss:$24 sps:$4 sm:$0xff]  }
  0x99   : > { %2807 = vmatpush1.bf16.msra.mxu0 %v9224_v29  ;;  %v9289_v29 = vld [vmem:[%s13771_s3 + $0x7ec] ss:$24 sps:$4 sm:$0xff]  }
  0x9a   : > { %2808 = vmatprep.subr.bf16.mxu0 %v9232_v30  ;;  %2846 = vmatpush1.bf16.msra.mxu1 %v9215_v32  ;;  %v9302_v30 = vld [vmem:[%s13771_s3 + $0x160] ss:$24 sps:$4 sm:$0xff]   ;;  %v9316_v32 = vld [vmem:[%s13771_s3 + $0x104] ss:$24 sps:$4 sm:$0xff]  }
  0x9b   : > { %2847 = vmatprep.subr.bf16.mxu1 %v9223_v33  ;;  %v9293_v33 = vld [vmem:[%s13771_s3 + $0x7b8] ss:$24 sps:$4 sm:$0xff]  }
  0x9d   : > { %2809 = vmatpush1.bf16.msra.mxu0 %v9230_v21  ;;  %v9295_v21 = vld [vmem:[%s13771_s3 + $0x7bc] ss:$24 sps:$4 sm:$0xff]  }
  0x9e   : > { %2810 = vmatprep.subr.bf16.mxu0 %v9238_v13  ;;  %2848 = vmatpush1.bf16.msra.mxu1 %v9221_v38  ;;  %v9308_v13 = vld [vmem:[%s13771_s3 + $0x130] ss:$24 sps:$4 sm:$0xff]  }
  0x9f   : > { %2849 = vmatprep.subr.bf16.mxu1 %v9229_v39  ;;  %v9299_v38 = vld [vmem:[%s13771_s3 + $0x788] ss:$24 sps:$4 sm:$0xff]   ;;  %v9307_v39 = vld [vmem:[%s13771_s3 + $0x464] ss:$24 sps:$4 sm:$0xff]  }
  0xa1   : > { %2811 = vmatpush1.bf16.msra.mxu0 %v9236_v26  ;;  %v9301_v26 = vld [vmem:[%s13771_s3 + $0x78c] ss:$24 sps:$4 sm:$0xff]  }
  0xa2   : > { %2812 = vmatprep.subr.bf16.mxu0 %v9244_v35  ;;  %2850 = vmatpush1.bf16.msra.mxu1 %v9227_v42  ;;  %v9322_v35 = vld [vmem:[%s13771_s3 + $0xd4] ss:$24 sps:$4 sm:$0xff]   ;;  %v9305_v42 = vld [vmem:[%s13771_s3 + $0x460] ss:$24 sps:$4 sm:$0xff]  }
  0xa3   : > { %2851 = vmatprep.subr.bf16.mxu1 %v9235_v43  ;;  %v9313_v43 = vld [vmem:[%s13771_s3 + $0x434] ss:$24 sps:$4 sm:$0xff]  }
  0xa5   : > { %2813 = vmatpush1.bf16.msra.mxu0 %v9242_v40  ;;  %v9320_v40 = vld [vmem:[%s13771_s3 + $0xd0] ss:$24 sps:$4 sm:$0xff]  }
  0xa6   : > { %2814 = vmatprep.subr.bf16.mxu0 %v9250_v41  ;;  %2852 = vmatpush1.bf16.msra.mxu1 %v9233_v47  ;;  %v9328_v41 = vld [vmem:[%s13771_s3 + $0xa4] ss:$24 sps:$4 sm:$0xff]   ;;  %v9311_v47 = vld [vmem:[%s13771_s3 + $0x430] ss:$24 sps:$4 sm:$0xff]  }
  0xa7   : > { %2853 = vmatprep.subr.bf16.mxu1 %v9241_v48  ;;  %v9319_v48 = vld [vmem:[%s13771_s3 + $0x404] ss:$24 sps:$4 sm:$0xff]  }
  0xa9   : > { %2815 = vmatpush1.bf16.msra.mxu0 %v9248_v45  ;;  %v9326_v45 = vld [vmem:[%s13771_s3 + $0xa0] ss:$24 sps:$4 sm:$0xff]  }
  0xaa   : > { %2816 = vmatprep.subr.bf16.mxu0 %v9256_v46  ;;  %2854 = vmatpush1.bf16.msra.mxu1 %v9239_v50  ;;  %v9334_v46 = vld [vmem:[%s13771_s3 + $0x74] ss:$24 sps:$4 sm:$0xff]  }
  0xab   : > { %2855 = vmatprep.subr.bf16.mxu1 %v9247_v4  ;;  %v9325_v50 = vld [vmem:[%s13771_s3 + $0x3d4] ss:$24 sps:$4 sm:$0xff]   ;;  %v9338_v4 = vld [vmem:[%s13771_s3 + $0x40] ss:$24 sps:$4 sm:$0xff]  }
  0xad   : > { %2817 = vmatpush2.bf16.msra.mxu0 %v9254_v49  ;;  %v9332_v49 = vld [vmem:[%s13771_s3 + $0x70] ss:$24 sps:$4 sm:$0xff]  }
  0xae   : > { %2818 = vmatprep.subr.bf16.mxu0 %v9262_v23  ;;  %2856 = vmatpush1.bf16.msra.mxu1 %v9245_v53  ;;  %v9340_v23 = vld [vmem:[%s13771_s3 + $0x44] ss:$24 sps:$4 sm:$0xff]  }
  0xaf   : > { %2857 = vmatprep.subr.bf16.mxu1 %v9253_v54  ;;  %v9331_v53 = vld [vmem:[%s13771_s3 + $0x3a4] ss:$24 sps:$4 sm:$0xff]   ;;  %v9344_v54 = vld [vmem:[%s13771_s3 + $0x10] ss:$24 sps:$4 sm:$0xff]  }
  0xb1   : > { %2819 = vmatpush2.bf16.msra.mxu0 %v9260_v51  ;;  %v9346_v51 = vld [vmem:[%s13771_s3 + $0x14] ss:$24 sps:$4 sm:$0xff]  }
  0xb2   : > { %2820 = vmatprep.subr.bf16.mxu0 %v9268_v52  ;;  %2858 = vmatpush1.bf16.msra.mxu1 %v9251_v62  ;;  %v9323_v52 = vld [vmem:[%s13771_s3 + $0x3d0] ss:$24 sps:$4 sm:$0xff]   ;;  %v9337_v62 = vld [vmem:[%s13771_s3 + $0x374] ss:$24 sps:$4 sm:$0xff]  }
  0xb3   : > { %2859 = vmatprep.subr.bf16.mxu1 %v9259_v63  ;;  %v9350_v63 = vld [vmem:[%s13771_s3 + $0x2e0] ss:$24 sps:$4 sm:$0xff]  }
  0xb5   : > { %2821 = vmatpush2.bf16.msra.mxu0 %v9266_v59  ;;  %v9352_v59 = vld [vmem:[%s13771_s3 + $0x2e4] ss:$24 sps:$4 sm:$0xff]  }
  0xb6   : > { %2822 = vmatprep.subr.bf16.mxu0 %v9274_v61  ;;  %2860 = vmatpush2.bf16.msra.mxu1 %v9257_v3  ;;  %v9329_v61 = vld [vmem:[%s13771_s3 + $0x3a0] ss:$24 sps:$4 sm:$0xff]   ;;  %v9343_v3 = vld [vmem:[%s13771_s3 + $0x344] ss:$24 sps:$4 sm:$0xff]  }
  0xb7   : > { %2861 = vmatprep.subr.bf16.mxu1 %v9265_v7  ;;  %v9356_v7 = vld [vmem:[%s13771_s3 + $0x2b0] ss:$24 sps:$4 sm:$0xff]  }
  0xb9   : > { %2823 = vmatpush2.bf16.msra.mxu0 %v9272_v2  ;;  %v9358_v2 = vld [vmem:[%s13771_s3 + $0x2b4] ss:$24 sps:$4 sm:$0xff]  }
  0xba   : > { %2824 = vmatprep.subr.bf16.mxu0 %v9280_v6  ;;  %2862 = vmatpush2.bf16.msra.mxu1 %v9263_v14  ;;  %v9335_v6 = vld [vmem:[%s13771_s3 + $0x370] ss:$24 sps:$4 sm:$0xff]   ;;  %v9349_v14 = vld [vmem:[%s13771_s3 + $0x314] ss:$24 sps:$4 sm:$0xff]  }
  0xbb   : > { %2863 = vmatprep.subr.bf16.mxu1 %v9271_v37  ;;  %v9347_v37 = vld [vmem:[%s13771_s3 + $0x310] ss:$24 sps:$4 sm:$0xff]  }
  0xbd   : > { %2825 = vmatpush2.bf16.msra.mxu0 %v9278_v8  ;;  %v9364_v8 = vld [vmem:[%s13771_s3 + $0x284] ss:$24 sps:$4 sm:$0xff]  }
  0xbe   : > { %2826 = vmatprep.subr.bf16.mxu0 %v9286_v11  ;;  %2864 = vmatpush2.bf16.msra.mxu1 %v9269_v19  ;;  %v9341_v11 = vld [vmem:[%s13771_s3 + $0x340] ss:$24 sps:$4 sm:$0xff]   ;;  %v9370_v19 = vld [vmem:[%s13771_s3 + $0x254] ss:$24 sps:$4 sm:$0xff]  }
  0xbf   : > { %2865 = vmatprep.subr.bf16.mxu1 %v9277_v24  ;;  %v9368_v24 = vld [vmem:[%s13771_s3 + $0x250] ss:$24 sps:$4 sm:$0xff]  }
  0xc1   : > { %2827 = vmatpush2.bf16.msra.mxu0 %v9284_v16  ;;  %v9362_v16 = vld [vmem:[%s13771_s3 + $0x280] ss:$24 sps:$4 sm:$0xff]  }
  0xc2   : > { %2828 = vmatprep.subr.bf16.mxu0 %v9292_v18  ;;  %2866 = vmatpush2.bf16.msra.mxu1 %v9275_v22  ;;  %v9355_v18 = vld [vmem:[%s13771_s3 + $0x5e4] ss:$24 sps:$4 sm:$0xff]   ;;  %v9361_v22 = vld [vmem:[%s13771_s3 + $0x5b4] ss:$24 sps:$4 sm:$0xff]  }
  0xc3   : > { %2867 = vmatprep.subr.bf16.mxu1 %v9283_v25  ;;  %v9374_v25 = vld [vmem:[%s13771_s3 + $0x220] ss:$24 sps:$4 sm:$0xff]  }
  0xc5   : > { %2829 = vmatpush2.bf16.msra.mxu0 %v9290_v9  ;;  %v9376_v9 = vld [vmem:[%s13771_s3 + $0x224] ss:$24 sps:$4 sm:$0xff]  }
  0xc6   : > { %2830 = vmatprep.subr.bf16.mxu0 %v9298_v12  ;;  %2868 = vmatpush2.bf16.msra.mxu1 %v9281_v28  ;;  %v9353_v12 = vld [vmem:[%s13771_s3 + $0x5e0] ss:$24 sps:$4 sm:$0xff]   ;;  %v9367_v28 = vld [vmem:[%s13771_s3 + $0x584] ss:$24 sps:$4 sm:$0xff]  }
  0xc7   : > { %2869 = vmatprep.subr.bf16.mxu1 %v9289_v29  ;;  %v9380_v29 = vld [vmem:[%s13771_s3 + $0x1f0] ss:$24 sps:$4 sm:$0xff]  }
  0xc9   : > { %2831 = vmatpush2.bf16.msra.mxu0 %v9296_v10  ;;  %v9382_v10 = vld [vmem:[%s13771_s3 + $0x1f4] ss:$24 sps:$4 sm:$0xff]  }
  0xca   : > { %2886 = vmatprep.subr.bf16.mxu0 %v9304_v27  ;;  %2870 = vmatpush2.bf16.msra.mxu1 %v9287_v5  ;;  %v9359_v27 = vld [vmem:[%s13771_s3 + $0x5b0] ss:$24 sps:$4 sm:$0xff]   ;;  %v9373_v5 = vld [vmem:[%s13771_s3 + $0x554] ss:$24 sps:$4 sm:$0xff]  }
  0xcb   : > { %2871 = vmatprep.subr.bf16.mxu1 %v9295_v21  ;;  %v9386_v21 = vld [vmem:[%s13771_s3 + $0x1c0] ss:$24 sps:$4 sm:$0xff]  }
  0xcc   : > { %2833 = vmatmul.mubr.bf16.vlgmr.msra.gmra.mxu0 %v10839_v55 }
  0xcd   : > { %2887 = vmatpush1.bf16.msra.mxu0 %v9302_v30  ;;  %2918 = vmatprep.mubr.bf16.mxu0 %v10749_v34  ;;  %v9314_v34 = vld [vmem:[%s13771_s3 + $0x100] ss:$24 sps:$4 sm:$0xff]   ;;  %v9388_v30 = vld [vmem:[%s13771_s3 + $0x1c4] ss:$24 sps:$4 sm:$0xff]  }
  0xce   : > { %2888 = vmatprep.subr.bf16.mxu0 %v9310_v31  ;;  %2872 = vmatpush2.bf16.msra.mxu1 %v9293_v33  ;;  %v9365_v31 = vld [vmem:[%s13771_s3 + $0x580] ss:$24 sps:$4 sm:$0xff]   ;;  %v9379_v33 = vld [vmem:[%s13771_s3 + $0x524] ss:$24 sps:$4 sm:$0xff]  }
  0xcf   : > { %2873 = vmatprep.subr.bf16.mxu1 %v9301_v26  ;;  %v9392_v26 = vld [vmem:[%s13771_s3 + $0x190] ss:$24 sps:$4 sm:$0xff]  }
  0xd1   : > { %2889 = vmatpush1.bf16.msra.mxu0 %v9308_v13  ;;  %v9394_v13 = vld [vmem:[%s13771_s3 + $0x194] ss:$24 sps:$4 sm:$0xff]  }
  0xd2   : > { %2890 = vmatprep.subr.bf16.mxu0 %v9316_v32  ;;  %2874 = vmatpush2.bf16.msra.mxu1 %v9299_v38  ;;  %v9371_v32 = vld [vmem:[%s13771_s3 + $0x550] ss:$24 sps:$4 sm:$0xff]   ;;  %v9385_v38 = vld [vmem:[%s13771_s3 + $0x4f4] ss:$24 sps:$4 sm:$0xff]  }
  0xd3   : > { %2929 = vmatprep.subr.bf16.mxu1 %v9307_v39  ;;  %v9398_v39 = vld [vmem:[%s13771_s3 + $0x760] ss:$24 sps:$4 sm:$0xff]  }
  0xd5   : > { %2891 = vmatpush1.bf16.msra.mxu0 %v9314_v34  ;;  %2876 = vmatmul.mubr.bf16.vlgmr.msra.gmra.mxu1 %v11059_v15  ;;  %v9400_v34 = vld [vmem:[%s13771_s3 + $0x764] ss:$24 sps:$4 sm:$0xff]  }
  0xd6   : > { %2892 = vmatprep.subr.bf16.mxu0 %v9322_v35  ;;  %2930 = vmatpush1.bf16.msra.mxu1 %v9305_v42  ;;  %v9377_v35 = vld [vmem:[%s13771_s3 + $0x520] ss:$24 sps:$4 sm:$0xff]   ;;  %v9391_v42 = vld [vmem:[%s13771_s3 + $0x4c4] ss:$24 sps:$4 sm:$0xff]  }
  0xd7   : > { %2961 = vmatprep.mubr.bf16.mxu1 %v10820_v44  ;;  %2931 = vmatprep.subr.bf16.mxu1 %v9313_v43  ;;  %v9317_v44 = vld [vmem:[%s13771_s3 + $0x400] ss:$24 sps:$4 sm:$0xff]   ;;  %v9401_v43 = vld [vmem:[%s13771_s3 + $0x730] ss:$24 sps:$4 sm:$0xff]  }
  0xd9   : > { %2893 = vmatpush1.bf16.msra.mxu0 %v9320_v40  ;;  %v9403_v40 = vld [vmem:[%s13771_s3 + $0x734] ss:$24 sps:$4 sm:$0xff]  }
  0xda   : > { %2894 = vmatprep.subr.bf16.mxu0 %v9328_v41  ;;  %2932 = vmatpush1.bf16.msra.mxu1 %v9311_v47  ;;  %v9383_v41 = vld [vmem:[%s13771_s3 + $0x4f0] ss:$24 sps:$4 sm:$0xff]   ;;  %v9397_v47 = vld [vmem:[%s13771_s3 + $0x494] ss:$24 sps:$4 sm:$0xff]  }
  0xdb   : > { %2933 = vmatprep.subr.bf16.mxu1 %v9319_v48  ;;  %v9409_v48 = vld [vmem:[%s13771_s3 + $0x6d4] ss:$24 sps:$4 sm:$0xff]  }
  0xdd   : > { %2895 = vmatpush1.bf16.msra.mxu0 %v9326_v45  ;;  %v9406_v45 = vld [vmem:[%s13771_s3 + $0x704] ss:$24 sps:$4 sm:$0xff]  }
  0xde   : > { %2896 = vmatprep.subr.bf16.mxu0 %v9334_v46  ;;  %2934 = vmatpush1.bf16.msra.mxu1 %v9317_v44  ;;  %v9389_v46 = vld [vmem:[%s13771_s3 + $0x4c0] ss:$24 sps:$4 sm:$0xff]   ;;  %v9412_v44 = vld [vmem:[%s13771_s3 + $0x6a4] ss:$24 sps:$4 sm:$0xff]  }
  0xdf   : > { %2935 = vmatprep.subr.bf16.mxu1 %v9325_v50  ;;  %v9419_v50 = vld [vmem:[%s13775_s7 + $0x150] ss:$24 sps:$4 sm:$0xff]  }
  0xe1   : > { %2897 = vmatpush1.bf16.msra.mxu0 %v9332_v49  ;;  %v9395_v49 = vld [vmem:[%s13771_s3 + $0x490] ss:$24 sps:$4 sm:$0xff]  }
  0xe2   : > { %2898 = vmatprep.subr.bf16.mxu0 %v9340_v23  ;;  %2936 = vmatpush1.bf16.msra.mxu1 %v9323_v52  ;;  %v9407_v23 = vld [vmem:[%s13771_s3 + $0x6d0] ss:$24 sps:$4 sm:$0xff]   ;;  %v9415_v52 = vld [vmem:[%s13771_s3 + $0x674] ss:$24 sps:$4 sm:$0xff]  }
  0xe3   : > { %2937 = vmatprep.subr.bf16.mxu1 %v9331_v53  ;;  %v9425_v53 = vld [vmem:[%s13775_s7 + $0x120] ss:$24 sps:$4 sm:$0xff]  }
  0xe5   : > { %2899 = vmatpush1.bf16.msra.mxu0 %v9338_v4  ;;  %v9427_v4 = vld [vmem:[%s13775_s7 + $0x124] ss:$24 sps:$4 sm:$0xff]  }
  0xe6   : > { %2900 = vmatprep.subr.bf16.mxu0 %v9346_v51  ;;  %2938 = vmatpush1.bf16.msra.mxu1 %v9329_v61  ;;  %v9410_v51 = vld [vmem:[%s13771_s3 + $0x6a0] ss:$24 sps:$4 sm:$0xff]   ;;  %v9418_v61 = vld [vmem:[%s13771_s3 + $0x644] ss:$24 sps:$4 sm:$0xff]  }
  0xe7   : > { %2939 = vmatprep.subr.bf16.mxu1 %v9337_v62  ;;  %v9416_v62 = vld [vmem:[%s13771_s3 + $0x640] ss:$24 sps:$4 sm:$0xff]  }
  0xe9   : > { %2901 = vmatpush1.bf16.msra.mxu0 %v9344_v54  ;;  %v9433_v54 = vld [vmem:[%s13775_s7 + $0xf4] ss:$24 sps:$4 sm:$0xff]  }
  0xea   : > { %2902 = vmatprep.subr.bf16.mxu0 %v9352_v59  ;;  %2940 = vmatpush1.bf16.msra.mxu1 %v9335_v6  ;;  %v9413_v59 = vld [vmem:[%s13771_s3 + $0x670] ss:$24 sps:$4 sm:$0xff]   ;;  %v9437_v6 = vld [vmem:[%s13775_s7 + $0xc0] ss:$24 sps:$4 sm:$0xff]  }
  0xeb   : > { %2941 = vmatprep.subr.bf16.mxu1 %v9343_v3  ;;  %v9422_v3 = vld [vmem:[%s13771_s3 + $0x610] ss:$24 sps:$4 sm:$0xff]  }
  0xed   : > { %2903 = vmatpush2.bf16.msra.mxu0 %v9350_v63  ;;  %v9439_v63 = vld [vmem:[%s13775_s7 + $0xc4] ss:$24 sps:$4 sm:$0xff]  }
  0xee   : > { %2904 = vmatprep.subr.bf16.mxu0 %v9358_v2  ;;  %2942 = vmatpush1.bf16.msra.mxu1 %v9341_v11  ;;  %v9424_v2 = vld [vmem:[%s13771_s3 + $0x614] ss:$24 sps:$4 sm:$0xff]   ;;  %v9443_v11 = vld [vmem:[%s13775_s7 + $0x90] ss:$24 sps:$4 sm:$0xff]  }
  0xef   : > { %2943 = vmatprep.subr.bf16.mxu1 %v9349_v14  ;;  %v9428_v14 = vld [vmem:[%s13771_s3 + $0x8e0] ss:$24 sps:$4 sm:$0xff]  }
  0xf1   : > { %2905 = vmatpush2.bf16.msra.mxu0 %v9356_v7  ;;  %v9430_v7 = vld [vmem:[%s13771_s3 + $0x8e4] ss:$24 sps:$4 sm:$0xff]  }
  0xf2   : > { %2906 = vmatprep.subr.bf16.mxu0 %v9364_v8  ;;  %2944 = vmatpush1.bf16.msra.mxu1 %v9347_v37  ;;  %v9445_v8 = vld [vmem:[%s13775_s7 + $0x94] ss:$24 sps:$4 sm:$0xff]   ;;  %v9451_v37 = vld [vmem:[%s13775_s7 + $0x64] ss:$24 sps:$4 sm:$0xff]  }
  0xf3   : > { %2945 = vmatprep.subr.bf16.mxu1 %v9355_v18  ;;  %v9434_v18 = vld [vmem:[%s13771_s3 + $0x8b0] ss:$24 sps:$4 sm:$0xff]  }
  0xf5   : > { %2907 = vmatpush2.bf16.msra.mxu0 %v9362_v16  ;;  %v9436_v16 = vld [vmem:[%s13771_s3 + $0x8b4] ss:$24 sps:$4 sm:$0xff]  }
  0xf6   : > { %2908 = vmatprep.subr.bf16.mxu0 %v9370_v19  ;;  %2946 = vmatpush2.bf16.msra.mxu1 %v9353_v12  ;;  %v9449_v19 = vld [vmem:[%s13775_s7 + $0x60] ss:$24 sps:$4 sm:$0xff]   ;;  %v9455_v12 = vld [vmem:[%s13775_s7 + $0x30] ss:$24 sps:$4 sm:$0xff]  }
  0xf7   : > { %2947 = vmatprep.subr.bf16.mxu1 %v9361_v22  ;;  %v9463_v22 = vld [vmem:[%s13775_s7 + $0x4] ss:$24 sps:$4 sm:$0xff]  }
  0xf9   : > { %2909 = vmatpush2.bf16.msra.mxu0 %v9368_v24  ;;  %v9442_v24 = vld [vmem:[%s13771_s3 + $0x884] ss:$24 sps:$4 sm:$0xff]  }
  0xfa   : > { %2910 = vmatprep.subr.bf16.mxu0 %v9376_v9  ;;  %2948 = vmatpush2.bf16.msra.mxu1 %v9359_v27  ;;  %v9457_v9 = vld [vmem:[%s13775_s7 + $0x34] ss:$24 sps:$4 sm:$0xff]   ;;  %v9461_v27 = vld [vmem:[%s13775_s7] ss:$24 sps:$4 sm:$0xff]  }
  0xfb   : > { %2949 = vmatprep.subr.bf16.mxu1 %v9367_v28  ;;  %v9446_v28 = vld [vmem:[%s13771_s3 + $0x850] ss:$24 sps:$4 sm:$0xff]  }
  0xfd   : > { %2911 = vmatpush2.bf16.msra.mxu0 %v9374_v25  ;;  %v9440_v25 = vld [vmem:[%s13771_s3 + $0x880] ss:$24 sps:$4 sm:$0xff]  }
  0xfe   : > { %2912 = vmatprep.subr.bf16.mxu0 %v9382_v10  ;;  %2950 = vmatpush2.bf16.msra.mxu1 %v9365_v31  ;;  %v9448_v10 = vld [vmem:[%s13771_s3 + $0x854] ss:$24 sps:$4 sm:$0xff]   ;;  %v9467_v31 = vld [vmem:[%s13775_s7 + $0x2d0] ss:$24 sps:$4 sm:$0xff]  }
  0xff   : > { %2951 = vmatprep.subr.bf16.mxu1 %v9373_v5  ;;  %v9475_v5 = vld [vmem:[%s13775_s7 + $0x2a4] ss:$24 sps:$4 sm:$0xff]  }
 0x101   : > { %2913 = vmatpush2.bf16.msra.mxu0 %v9380_v29  ;;  %v9454_v29 = vld [vmem:[%s13771_s3 + $0x824] ss:$24 sps:$4 sm:$0xff]  }
 0x102   : > { %2914 = vmatprep.subr.bf16.mxu0 %v9388_v30  ;;  %2952 = vmatpush2.bf16.msra.mxu1 %v9371_v32  ;;  %v9469_v30 = vld [vmem:[%s13775_s7 + $0x2d4] ss:$24 sps:$4 sm:$0xff]   ;;  %v9473_v32 = vld [vmem:[%s13775_s7 + $0x2a0] ss:$24 sps:$4 sm:$0xff]  }
 0x103   : > { %2953 = vmatprep.subr.bf16.mxu1 %v9379_v33  ;;  %v9478_v33 = vld [vmem:[%s13775_s7 + $0x274] ss:$24 sps:$4 sm:$0xff]  }
 0x105   : > { %2915 = vmatpush2.bf16.msra.mxu0 %v9386_v21  ;;  %v9452_v21 = vld [vmem:[%s13771_s3 + $0x820] ss:$24 sps:$4 sm:$0xff]  }
 0x106   : > { %2916 = vmatprep.subr.bf16.mxu0 %v9394_v13  ;;  %2954 = vmatpush2.bf16.msra.mxu1 %v9377_v35  ;;  %v9460_v13 = vld [vmem:[%s13771_s3 + $0x7f4] ss:$24 sps:$4 sm:$0xff]   ;;  %v11621_v35 = vld [vmem:[%s13772_s4] sm:$0x3f] }
 0x107   : > { %2955 = vmatprep.subr.bf16.mxu1 %v9385_v38 }
 0x109   : > { %2917 = vmatpush2.bf16.msra.mxu0 %v9392_v26  ;;  %v9458_v26 = vld [vmem:[%s13771_s3 + $0x7f0] ss:$24 sps:$4 sm:$0xff]  }
 0x10a   : > { %2972 = vmatprep.subr.bf16.mxu0 %v9400_v34  ;;  %2956 = vmatpush2.bf16.msra.mxu1 %v9383_v41  ;;  %v9466_v34 = vld [vmem:[%s13771_s3 + $0x7c4] ss:$24 sps:$4 sm:$0xff]   ;;  %v9464_v41 = vld [vmem:[%s13771_s3 + $0x7c0] ss:$24 sps:$4 sm:$0xff]  }
 0x10b   : > { %2957 = vmatprep.subr.bf16.mxu1 %v9391_v42  ;;  %v9472_v42 = vld [vmem:[%s13771_s3 + $0x794] ss:$24 sps:$4 sm:$0xff]  }
 0x10c   : > { %2919 = vmatmul.mubr.bf16.vlgmr.msra.gmra.mxu0 %v10789_v17  ;;  %v9404_v17 = vld [vmem:[%s13771_s3 + $0x700] ss:$24 sps:$4 sm:$0xff]   ;;  %v2662_v38 = vpop.f32.mrf.mxu0 }
 0x10d   : > { %2973 = vmatpush1.bf16.msra.mxu0 %v9398_v39  ;;  %3004 = vmatprep.mubr.bf16.mxu0 %v10963_v20  ;;  %v9421_v20 = vld [vmem:[%s13775_s7 + $0x154] ss:$24 sps:$4 sm:$0xff]   ;;  %v9476_v39 = vld [vmem:[%s13775_s7 + $0x270] ss:$24 sps:$4 sm:$0xff]  }
 0x10e   : > { %2974 = vmatprep.subr.bf16.mxu0 %v9403_v40  ;;  %2958 = vmatpush2.bf16.msra.mxu1 %v9389_v46  ;;  %v9481_v40 = vld [vmem:[%s13775_s7 + $0x244] ss:$24 sps:$4 sm:$0xff]  }
 0x10f   : > { %2959 = vmatprep.subr.bf16.mxu1 %v9397_v47  ;;  %v9479_v47 = vld [vmem:[%s13775_s7 + $0x240] ss:$24 sps:$4 sm:$0xff]  }
 0x111   : > { %2975 = vmatpush1.bf16.msra.mxu0 %v9401_v43  ;;  %v11638_v43 = vld [vmem:[%s13773_s5] sm:$0xff] }
 0x112   : > { %2976 = vmatprep.subr.bf16.mxu0 %v9406_v45  ;;  %2960 = vmatpush2.bf16.msra.mxu1 %v9395_v49  ;;  %v2664_v45 = vpop.f32.mrf.mxu0  ;;  %v9470_v49 = vld [vmem:[%s13771_s3 + $0x790] ss:$24 sps:$4 sm:$0xff]  }
 0x113   : > { %5141 = vmatprep.subr.bf16.mxu1 %v9421_v20  ;;  %v1165_v20 = vrot.slane %v11621_v35, %v10596_v1 }
 0x115   : > { %2977 = vmatpush1.bf16.msra.mxu0 %v9404_v17  ;;  %2962 = vmatmul.mubr.bf16.vlgmr.msra.gmra.mxu1 %v10839_v55  ;;  %v9431_v55 = vld [vmem:[%s13775_s7 + $0xf0] ss:$24 sps:$4 sm:$0xff]   ;;  %v2705_v46 = vpop.f32.mrf.mxu1  ;;  %v9484_v17 = vld [vmem:[%s13775_s7 + $0x214] ss:$24 sps:$4 sm:$0xff]  }
 0x116   : > { %2978 = vmatprep.subr.bf16.mxu0 %v9409_v48  ;;  %5142 = vmatpush1.bf16.msra.mxu1 %v9419_v50  ;;  %v1161_v48 = vrot.slane %v11621_v35, %v10593_v0 }
 0x117   : > { %5143 = vmatprep.subr.bf16.mxu1 %v9427_v4  ;;  %v2707_v50 = vpop.f32.mrf.mxu1  ;;  %v3116_v4 = vrot.slane %v11638_v43, %v10574_v57 }
 0x119   : > { %2979 = vmatpush1.bf16.msra.mxu0 %v9407_v23  ;;  %v9482_v23 = vld [vmem:[%s13775_s7 + $0x210] ss:$24 sps:$4 sm:$0xff]  }
 0x11a   : > { %2980 = vmatprep.subr.bf16.mxu0 %v9412_v44  ;;  %5144 = vmatpush1.bf16.msra.mxu1 %v9425_v53  ;;  %v2666_v44 = vpop.f32.mrf.mxu0  ;;  %v2663_v53 = vadd.f32 %v2662_v38, %v1161_v48  ;;  %v9491_v38 = vld [vmem:[%s13775_s7 + $0x180] ss:$24 sps:$4 sm:$0xff]  }
 0x11b   : > { %5145 = vmatprep.subr.bf16.mxu1 %v9433_v54  ;;  %v9494_v54 = vld [vmem:[%s13775_s7 + $0x450] ss:$24 sps:$4 sm:$0xff]  }
 0x11d   : > { %2981 = vmatpush1.bf16.msra.mxu0 %v9410_v51  ;;  %v9487_v51 = vld [vmem:[%s13775_s7 + $0x1e4] ss:$24 sps:$4 sm:$0xff]  }
 0x11e   : > { %2982 = vmatprep.subr.bf16.mxu0 %v9415_v52  ;;  %5146 = vmatpush1.bf16.msra.mxu1 %v9431_v55  ;;  %v9496_v52 = vld [vmem:[%s13775_s7 + $0x454] ss:$24 sps:$4 sm:$0xff]   ;;  %v2668_v55 = vpop.f32.mrf.mxu0 }
 0x11f   : > { %5147 = vmatprep.subr.bf16.mxu1 %v9439_v63  ;;  %v3124_v63 = vcombine.high %v3116_v4, %v3116_v4 }
 0x121   : > { %2983 = vmatpush1.bf16.msra.mxu0 %v9413_v59  ;;  %v2665_v59 = vadd.f32 %v2664_v45, %v1165_v20 }
 0x122   : > { %2984 = vmatprep.subr.bf16.mxu0 %v9418_v61  ;;  %5148 = vmatpush1.bf16.msra.mxu1 %v9437_v6  ;;  %v9485_v61 = vld [vmem:[%s13775_s7 + $0x1e0] ss:$24 sps:$4 sm:$0xff]   ;;  %v9499_v6 = vld [vmem:[%s13775_s7 + $0x424] ss:$24 sps:$4 sm:$0xff]  }
 0x123   : > { %5149 = vmatprep.subr.bf16.mxu1 %v9445_v8  ;;  %v3188_v8 = vshrl.u32 %v3116_v4, 16 }
 0x125   : > { %2985 = vmatpush1.bf16.msra.mxu0 %v9416_v62  ;;  %v2709_v62 = vpop.f32.mrf.mxu1 }
 0x126   : > { %2986 = vmatprep.subr.bf16.mxu0 %v9424_v2  ;;  %5150 = vmatpush1.bf16.msra.mxu1 %v9443_v11  ;;  %v9490_v2 = vld [vmem:[%s13775_s7 + $0x1b4] ss:$24 sps:$4 sm:$0xff]   ;;  %v11679_v11 = vld.sshfl [vmem:[%s13774_s6] sm:$0x77 pattern:$0x75316420] }
 0x127   : > { %5151 = vmatprep.subr.bf16.mxu1 %v9451_v37 }
 0x129   : > { %2987 = vmatpush1.bf16.msra.mxu0 %v9422_v3  ;;  %v2706_v3 = vadd.f32 %v2705_v46, %v2663_v53  ;;  %v9503_v46 = vld [vmem:[%s13775_s7 + $0x3c0] ss:$24 sps:$4 sm:$0xff]   ;;  %v11725_v53 = vrot.slane %v11679_v11, %v10577_v58 }
 0x12a   : > { %2988 = vmatprep.subr.bf16.mxu0 %v9430_v7  ;;  %5152 = vmatpush1.bf16.msra.mxu1 %v9449_v19  ;;  %v2667_v7 = vadd.f32 %v2666_v44, %v1161_v48 }
 0x12b   : > { %5153 = vmatprep.subr.bf16.mxu1 %v9457_v9  ;;  %v2711_v9 = vpop.f32.mrf.mxu1 }
 0x12d   : > { %2989 = vmatpush2.bf16.msra.mxu0 %v9428_v14  ;;  %v9497_v14 = vld [vmem:[%s13775_s7 + $0x420] ss:$24 sps:$4 sm:$0xff]  }
 0x12e   : > { %2990 = vmatprep.subr.bf16.mxu0 %v9436_v16  ;;  %5154 = vmatpush1.bf16.msra.mxu1 %v9455_v12  ;;  %v2708_v16 = vadd.f32 %v2707_v50, %v2665_v59 }
 0x12f   : > { %5155 = vmatprep.subr.bf16.mxu1 %v9463_v22  ;;  %v3195_v22 = vshrl.u32 %v3124_v63, 16 }
 0x131   : > { %2991 = vmatpush2.bf16.msra.mxu0 %v9434_v18  ;;  %v2669_v18 = vadd.f32 %v2668_v55, %v1165_v20 }
 0x132   : > { %2992 = vmatprep.subr.bf16.mxu0 %v9442_v24  ;;  %5156 = vmatpush1.bf16.msra.mxu1 %v9461_v27  ;;  %v9488_v24 = vld [vmem:[%s13775_s7 + $0x1b0] ss:$24 sps:$4 sm:$0xff]  }
 0x133   : > { %5157 = vmatprep.subr.bf16.mxu1 %v9469_v30  ;;  %v9500_v30 = vld [vmem:[%s13775_s7 + $0x3f0] ss:$24 sps:$4 sm:$0xff]  }
 0x135   : > { %2993 = vmatpush2.bf16.msra.mxu0 %v9440_v25  ;;  %v9493_v25 = vld [vmem:[%s13775_s7 + $0x184] ss:$24 sps:$4 sm:$0xff]  }
 0x136   : > { %2994 = vmatprep.subr.bf16.mxu0 %v9448_v10  ;;  %5158 = vmatpush2.bf16.msra.mxu1 %v9467_v31  ;;  %v2710_v10 = vadd.f32 %v2709_v62, %v2667_v7 }
 0x137   : > { %5159 = vmatprep.subr.bf16.mxu1 %v9475_v5 }
 0x139   : > { %2995 = vmatpush2.bf16.msra.mxu0 %v9446_v28  ;;  %v11694_v28 = vpack.i.b16 %v3116_v4, %v3116_v4 }
 0x13a   : > { %2996 = vmatprep.subr.bf16.mxu0 %v9454_v29  ;;  %5160 = vmatpush2.bf16.msra.mxu1 %v9473_v32  ;;  %v3189_v29 = vpack.i.b16 %v3188_v8, %v3188_v8  ;;  %v9511_v8 = vld [vmem:[%s13775_s7 + $0x364] ss:$24 sps:$4 sm:$0xff]  }
 0x13b   : > { %5161 = vmatprep.subr.bf16.mxu1 %v9478_v33 }
 0x13d   : > { %2997 = vmatpush2.bf16.msra.mxu0 %v9452_v21  ;;  %v11699_v21 = vpack.i.b16 %v3124_v63, %v3124_v63  ;;  %v9506_v63 = vld [vmem:[%s13775_s7 + $0x390] ss:$24 sps:$4 sm:$0xff]  }
 0x13e   : > { %2998 = vmatprep.subr.bf16.mxu0 %v9460_v13  ;;  %5162 = vmatpush2.bf16.msra.mxu1 %v9476_v39  ;;  %v2712_v13 = vadd.f32 %v2711_v9, %v2669_v18  ;;  %v9505_v39 = vld [vmem:[%s13775_s7 + $0x3c4] ss:$24 sps:$4 sm:$0xff]  }
 0x13f   : > { %5163 = vmatprep.subr.bf16.mxu1 %v9481_v40  ;;  %v3147_v48 = vrot.slane %v11699_v21, %v10593_v0 }
 0x141   : > { %2999 = vmatpush2.bf16.msra.mxu0 %v9458_v26 }
 0x142   : > { %3000 = vmatprep.subr.bf16.mxu0 %v9466_v34  ;;  %5164 = vmatpush2.bf16.msra.mxu1 %v9479_v47  ;;  %v3196_v34 = vpack.i.b16 %v3195_v22, %v3195_v22 }
 0x143   : > { %5165 = vmatprep.subr.bf16.mxu1 %v9484_v17 }
 0x145   : > { %3001 = vmatpush2.bf16.msra.mxu0 %v9464_v41  ;;  %v3140_v41 = vrot.slane %v11694_v28, %v10593_v0 }
 0x146   : > { %3002 = vmatprep.subr.bf16.mxu0 %v9472_v42  ;;  %5166 = vmatpush2.bf16.msra.mxu1 %v9482_v23  ;;  %v3194_v42 = vrot.slane %v3189_v29, %v10593_v0  ;;  %v3255_v29 = vrot.slane %v11699_v21, %v10596_v1  ;;  %v9512_v21 = vld [vmem:[%s13775_s7 + $0x330] ss:$24 sps:$4 sm:$0xff]  }
 0x147   : > { %5167 = vmatprep.subr.bf16.mxu1 %v9487_v51  ;;  %v3201_v51 = vrot.slane %v3196_v34, %v10593_v0 }
 0x149   : > { %3003 = vmatpush2.bf16.msra.mxu0 %v9470_v49  ;;  %v3301_v49 = vcombine.high %v11679_v11, %v11679_v11 }
 0x14a   : > { %5184 = vmatprep.subr.bf16.mxu0 %v9496_v52  ;;  %5168 = vmatpush2.bf16.msra.mxu1 %v9485_v61  ;;  %v3251_v52 = vrot.slane %v11694_v28, %v10596_v1 }
 0x14b   : > { %5169 = vmatprep.subr.bf16.mxu1 %v9490_v2  ;;  %v11746_v7 = vrot.slane %v3301_v49, %v10577_v58  ;;  %v9520_v49 = vld [vmem:[%s13775_s7 + $0x5d4] ss:$24 sps:$4 sm:$0xff]  }
 0x14c   : > { %v2748_v37 = vpop.f32.mrf.mxu0  ;;  %3005 = vmatmul.mubr.bf16.vlgmr.msra.gmra.mxu0 %v11059_v15  ;;  %v9502_v15 = vld [vmem:[%s13775_s7 + $0x3f4] ss:$24 sps:$4 sm:$0xff]  }
 0x14d   : > { %v2749_v19 = vadd.f32 %v2748_v37, %v2706_v3  ;;  %5185 = vmatpush1.bf16.msra.mxu0 %v9494_v54  ;;  %v9508_v54 = vld [vmem:[%s13775_s7 + $0x394] ss:$24 sps:$4 sm:$0xff]  }
 0x14e   : > { %v2750_v12 = vpop.f32.mrf.mxu0  ;;  %5186 = vmatprep.subr.bf16.mxu0 %v9499_v6  ;;  %5170 = vmatpush2.bf16.msra.mxu1 %v9488_v24 }
 0x14f   : > { %v2751_v27 = vadd.f32 %v2750_v12, %v2708_v16  ;;  %v3015_v31 = vmax.f32 %v2749_v19, 0.0  ;;  %5171 = vmatprep.subr.bf16.mxu1 %v9493_v25 }
 0x150   : > { %v2752_v5 = vpop.f32.mrf.mxu0 }
 0x151   : > { %v2753_v32 = vadd.f32 %v2752_v5, %v2710_v10  ;;  %5187 = vmatpush1.bf16.msra.mxu0 %v9497_v14  ;;  %v11701_v33 = vmax.f32 %v2751_v27, 0.0  ;;  %v3027_v47 = vrot.slane %v3015_v31, 7  ;;  %v3063_v17 = vrot.slane %v3015_v31, 1  ;;  %v9509_v10 = vld [vmem:[%s13775_s7 + $0x360] ss:$24 sps:$4 sm:$0xff]  }
 0x152   : > { %v2754_v26 = vpop.f32.mrf.mxu0  ;;  %5188 = vmatprep.subr.bf16.mxu0 %v9502_v15  ;;  %5172 = vmatpush2.bf16.msra.mxu1 %v9491_v38 }
 0x153   : > { %v3021_v40 = vmax.f32 %v2753_v32, 0.0  ;;  %v2755_v45 = vadd.f32 %v2754_v26, %v2712_v13  ;;  %v3028_v4 = vrot.slane %v11701_v33, 7  ;;  %v3064_v11 = vrot.slane %v11701_v33, 1 }
 0x154   : > { %v3334_v32 = vpack.i.b16 %v11725_v53, %v11725_v53 }
 0x155   : > { %v3033_v20 = vrot.slane %v3021_v40, 7  ;;  %v3069_v23 = vrot.slane %v3021_v40, 1  ;;  %v3182_v44 = vpack.c.bf16 %v3021_v40, %v3015_v31  ;;  %v3022_v50 = vmax.f32 %v2755_v45, 0.0  ;;  %5189 = vmatpush1.bf16.msra.mxu0 %v9500_v30  ;;  %v9514_v31 = vld [vmem:[%s13775_s7 + $0x334] ss:$24 sps:$4 sm:$0xff]  }
 0x156   : > { %5190 = vmatprep.subr.bf16.mxu0 %v9505_v39  ;;  %v3341_v30 = vpack.i.b16 %v11746_v7, %v11746_v7 }
 0x157   : > { %v3039_v59 = vsel %vm516_vm1, %v3027_v47, %v3033_v20  ;;  %v3045_v61 = vsel %vm516_vm1, %v3033_v20, %v3027_v47  ;;  %v3075_v55 = vsel %vm557_vm3, %v3063_v17, %v3069_v23  ;;  %v3081_v62 = vsel %vm557_vm3, %v3069_v23, %v3063_v17  ;;  %v9515_v47 = vld [vmem:[%s13775_s7 + $0x300] ss:$24 sps:$4 sm:$0xff]   ;;  %v9518_v20 = vld [vmem:[%s13775_s7 + $0x5d0] ss:$24 sps:$4 sm:$0xff]   ;;  %v9523_v23 = vld [vmem:[%s13775_s7 + $0x5a4] ss:$24 sps:$4 sm:$0xff]  }
 0x158   : > { %v3051_v2 = vsel %vm10568_vm0, %v3045_v61, 0.0  ;;  %v3093_v6 = vsel %vm10582_vm2, %v3081_v62, 0.0  ;;  %v3034_v3 = vrot.slane %v3022_v50, 7  ;;  %v3230_v37 = vmul.bf16 %v3194_v42, %v3182_v44  ;;  %v9521_v44 = vld [vmem:[%s13775_s7 + $0x5a0] ss:$24 sps:$4 sm:$0xff]  }
 0x159   : > { %v3101_v14 = vpack.c.bf16 %v3039_v59, %v3051_v2  ;;  %v3070_v16 = vrot.slane %v3022_v50, 1  ;;  %5191 = vmatpush1.bf16.msra.mxu0 %v9503_v46  ;;  %v3242_v18 = vpack.c.bf16 %v3093_v6, %v3075_v55  ;;  %v3183_v9 = vpack.c.bf16 %v3022_v50, %v11701_v33  ;;  %v9517_v46 = vld [vmem:[%s13775_s7 + $0x304] ss:$24 sps:$4 sm:$0xff]   ;;  %v9526_v50 = vld [vmem:[%s13775_s7 + $0x574] ss:$24 sps:$4 sm:$0xff]  }
 0x15a   : > { %v3040_v19 = vsel %vm516_vm1, %v3028_v4, %v3034_v3  ;;  %v3046_v24 = vsel %vm516_vm1, %v3034_v3, %v3028_v4  ;;  %5192 = vmatprep.subr.bf16.mxu0 %v9508_v54  ;;  %v3346_v40 = vrot.slane %v3341_v30, %v10593_v0  ;;  %v3339_v42 = vrot.slane %v3334_v32, %v10593_v0  ;;  %v9524_v4 = vld [vmem:[%s13775_s7 + $0x570] ss:$24 sps:$4 sm:$0xff]   ;;  %v9593_v54 = vld [vmem:[%s13775_s7 + $0x754] ss:$24 sps:$4 sm:$0xff]   ;;  %v9528_v59 = vld [vmem:[%s13775_s7 + $0x540] ss:$24 sps:$4 sm:$0xff]  }
 0x15b   : > { %v3176_v12 = vmul.bf16 %v3140_v41, %v3101_v14  ;;  %v3052_v22 = vsel %vm10568_vm0, %v3046_v24, 0.0  ;;  %v3076_v25 = vsel %vm557_vm3, %v3064_v11, %v3070_v16  ;;  %v3082_v15 = vsel %vm557_vm3, %v3070_v16, %v3064_v11  ;;  %5227 = vmatprep.subr.bf16.mxu1 %v9593_v54  ;;  %v9533_v61 = vld [vmem:[%s13775_s7 + $0x514] ss:$24 sps:$4 sm:$0xff]   ;;  %v9597_v55 = vld [vmem:[%s13775_s7 + $0x720] ss:$24 sps:$4 sm:$0xff]  }
 0x15c   : > { %v3102_v27 = vpack.c.bf16 %v3040_v19, %v3052_v22  ;;  %v3094_v28 = vsel %vm10582_vm2, %v3082_v15, 0.0  ;;  %v3231_v33 = vmul.bf16 %v3201_v51, %v3183_v9  ;;  %v3272_v34 = vmul.bf16 %v3251_v52, %v3242_v18  ;;  %v9530_v51 = vld [vmem:[%s13775_s7 + $0x544] ss:$24 sps:$4 sm:$0xff]   ;;  %v9591_v52 = vld [vmem:[%s13775_s7 + $0x750] ss:$24 sps:$4 sm:$0xff]   ;;  %v2791_v15 = vpop.f32.mrf.mxu1 }
 0x15d   : > { %v3236_v5 = vadd.bf16 %v3230_v37, %v3176_v12  ;;  %v3243_v13 = vpack.c.bf16 %v3094_v28, %v3076_v25  ;;  %5193 = vmatpush1.bf16.msra.mxu0 %v9506_v63  ;;  %v9599_v62 = vld [vmem:[%s13775_s7 + $0x724] ss:$24 sps:$4 sm:$0xff]   ;;  %v9531_v63 = vld [vmem:[%s13775_s7 + $0x510] ss:$24 sps:$4 sm:$0xff]   ;;  %v9605_v3 = vld [vmem:[%s13775_s7 + $0x6f4] ss:$24 sps:$4 sm:$0xff]  }
 0x15e   : > { %v3177_v26 = vmul.bf16 %v3147_v48, %v3102_v27  ;;  %5194 = vmatprep.subr.bf16.mxu0 %v9511_v8  ;;  %v9536_v2 = vld [vmem:[%s13775_s7 + $0x4e4] ss:$24 sps:$4 sm:$0xff]   ;;  %v9603_v6 = vld [vmem:[%s13775_s7 + $0x6f0] ss:$24 sps:$4 sm:$0xff]   ;;  %v9534_v8 = vld [vmem:[%s13775_s7 + $0x4e0] ss:$24 sps:$4 sm:$0xff]   ;;  %v2793_v30 = vpop.f32.mrf.mxu1 }
 0x15f   : > { %v3273_v39 = vmul.bf16 %v3255_v29, %v3243_v13  ;;  %v3278_v41 = vadd.bf16 %v3272_v34, %v3236_v5  ;;  %v9539_v11 = vld [vmem:[%s13775_s7 + $0x4b4] ss:$24 sps:$4 sm:$0xff]   ;;  %v9609_v14 = vld [vmem:[%s13775_s7 + $0x6c0] ss:$24 sps:$4 sm:$0xff]   ;;  %v9611_v37 = vld [vmem:[%s13775_s7 + $0x6c4] ss:$24 sps:$4 sm:$0xff]   ;;  %v3109_v5 = vcombine.high %v11638_v43, %v11638_v43 }
 0x160   : > { %v3237_v38 = vadd.bf16 %v3231_v33, %v3177_v26  ;;  %v9537_v16 = vld [vmem:[%s13775_s7 + $0x4b0] ss:$24 sps:$4 sm:$0xff]   ;;  %v9542_v18 = vld [vmem:[%s13775_s7 + $0x484] ss:$24 sps:$4 sm:$0xff]   ;;  %v9617_v24 = vld [vmem:[%s13775_s7 + $0x694] ss:$24 sps:$4 sm:$0xff]   ;;  %v2795_v34 = vpop.f32.mrf.mxu1 }
 0x161   : > { %5195 = vmatpush1.bf16.msra.mxu0 %v9509_v10  ;;  %v11790_v48 = vadd.bf16 %v3339_v42, %v3278_v41  ;;  %v9615_v19 = vld [vmem:[%s13775_s7 + $0x690] ss:$24 sps:$4 sm:$0xff]   ;;  %v9540_v9 = vld [vmem:[%s13775_s7 + $0x480] ss:$24 sps:$4 sm:$0xff]   ;;  %v9545_v12 = vld [vmem:[%s13775_s7 + $0x15c] ss:$24 sps:$4 sm:$0xff]   ;;  %v3123_v43 = vrot.slane %v3109_v5, %v10574_v57 }
 0x162   : > { %v3279_v45 = vadd.bf16 %v3273_v39, %v3237_v38  ;;  %5196 = vmatprep.subr.bf16.mxu0 %v9514_v31  ;;  %v9621_v22 = vld [vmem:[%s13775_s7 + $0x660] ss:$24 sps:$4 sm:$0xff]   ;;  %v9623_v25 = vld [vmem:[%s13775_s7 + $0x664] ss:$24 sps:$4 sm:$0xff]   ;;  %v9627_v10 = vld [vmem:[%s13775_s7 + $0x630] ss:$24 sps:$4 sm:$0xff]   ;;  %v2797_v42 = vpop.f32.mrf.mxu1 }
 0x163   : > { %v9629_v27 = vld [vmem:[%s13775_s7 + $0x634] ss:$24 sps:$4 sm:$0xff]   ;;  %v11888_v28 = vsub.s32 2, %v10526_v36  ;;  %v11891_v29 = vsub.s32 3, %v10526_v36  ;;  %v9633_v13 = vld [vmem:[%s13775_s7 + $0x600] ss:$24 sps:$4 sm:$0xff]  }
 0x164   : > { %v11788_v17 = vadd.bf16 %v3346_v40, %v3279_v45  ;;  %v9635_v32 = vld [vmem:[%s13775_s7 + $0x604] ss:$24 sps:$4 sm:$0xff]   ;;  %v9639_v38 = vld [vmem:[%s13775_s7 + $0x8d0] ss:$24 sps:$4 sm:$0xff]   ;;  %v9641_v39 = vld [vmem:[%s13775_s7 + $0x8d4] ss:$24 sps:$4 sm:$0xff]  }
 0x165   : > { %5197 = vmatpush1.bf16.msra.mxu0 %v9512_v21  ;;  %v1169_v33 = vrot.slane %v11621_v35, %v11888_v28  ;;  %v1173_v26 = vrot.slane %v11621_v35, %v11891_v29  ;;  %v3125_v35 = vcombine.high %v3123_v43, %v3123_v43  ;;  %v9653_v54 = vld [vmem:[%s13775_s7 + $0x874] ss:$24 sps:$4 sm:$0xff]  }
 0x166   : > { %5173 = vmatprep.mubr.bf16.mxu1 %v11788_v17  ;;  %5198 = vmatprep.subr.bf16.mxu0 %v9517_v46  ;;  %v9645_v46 = vld [vmem:[%s13775_s7 + $0x8a0] ss:$24 sps:$4 sm:$0xff]   ;;  %v9665_v5 = vld [vmem:[%s13775_s7 + $0x814] ss:$24 sps:$4 sm:$0xff]  }
 0x167   : > { %5174 = vmatmul.mubr.bf16.vlgmr.msra.gmra.mxu1 %v11790_v48  ;;  %v2792_v40 = vadd.f32 %v2791_v15, %v1169_v33  ;;  %v2794_v41 = vadd.f32 %v2793_v30, %v1173_v26 }
 0x168   : > { %5228 = vmatpush1.bf16.msra.mxu1 %v9591_v52  ;;  %v9651_v52 = vld [vmem:[%s13775_s7 + $0x870] ss:$24 sps:$4 sm:$0xff]  }
 0x169   : > { %5199 = vmatpush1.bf16.msra.mxu0 %v9515_v47  ;;  %5229 = vmatprep.subr.bf16.mxu1 %v9599_v62  ;;  %v9647_v47 = vld [vmem:[%s13775_s7 + $0x8a4] ss:$24 sps:$4 sm:$0xff]  }
 0x16a   : > { %5200 = vmatprep.subr.bf16.mxu0 %v9520_v49 }
 0x16c   : > { %5230 = vmatpush1.bf16.msra.mxu1 %v9597_v55 }
 0x16d   : > { %5201 = vmatpush2.bf16.msra.mxu0 %v9518_v20  ;;  %5231 = vmatprep.subr.bf16.mxu1 %v9605_v3  ;;  %v2796_v20 = vadd.f32 %v2795_v34, %v1169_v33 }
 0x16e   : > { %5202 = vmatprep.subr.bf16.mxu0 %v9523_v23 }
 0x170   : > { %5232 = vmatpush1.bf16.msra.mxu1 %v9603_v6 }
 0x171   : > { %5203 = vmatpush2.bf16.msra.mxu0 %v9521_v44  ;;  %5233 = vmatprep.subr.bf16.mxu1 %v9611_v37  ;;  %v3202_v44 = vshrl.u32 %v3123_v43, 16  ;;  %v9657_v37 = vld [vmem:[%s13775_s7 + $0x840] ss:$24 sps:$4 sm:$0xff]  }
 0x172   : > { %5204 = vmatprep.subr.bf16.mxu0 %v9526_v50 }
 0x173   : > { %v3203_v6 = vpack.i.b16 %v3202_v44, %v3202_v44 }
 0x174   : > { %5234 = vmatpush1.bf16.msra.mxu1 %v9609_v14 }
 0x175   : > { %5205 = vmatpush2.bf16.msra.mxu0 %v9524_v4  ;;  %5235 = vmatprep.subr.bf16.mxu1 %v9617_v24 }
 0x176   : > { %5206 = vmatprep.subr.bf16.mxu0 %v9530_v51  ;;  %v3209_v51 = vshrl.u32 %v3125_v35, 16 }
 0x178   : > { %5236 = vmatpush1.bf16.msra.mxu1 %v9615_v19  ;;  %v3210_v14 = vpack.i.b16 %v3209_v51, %v3209_v51 }
 0x179   : > { %5207 = vmatpush2.bf16.msra.mxu0 %v9528_v59  ;;  %5237 = vmatprep.subr.bf16.mxu1 %v9623_v25  ;;  %v2798_v59 = vadd.f32 %v2797_v42, %v1173_v26 }
 0x17a   : > { %5208 = vmatprep.subr.bf16.mxu0 %v9533_v61  ;;  %v3215_v30 = vrot.slane %v3210_v14, %v10593_v0 }
 0x17c   : > { %5238 = vmatpush1.bf16.msra.mxu1 %v9621_v22  ;;  %v3208_v22 = vrot.slane %v3203_v6, %v10593_v0 }
 0x17d   : > { %5209 = vmatpush2.bf16.msra.mxu0 %v9531_v63  ;;  %5239 = vmatprep.subr.bf16.mxu1 %v9629_v27 }
 0x17e   : > { %5210 = vmatprep.subr.bf16.mxu0 %v9536_v2 }
 0x180   : > { %5240 = vmatpush1.bf16.msra.mxu1 %v9627_v10 }
 0x181   : > { %5211 = vmatpush2.bf16.msra.mxu0 %v9534_v8  ;;  %5241 = vmatprep.subr.bf16.mxu1 %v9635_v32 }
 0x182   : > { %5212 = vmatprep.subr.bf16.mxu0 %v9539_v11  ;;  %v11924_v11 = vpack.i.b16 %v3123_v43, %v3123_v43 }
 0x184   : > { %5242 = vmatpush1.bf16.msra.mxu1 %v9633_v13  ;;  %v3154_v27 = vrot.slane %v11924_v11, %v10593_v0  ;;  %v3259_v43 = vrot.slane %v11924_v11, %v10596_v1 }
 0x185   : > { %5213 = vmatpush2.bf16.msra.mxu0 %v9537_v16  ;;  %5243 = vmatprep.subr.bf16.mxu1 %v9641_v39  ;;  %v9659_v16 = vld [vmem:[%s13775_s7 + $0x844] ss:$24 sps:$4 sm:$0xff]  }
 0x186   : > { %5214 = vmatprep.subr.bf16.mxu0 %v9542_v18 }
 0x188   : > { %5244 = vmatpush2.bf16.msra.mxu1 %v9639_v38  ;;  %v3331_v38 = vcombine.high %v11725_v53, %v11725_v53 }
 0x189   : > { %5215 = vmatpush2.bf16.msra.mxu0 %v9540_v9  ;;  %5245 = vmatprep.subr.bf16.mxu1 %v9647_v47  ;;  %v3156_v9 = vpack.i.b16 %v3125_v35, %v3125_v35  ;;  %v9669_v47 = vld [vmem:[%s13775_s7 + $0x7e0] ss:$24 sps:$4 sm:$0xff]  }
 0x18a   : > { %5270 = vmatprep.subr.bf16.mxu0 %v9545_v12 }
 0x18c   : > { %v2834_v31 = vpop.f32.mrf.mxu0  ;;  %5246 = vmatpush2.bf16.msra.mxu1 %v9645_v46  ;;  %v3332_v46 = vcombine.high %v11746_v7, %v11746_v7 }
 0x18d   : > { %v2835_v49 = vadd.f32 %v2834_v31, %v2792_v40  ;;  %5247 = vmatprep.subr.bf16.mxu1 %v9653_v54  ;;  %v9663_v31 = vld [vmem:[%s13775_s7 + $0x810] ss:$24 sps:$4 sm:$0xff]  }
 0x18e   : > { %v2836_v21 = vpop.f32.mrf.mxu0  ;;  %v3355_v6 = vpack.i.b16 %v3332_v46, %v3332_v46  ;;  %v9569_v46 = vld [vmem:[%s13775_s7 + $0x2dc] ss:$24 sps:$4 sm:$0xff]  }
 0x18f   : > { %v2837_v23 = vadd.f32 %v2836_v21, %v2794_v41  ;;  %v3161_v21 = vrot.slane %v3156_v9, %v10593_v0 }
 0x190   : > { %v2838_v45 = vpop.f32.mrf.mxu0  ;;  %5248 = vmatpush2.bf16.msra.mxu1 %v9651_v52 }
 0x191   : > { %v2839_v55 = vadd.f32 %v2838_v45, %v2796_v20  ;;  %5249 = vmatprep.subr.bf16.mxu1 %v9659_v16 }
 0x192   : > { %v2840_v4 = vpop.f32.mrf.mxu0 }
 0x193   : > { %v2841_v2 = vadd.f32 %v2840_v4, %v2798_v59 }
 0x194   : > { %5250 = vmatpush2.bf16.msra.mxu1 %v9657_v37  ;;  %v3348_v37 = vpack.i.b16 %v3331_v38, %v3331_v38  ;;  %v9557_v38 = vld [vmem:[%s13775_s7 + $0x9c] ss:$24 sps:$4 sm:$0xff]  }
 0x195   : > { %v2877_v50 = vpop.f32.mrf.mxu1  ;;  %5251 = vmatprep.subr.bf16.mxu1 %v9665_v5  ;;  %v9548_v5 = vld [vmem:[%s13775_s7 + $0x12c] ss:$24 sps:$4 sm:$0xff]  }
 0x196   : > { %v2878_v61 = vadd.f32 %v2877_v50, %v2835_v49  ;;  %v9671_v50 = vld [vmem:[%s13775_s7 + $0x7e4] ss:$24 sps:$4 sm:$0xff]  }
 0x197   : > { %v2879_v62 = vpop.f32.mrf.mxu1 }
 0x198   : > { %v2880_v63 = vadd.f32 %v2879_v62, %v2837_v23  ;;  %v3017_v3 = vmax.f32 %v2878_v61, 0.0  ;;  %5252 = vmatpush2.bf16.msra.mxu1 %v9663_v31  ;;  %v9543_v31 = vld [vmem:[%s13775_s7 + $0x158] ss:$24 sps:$4 sm:$0xff]  }
 0x199   : > { %v2881_v8 = vpop.f32.mrf.mxu1  ;;  %5253 = vmatprep.subr.bf16.mxu1 %v9671_v50  ;;  %v9578_v50 = vld [vmem:[%s13775_s7 + $0x24c] ss:$24 sps:$4 sm:$0xff]  }
 0x19a   : > { %v2882_v18 = vadd.f32 %v2881_v8, %v2839_v55  ;;  %v3018_v19 = vmax.f32 %v2880_v63, 0.0  ;;  %v3029_v15 = vrot.slane %v3017_v3, 7  ;;  %v3065_v10 = vrot.slane %v3017_v3, 1  ;;  %v9677_v8 = vld [vmem:[%s13775_s7 + $0x7b4] ss:$24 sps:$4 sm:$0xff]  }
 0x19b   : > { %v2883_v24 = vpop.f32.mrf.mxu1 }
 0x19c   : > { %v3023_v12 = vmax.f32 %v2882_v18, 0.0  ;;  %v2884_v25 = vadd.f32 %v2883_v24, %v2841_v2  ;;  %v3030_v34 = vrot.slane %v3018_v19, 7  ;;  %v3066_v49 = vrot.slane %v3018_v19, 1  ;;  %5254 = vmatpush2.bf16.msra.mxu1 %v9669_v47  ;;  %v9567_v47 = vld [vmem:[%s13775_s7 + $0x2d8] ss:$24 sps:$4 sm:$0xff]  }
 0x19d   : > { %v3263_v2 = vrot.slane %v3156_v9, %v10596_v1  ;;  %5255 = vmatprep.subr.bf16.mxu1 %v9677_v8  ;;  %v3360_v9 = vrot.slane %v3355_v6, %v10593_v0  ;;  %v9602_v6 = vld [vmem:[%s13775_s7 + $0x72c] ss:$24 sps:$4 sm:$0xff]   ;;  %v9608_v8 = vld [vmem:[%s13775_s7 + $0x6fc] ss:$24 sps:$4 sm:$0xff]  }
 0x19e   : > { %v3035_v13 = vrot.slane %v3023_v12, 7  ;;  %v3071_v32 = vrot.slane %v3023_v12, 1  ;;  %v3184_v33 = vpack.c.bf16 %v3023_v12, %v3017_v3  ;;  %v3024_v26 = vmax.f32 %v2884_v25, 0.0  ;;  %v9675_v3 = vld [vmem:[%s13775_s7 + $0x7b0] ss:$24 sps:$4 sm:$0xff]  }
 0x19f   : > { %v9683_v25 = vld [vmem:[%s13775_s7 + $0x784] ss:$24 sps:$4 sm:$0xff]  }
 0x1a0   : > { %v3041_v39 = vsel %vm516_vm1, %v3029_v15, %v3035_v13  ;;  %v3047_v40 = vsel %vm516_vm1, %v3035_v13, %v3029_v15  ;;  %v3077_v41 = vsel %vm557_vm3, %v3065_v10, %v3071_v32  ;;  %v3083_v42 = vsel %vm557_vm3, %v3071_v32, %v3065_v10  ;;  %5256 = vmatpush2.bf16.msra.mxu1 %v9675_v3  ;;  %v9690_v13 = vld [vmem:[%s13775_s7 + $0x45c] ss:$24 sps:$4 sm:$0xff]   ;;  %v9600_v3 = vld [vmem:[%s13775_s7 + $0x728] ss:$24 sps:$4 sm:$0xff]  }
 0x1a1   : > { %v3053_v45 = vsel %vm10568_vm0, %v3047_v40, 0.0  ;;  %v3095_v53 = vsel %vm10582_vm2, %v3083_v42, 0.0  ;;  %v3036_v35 = vrot.slane %v3024_v26, 7  ;;  %v3232_v23 = vmul.bf16 %v3208_v22, %v3184_v33  ;;  %v9681_v22 = vld [vmem:[%s13775_s7 + $0x780] ss:$24 sps:$4 sm:$0xff]   ;;  %5257 = vmatprep.subr.bf16.mxu1 %v9683_v25 }
 0x1a2   : > { %v3103_v20 = vpack.c.bf16 %v3041_v39, %v3053_v45  ;;  %v3072_v44 = vrot.slane %v3024_v26, 1  ;;  %v3244_v4 = vpack.c.bf16 %v3095_v53, %v3077_v41  ;;  %v3185_v7 = vpack.c.bf16 %v3024_v26, %v3018_v19  ;;  %v9546_v33 = vld [vmem:[%s13775_s7 + $0x128] ss:$24 sps:$4 sm:$0xff]   ;;  %v9551_v26 = vld [vmem:[%s13775_s7 + $0xfc] ss:$24 sps:$4 sm:$0xff]  }
 0x1a3   : > { %v3042_v51 = vsel %vm516_vm1, %v3030_v34, %v3036_v35  ;;  %v3048_v52 = vsel %vm516_vm1, %v3036_v35, %v3030_v34  ;;  %v3353_v10 = vrot.slane %v3348_v37, %v10593_v0  ;;  %v9549_v34 = vld [vmem:[%s13775_s7 + $0xf8] ss:$24 sps:$4 sm:$0xff]   ;;  %v9560_v40 = vld [vmem:[%s13775_s7 + $0x6c] ss:$24 sps:$4 sm:$0xff]   ;;  %v9558_v41 = vld [vmem:[%s13775_s7 + $0x68] ss:$24 sps:$4 sm:$0xff]  }
 0x1a4   : > { %v3178_v54 = vmul.bf16 %v3154_v27, %v3103_v20  ;;  %v3054_v59 = vsel %vm10568_vm0, %v3048_v52, 0.0  ;;  %v3078_v61 = vsel %vm557_vm3, %v3066_v49, %v3072_v44  ;;  %v3084_v55 = vsel %vm557_vm3, %v3072_v44, %v3066_v49  ;;  %5258 = vmatpush2.bf16.msra.mxu1 %v9681_v22  ;;  %v9555_v39 = vld [vmem:[%s13775_s7 + $0x98] ss:$24 sps:$4 sm:$0xff]   ;;  %v9563_v42 = vld [vmem:[%s13775_s7 + $0x3c] ss:$24 sps:$4 sm:$0xff]  }
 0x1a5   : > { %v3104_v62 = vpack.c.bf16 %v3042_v51, %v3054_v59  ;;  %v3096_v63 = vsel %vm10582_vm2, %v3084_v55, 0.0  ;;  %v3233_v16 = vmul.bf16 %v3215_v30, %v3185_v7  ;;  %v3274_v19 = vmul.bf16 %v3259_v43, %v3244_v4  ;;  %5313 = vmatprep.subr.bf16.mxu1 %v9690_v13  ;;  %v9552_v43 = vld [vmem:[%s13775_s7 + $0xc8] ss:$24 sps:$4 sm:$0xff]   ;;  %v9561_v45 = vld [vmem:[%s13775_s7 + $0x38] ss:$24 sps:$4 sm:$0xff]  }
 0x1a6   : > { %v3238_v11 = vadd.bf16 %v3232_v23, %v3178_v54  ;;  %v3245_v14 = vpack.c.bf16 %v3096_v63, %v3078_v61  ;;  %v9566_v53 = vld [vmem:[%s13775_s7 + $0xc] ss:$24 sps:$4 sm:$0xff]   ;;  %v9564_v35 = vld [vmem:[%s13775_s7 + $0x8] ss:$24 sps:$4 sm:$0xff]   ;;  %v9575_v23 = vld [vmem:[%s13775_s7 + $0x27c] ss:$24 sps:$4 sm:$0xff]  }
 0x1a7   : > { %v3179_v18 = vmul.bf16 %v3161_v21, %v3104_v62  ;;  %v9554_v21 = vld [vmem:[%s13775_s7 + $0xcc] ss:$24 sps:$4 sm:$0xff]   ;;  %v9570_v20 = vld [vmem:[%s13775_s7 + $0x2a8] ss:$24 sps:$4 sm:$0xff]   ;;  %v9573_v44 = vld [vmem:[%s13775_s7 + $0x278] ss:$24 sps:$4 sm:$0xff]  }
 0x1a8   : > { %v3275_v12 = vmul.bf16 %v3263_v2, %v3245_v14  ;;  %v3280_v15 = vadd.bf16 %v3274_v19, %v3238_v11  ;;  %v9572_v49 = vld [vmem:[%s13775_s7 + $0x2ac] ss:$24 sps:$4 sm:$0xff]   ;;  %v9576_v4 = vld [vmem:[%s13775_s7 + $0x248] ss:$24 sps:$4 sm:$0xff]   ;;  %v9581_v51 = vld [vmem:[%s13775_s7 + $0x21c] ss:$24 sps:$4 sm:$0xff]  }
 0x1a9   : > { %v3239_v24 = vadd.bf16 %v3233_v16, %v3179_v18  ;;  %v9579_v52 = vld [vmem:[%s13775_s7 + $0x218] ss:$24 sps:$4 sm:$0xff]   ;;  %v9584_v7 = vld [vmem:[%s13775_s7 + $0x1ec] ss:$24 sps:$4 sm:$0xff]   ;;  %v9582_v54 = vld [vmem:[%s13775_s7 + $0x1e8] ss:$24 sps:$4 sm:$0xff]  }
 0x1aa   : > { %v12005_v32 = vadd.bf16 %v3353_v10, %v3280_v15  ;;  %v9587_v59 = vld [vmem:[%s13775_s7 + $0x1bc] ss:$24 sps:$4 sm:$0xff]   ;;  %v9585_v61 = vld [vmem:[%s13775_s7 + $0x1b8] ss:$24 sps:$4 sm:$0xff]   ;;  %v9590_v55 = vld [vmem:[%s13775_s7 + $0x18c] ss:$24 sps:$4 sm:$0xff]  }
 0x1ab   : > { %v3281_v27 = vadd.bf16 %v3275_v12, %v3239_v24  ;;  %v9588_v62 = vld [vmem:[%s13775_s7 + $0x188] ss:$24 sps:$4 sm:$0xff]   ;;  %v9596_v63 = vld [vmem:[%s13775_s7 + $0x75c] ss:$24 sps:$4 sm:$0xff]   ;;  %v9594_v2 = vld [vmem:[%s13775_s7 + $0x758] ss:$24 sps:$4 sm:$0xff]  }
 0x1ac   : > { %v9606_v11 = vld [vmem:[%s13775_s7 + $0x6f8] ss:$24 sps:$4 sm:$0xff]   ;;  %v9614_v14 = vld [vmem:[%s13775_s7 + $0x6cc] ss:$24 sps:$4 sm:$0xff]   ;;  %v9612_v16 = vld [vmem:[%s13775_s7 + $0x6c8] ss:$24 sps:$4 sm:$0xff]  }
 0x1ad   : > { %v11994_v30 = vadd.bf16 %v3360_v9, %v3281_v27  ;;  %v12123_v18 = vsub.s32 4, %v10526_v36  ;;  %v9620_v19 = vld [vmem:[%s13775_s7 + $0x69c] ss:$24 sps:$4 sm:$0xff]   ;;  %v12129_v24 = vsub.s32 5, %v10526_v36  ;;  %v9618_v22 = vld [vmem:[%s13775_s7 + $0x698] ss:$24 sps:$4 sm:$0xff]  }
 0x1ae   : > { %v10314_v25 = vld [vmem:[%s13772_s4] sm:$0x3f]  ;;  %v10112_v36 = vld [vmem:[%s13779_s11 + $0x7b8] ss:$24 sps:$4 sm:$0xff]  }
 0x1af   : > { %5216 = vmatprep.mubr.bf16.mxu0 %v11994_v30  ;;  %v1177_v15 = vrot.slane %v10314_v25, %v12123_v18  ;;  %v9626_v10 = vld [vmem:[%s13775_s7 + $0x66c] ss:$24 sps:$4 sm:$0xff]   ;;  %v1181_v27 = vrot.slane %v10314_v25, %v12129_v24 }
 0x1b0   : > { %5217 = vmatmul.mubr.bf16.vlgmr.msra.gmra.mxu0 %v12005_v32 }
 0x1b1   : > { %5271 = vmatpush1.bf16.msra.mxu0 %v9543_v31  ;;  %5302 = vmatprep.mubr.bf16.mxu0 %v11788_v17  ;;  %v8421_v31 = vld.sshfl [vmem:[%s13773_s5 + $0x8] sm:$0x33 pattern:$0x76325410] }
 0x1b2   : > { %5272 = vmatprep.subr.bf16.mxu0 %v9548_v5 }
 0x1b5   : > { %5273 = vmatpush1.bf16.msra.mxu0 %v9546_v33  ;;  %v9624_v33 = vld [vmem:[%s13775_s7 + $0x668] ss:$24 sps:$4 sm:$0xff]  }
 0x1b6   : > { %5274 = vmatprep.subr.bf16.mxu0 %v9551_v26 }
 0x1b9   : > { %5275 = vmatpush1.bf16.msra.mxu0 %v9549_v34  ;;  %v9632_v34 = vld [vmem:[%s13775_s7 + $0x63c] ss:$24 sps:$4 sm:$0xff]  }
 0x1ba   : > { %5276 = vmatprep.subr.bf16.mxu0 %v9554_v21  ;;  %v3133_v21 = vcombine.high %v8421_v31, %v8421_v31 }
 0x1bd   : > { %5277 = vmatpush1.bf16.msra.mxu0 %v9552_v43 }
 0x1be   : > { %5278 = vmatprep.subr.bf16.mxu0 %v9557_v38 }
 0x1c1   : > { %5279 = vmatpush1.bf16.msra.mxu0 %v9555_v39 }
 0x1c2   : > { %5280 = vmatprep.subr.bf16.mxu0 %v9560_v40  ;;  %v9630_v40 = vld [vmem:[%s13775_s7 + $0x638] ss:$24 sps:$4 sm:$0xff]  }
 0x1c5   : > { %5281 = vmatpush1.bf16.msra.mxu0 %v9558_v41  ;;  %v10315_v41 = vld [vmem:[%s13774_s6] sm:$0x3f] }
 0x1c6   : > { %5282 = vmatprep.subr.bf16.mxu0 %v9563_v42  ;;  %v3286_v42 = vcombine.high %v10315_v41, %v10315_v41 }
 0x1c9   : > { %5283 = vmatpush1.bf16.msra.mxu0 %v9561_v45 }
 0x1ca   : > { %5284 = vmatprep.subr.bf16.mxu0 %v9566_v53 }
 0x1cc   : > { %v2920_v37 = vpop.f32.mrf.mxu0 }
 0x1cd   : > { %5285 = vmatpush1.bf16.msra.mxu0 %v9564_v35  ;;  %v2921_v26 = vadd.f32 %v2920_v37, %v1177_v15  ;;  %v9638_v35 = vld [vmem:[%s13775_s7 + $0x60c] ss:$24 sps:$4 sm:$0xff]  }
 0x1ce   : > { %5286 = vmatprep.subr.bf16.mxu0 %v9569_v46  ;;  %v2922_v12 = vpop.f32.mrf.mxu0 }
 0x1cf   : > { %v2923_v43 = vadd.f32 %v2922_v12, %v1181_v27 }
 0x1d0   : > { %v2924_v5 = vpop.f32.mrf.mxu0 }
 0x1d1   : > { %5287 = vmatpush2.bf16.msra.mxu0 %v9567_v47  ;;  %v2925_v53 = vadd.f32 %v2924_v5, %v1177_v15  ;;  %v3216_v47 = vshrl.u32 %v8421_v31, 16 }
 0x1d2   : > { %5288 = vmatprep.subr.bf16.mxu0 %v9572_v49  ;;  %v2926_v38 = vpop.f32.mrf.mxu0  ;;  %v3223_v49 = vshrl.u32 %v3133_v21, 16 }
 0x1d5   : > { %5289 = vmatpush2.bf16.msra.mxu0 %v9570_v20  ;;  %v2963_v9 = vpop.f32.mrf.mxu1 }
 0x1d6   : > { %5290 = vmatprep.subr.bf16.mxu0 %v9575_v23  ;;  %v2964_v45 = vadd.f32 %v2963_v9, %v2921_v26  ;;  %v2927_v23 = vadd.f32 %v2926_v38, %v1181_v27  ;;  %v9648_v26 = vld [vmem:[%s13775_s7 + $0x8a8] ss:$24 sps:$4 sm:$0xff]  }
 0x1d7   : > { %v2965_v13 = vpop.f32.mrf.mxu1 }
 0x1d8   : > { %v2966_v20 = vadd.f32 %v2965_v13, %v2923_v43 }
 0x1d9   : > { %5291 = vmatpush2.bf16.msra.mxu0 %v9573_v44  ;;  %v2967_v39 = vpop.f32.mrf.mxu1 }
 0x1da   : > { %5292 = vmatprep.subr.bf16.mxu0 %v9578_v50 }
 0x1db   : > { %v2969_v50 = vpop.f32.mrf.mxu1 }
 0x1dd   : > { %5293 = vmatpush2.bf16.msra.mxu0 %v9576_v4  ;;  %v9636_v4 = vld [vmem:[%s13775_s7 + $0x608] ss:$24 sps:$4 sm:$0xff]  }
 0x1de   : > { %5294 = vmatprep.subr.bf16.mxu0 %v9581_v51 }
 0x1e1   : > { %5295 = vmatpush2.bf16.msra.mxu0 %v9579_v52  ;;  %v3300_v52 = vrot.slane %v3286_v42, %v10577_v58 }
 0x1e2   : > { %5296 = vmatprep.subr.bf16.mxu0 %v9584_v7  ;;  %v2968_v7 = vadd.f32 %v2967_v39, %v2925_v53 }
 0x1e3   : > { %v3302_v37 = vcombine.high %v3300_v52, %v3300_v52  ;;  %v3316_v38 = vrot.slane %v3300_v52, %v10577_v58 }
 0x1e5   : > { %5297 = vmatpush2.bf16.msra.mxu0 %v9582_v54  ;;  %v9644_v54 = vld [vmem:[%s13775_s7 + $0x8dc] ss:$24 sps:$4 sm:$0xff]  }
 0x1e6   : > { %5298 = vmatprep.subr.bf16.mxu0 %v9587_v59 }
 0x1e9   : > { %5299 = vmatpush2.bf16.msra.mxu0 %v9585_v61  ;;  %v12167_v61 = vpack.i.b16 %v8421_v31, %v8421_v31 }
 0x1ea   : > { %5300 = vmatprep.subr.bf16.mxu0 %v9590_v55 }
 0x1eb   : > { %v3168_v9 = vrot.slane %v12167_v61, %v10593_v0  ;;  %v3267_v43 = vrot.slane %v12167_v61, %v10596_v1 }
 0x1ed   : > { %5301 = vmatpush2.bf16.msra.mxu0 %v9588_v62 }
 0x1ee   : > { %5356 = vmatprep.subr.bf16.mxu0 %v9596_v63  ;;  %v3217_v63 = vpack.i.b16 %v3216_v47, %v3216_v47 }
 0x1f0   : > { %5303 = vmatmul.mubr.bf16.vlgmr.msra.gmra.mxu0 %v11790_v48  ;;  %v3222_v15 = vrot.slane %v3217_v63, %v10593_v0 }
 0x1f1   : > { %5357 = vmatpush1.bf16.msra.mxu0 %v9594_v2  ;;  %v3224_v2 = vpack.i.b16 %v3223_v49, %v3223_v49 }
 0x1f2   : > { %5358 = vmatprep.subr.bf16.mxu0 %v9602_v6  ;;  %v12169_v6 = vpack.i.b16 %v3133_v21, %v3133_v21  ;;  %v3330_v21 = vrot.slane %v3302_v37, %v10577_v58  ;;  %v9660_v37 = vld [vmem:[%s13775_s7 + $0x848] ss:$24 sps:$4 sm:$0xff]  }
 0x1f4   : > { %v3175_v27 = vrot.slane %v12169_v6, %v10593_v0 }
 0x1f5   : > { %5359 = vmatpush1.bf16.msra.mxu0 %v9600_v3  ;;  %v2970_v3 = vadd.f32 %v2969_v50, %v2927_v23  ;;  %v9654_v50 = vld [vmem:[%s13775_s7 + $0x878] ss:$24 sps:$4 sm:$0xff]  }
 0x1f6   : > { %5360 = vmatprep.subr.bf16.mxu0 %v9608_v8 }
 0x1f9   : > { %5361 = vmatpush1.bf16.msra.mxu0 %v9606_v11  ;;  %v9642_v11 = vld [vmem:[%s13775_s7 + $0x8d8] ss:$24 sps:$4 sm:$0xff]  }
 0x1fa   : > { %5362 = vmatprep.subr.bf16.mxu0 %v9614_v14 }
 0x1fd   : > { %5363 = vmatpush1.bf16.msra.mxu0 %v9612_v16  ;;  %v9650_v16 = vld [vmem:[%s13775_s7 + $0x8ac] ss:$24 sps:$4 sm:$0xff]  }
 0x1fe   : > { %5364 = vmatprep.subr.bf16.mxu0 %v9620_v19 }
 0x201   : > { %5365 = vmatpush1.bf16.msra.mxu0 %v9618_v22 }
 0x202   : > { %5366 = vmatprep.subr.bf16.mxu0 %v9626_v10  ;;  %v3229_v10 = vrot.slane %v3224_v2, %v10593_v0 }
 0x205   : > { %5367 = vmatpush1.bf16.msra.mxu0 %v9624_v33 }
 0x206   : > { %5368 = vmatprep.subr.bf16.mxu0 %v9632_v34  ;;  %v3271_v34 = vrot.slane %v12169_v6, %v10596_v1 }
 0x209   : > { %5369 = vmatpush1.bf16.msra.mxu0 %v9630_v40  ;;  %v9656_v40 = vld [vmem:[%s13775_s7 + $0x87c] ss:$24 sps:$4 sm:$0xff]  }
 0x20a   : > { %5370 = vmatprep.subr.bf16.mxu0 %v9638_v35 }
 0x20c   : > { %v3006_v46 = vpop.f32.mrf.mxu0 }
 0x20d   : > { %v3007_v44 = vadd.f32 %v3006_v46, %v2964_v45  ;;  %5371 = vmatpush1.bf16.msra.mxu0 %v9636_v4 }
 0x20e   : > { %v3008_v51 = vpop.f32.mrf.mxu0  ;;  %5372 = vmatprep.subr.bf16.mxu0 %v9644_v54 }
 0x20f   : > { %v3009_v59 = vadd.f32 %v3008_v51, %v2966_v20  ;;  %v3019_v55 = vmax.f32 %v3007_v44, 0.0 }
 0x210   : > { %v3010_v62 = vpop.f32.mrf.mxu0 }
 0x211   : > { %v3011_v8 = vadd.f32 %v3010_v62, %v2968_v7  ;;  %v3020_v19 = vmax.f32 %v3009_v59, 0.0  ;;  %v3031_v25 = vrot.slane %v3019_v55, 7  ;;  %v3067_v31 = vrot.slane %v3019_v55, 1  ;;  %5373 = vmatpush2.bf16.msra.mxu0 %v9642_v11  ;;  %v9662_v62 = vld [vmem:[%s13775_s7 + $0x84c] ss:$24 sps:$4 sm:$0xff]  }
 0x212   : > { %v3012_v14 = vpop.f32.mrf.mxu0  ;;  %5374 = vmatprep.subr.bf16.mxu0 %v9650_v16  ;;  %v3369_v7 = vpack.i.b16 %v3330_v21, %v3330_v21 }
 0x213   : > { %v3025_v12 = vmax.f32 %v3011_v8, 0.0  ;;  %v3013_v22 = vadd.f32 %v3012_v14, %v2970_v3  ;;  %v3032_v39 = vrot.slane %v3020_v19, 7  ;;  %v3068_v53 = vrot.slane %v3020_v19, 1 }
 0x215   : > { %v3037_v5 = vrot.slane %v3025_v12, 7  ;;  %v3073_v13 = vrot.slane %v3025_v12, 1  ;;  %v3026_v33 = vmax.f32 %v3013_v22, 0.0  ;;  %v3186_v46 = vpack.c.bf16 %v3025_v12, %v3019_v55  ;;  %5375 = vmatpush2.bf16.msra.mxu0 %v9648_v26  ;;  %v9668_v12 = vld [vmem:[%s13775_s7 + $0x81c] ss:$24 sps:$4 sm:$0xff]  }
 0x216   : > { %5376 = vmatprep.subr.bf16.mxu0 %v9656_v40  ;;  %v9688_v26 = vld [vmem:[%s13775_s7 + $0x458] ss:$24 sps:$4 sm:$0xff]  }
 0x217   : > { %v3043_v41 = vsel %vm516_vm1, %v3031_v25, %v3037_v5  ;;  %v3049_v42 = vsel %vm516_vm1, %v3037_v5, %v3031_v25  ;;  %v3085_v45 = vsel %vm557_vm3, %v3073_v13, %v3067_v31  ;;  %v3038_v47 = vrot.slane %v3026_v33, 7  ;;  %v9678_v40 = vld [vmem:[%s13775_s7 + $0x7b8] ss:$24 sps:$4 sm:$0xff]  }
 0x218   : > { %v3055_v35 = vsel %vm10568_vm0, %v3049_v42, 0.0  ;;  %v3079_v49 = vsel %vm557_vm3, %v3067_v31, %v3073_v13  ;;  %v3097_v20 = vsel %vm10582_vm2, %v3085_v45, 0.0  ;;  %v3074_v44 = vrot.slane %v3026_v33, 1  ;;  %v9674_v13 = vld [vmem:[%s13775_s7 + $0x7ec] ss:$24 sps:$4 sm:$0xff]  }
 0x219   : > { %v3105_v23 = vpack.c.bf16 %v3043_v41, %v3055_v35  ;;  %v3044_v4 = vsel %vm516_vm1, %v3032_v39, %v3038_v47  ;;  %v3050_v51 = vsel %vm516_vm1, %v3038_v47, %v3032_v39  ;;  %v3187_v52 = vpack.c.bf16 %v3026_v33, %v3020_v19  ;;  %5377 = vmatpush2.bf16.msra.mxu0 %v9654_v50  ;;  %v9694_v39 = vld [vmem:[%s13775_s7 + $0x428] ss:$24 sps:$4 sm:$0xff]   ;;  %v9702_v41 = vld [vmem:[%s13775_s7 + $0x3fc] ss:$24 sps:$4 sm:$0xff]   ;;  %v9686_v42 = vld [vmem:[%s13775_s7 + $0x78c] ss:$24 sps:$4 sm:$0xff]  }
 0x21a   : > { %v3056_v59 = vsel %vm10568_vm0, %v3050_v51, 0.0  ;;  %v3080_v61 = vsel %vm557_vm3, %v3068_v53, %v3074_v44  ;;  %v3086_v55 = vsel %vm557_vm3, %v3074_v44, %v3068_v53  ;;  %v3234_v63 = vmul.bf16 %v3222_v15, %v3186_v46  ;;  %5378 = vmatprep.subr.bf16.mxu0 %v9662_v62  ;;  %v9700_v45 = vld [vmem:[%s13775_s7 + $0x3f8] ss:$24 sps:$4 sm:$0xff]   ;;  %v9684_v53 = vld [vmem:[%s13775_s7 + $0x788] ss:$24 sps:$4 sm:$0xff]  }
 0x21b   : > { %v3180_v54 = vmul.bf16 %v3168_v9, %v3105_v23  ;;  %v3246_v2 = vpack.c.bf16 %v3097_v20, %v3079_v49  ;;  %v3106_v6 = vpack.c.bf16 %v3044_v4, %v3056_v59  ;;  %v3098_v3 = vsel %vm10582_vm2, %v3086_v55, 0.0  ;;  %v9708_v35 = vld [vmem:[%s13775_s7 + $0x3cc] ss:$24 sps:$4 sm:$0xff]   ;;  %v9706_v47 = vld [vmem:[%s13775_s7 + $0x3c8] ss:$24 sps:$4 sm:$0xff]  }
 0x21c   : > { %v3247_v8 = vpack.c.bf16 %v3098_v3, %v3080_v61  ;;  %v3235_v14 = vmul.bf16 %v3229_v10, %v3187_v52  ;;  %v3362_v19 = vpack.i.b16 %v3316_v38, %v3316_v38  ;;  %v3374_v25 = vrot.slane %v3369_v7, %v10593_v0  ;;  %v9666_v10 = vld [vmem:[%s13775_s7 + $0x818] ss:$24 sps:$4 sm:$0xff]   ;;  %v9680_v38 = vld [vmem:[%s13775_s7 + $0x7bc] ss:$24 sps:$4 sm:$0xff]   ;;  %v9720_v4 = vld [vmem:[%s13775_s7 + $0x36c] ss:$24 sps:$4 sm:$0xff]  }
 0x21d   : > { %v3240_v11 = vadd.bf16 %v3234_v63, %v3180_v54  ;;  %v3181_v16 = vmul.bf16 %v3175_v27, %v3106_v6  ;;  %v3276_v15 = vmul.bf16 %v3267_v43, %v3246_v2  ;;  %5379 = vmatpush2.bf16.msra.mxu0 %v9660_v37  ;;  %v9696_v43 = vld [vmem:[%s13775_s7 + $0x42c] ss:$24 sps:$4 sm:$0xff]   ;;  %v9691_v49 = vld [vmem:[%s13775_s7 + $0x460] ss:$24 sps:$4 sm:$0xff]   ;;  %v9714_v23 = vld [vmem:[%s13775_s7 + $0x39c] ss:$24 sps:$4 sm:$0xff]  }
 0x21e   : > { %v3277_v22 = vmul.bf16 %v3271_v34, %v3247_v8  ;;  %v3367_v27 = vrot.slane %v3362_v19, %v10593_v0  ;;  %5380 = vmatprep.subr.bf16.mxu0 %v9668_v12  ;;  %v9672_v34 = vld [vmem:[%s13775_s7 + $0x7e8] ss:$24 sps:$4 sm:$0xff]   ;;  %v9693_v46 = vld [vmem:[%s13775_s7 + $0x464] ss:$24 sps:$4 sm:$0xff]   ;;  %v9699_v20 = vld [vmem:[%s13775_s7 + $0x434] ss:$24 sps:$4 sm:$0xff]  }
 0x21f   : > { %v3241_v9 = vadd.bf16 %v3235_v14, %v3181_v16  ;;  %v3282_v5 = vadd.bf16 %v3276_v15, %v3240_v11  ;;  %v9712_v44 = vld [vmem:[%s13775_s7 + $0x398] ss:$24 sps:$4 sm:$0xff]   ;;  %v9705_v51 = vld [vmem:[%s13775_s7 + $0x404] ss:$24 sps:$4 sm:$0xff]   ;;  %v9718_v52 = vld [vmem:[%s13775_s7 + $0x368] ss:$24 sps:$4 sm:$0xff]  }
 0x220   : > { %v9697_v50 = vld [vmem:[%s13775_s7 + $0x430] ss:$24 sps:$4 sm:$0xff]   ;;  %v9726_v7 = vld [vmem:[%s13775_s7 + $0x33c] ss:$24 sps:$4 sm:$0xff]   ;;  %v9732_v55 = vld [vmem:[%s13775_s7 + $0x30c] ss:$24 sps:$4 sm:$0xff]  }
 0x221   : > { %v3283_v31 = vadd.bf16 %v3277_v22, %v3241_v9  ;;  %5381 = vmatpush2.bf16.msra.mxu0 %v9666_v10  ;;  %v12248_v21 = vadd.bf16 %v3367_v27, %v3282_v5  ;;  %v9711_v54 = vld [vmem:[%s13775_s7 + $0x3d4] ss:$24 sps:$4 sm:$0xff]   ;;  %v9724_v59 = vld [vmem:[%s13775_s7 + $0x338] ss:$24 sps:$4 sm:$0xff]   ;;  %v9717_v62 = vld [vmem:[%s13775_s7 + $0x3a4] ss:$24 sps:$4 sm:$0xff]  }
 0x222   : > { %5382 = vmatprep.subr.bf16.mxu0 %v9674_v13  ;;  %v9709_v61 = vld [vmem:[%s13775_s7 + $0x3d0] ss:$24 sps:$4 sm:$0xff]   ;;  %v9715_v2 = vld [vmem:[%s13775_s7 + $0x3a0] ss:$24 sps:$4 sm:$0xff]   ;;  %v9738_v6 = vld [vmem:[%s13775_s7 + $0x5dc] ss:$24 sps:$4 sm:$0xff]  }
 0x223   : > { %v12239_v33 = vadd.bf16 %v3374_v25, %v3283_v31  ;;  %v9730_v63 = vld [vmem:[%s13775_s7 + $0x308] ss:$24 sps:$4 sm:$0xff]   ;;  %v9723_v3 = vld [vmem:[%s13775_s7 + $0x374] ss:$24 sps:$4 sm:$0xff]   ;;  %v9736_v8 = vld [vmem:[%s13775_s7 + $0x5d8] ss:$24 sps:$4 sm:$0xff]  }
 0x224   : > { %v9721_v11 = vld [vmem:[%s13775_s7 + $0x370] ss:$24 sps:$4 sm:$0xff]   ;;  %v9744_v14 = vld [vmem:[%s13775_s7 + $0x5ac] ss:$24 sps:$4 sm:$0xff]   ;;  %v9727_v19 = vld [vmem:[%s13775_s7 + $0x340] ss:$24 sps:$4 sm:$0xff]  }
 0x225   : > { %5259 = vmatprep.mubr.bf16.mxu1 %v12239_v33  ;;  %5388 = vmatprep.mubr.bf16.mxu0 %v12239_v33  ;;  %v9729_v37 = vld [vmem:[%s13775_s7 + $0x344] ss:$24 sps:$4 sm:$0xff]   ;;  %v9742_v16 = vld [vmem:[%s13775_s7 + $0x5a8] ss:$24 sps:$4 sm:$0xff]   ;;  %v9735_v9 = vld [vmem:[%s13775_s7 + $0x314] ss:$24 sps:$4 sm:$0xff]  }
 0x226   : > { %5260 = vmatmul.mubr.bf16.vlgmr.msra.gmra.mxu1 %v12248_v21  ;;  %5383 = vmatpush2.bf16.msra.mxu0 %v9672_v34  ;;  %v9750_v12 = vld [vmem:[%s13775_s7 + $0x57c] ss:$24 sps:$4 sm:$0xff]   ;;  %v9748_v22 = vld [vmem:[%s13775_s7 + $0x578] ss:$24 sps:$4 sm:$0xff]   ;;  %v9756_v15 = vld [vmem:[%s13775_s7 + $0x54c] ss:$24 sps:$4 sm:$0xff]  }
 0x227   : > { %5314 = vmatpush1.bf16.msra.mxu1 %v9688_v26  ;;  %5345 = vmatprep.mubr.bf16.mxu1 %v11994_v30  ;;  %v9733_v25 = vld [vmem:[%s13775_s7 + $0x310] ss:$24 sps:$4 sm:$0xff]   ;;  %v9741_v10 = vld [vmem:[%s13775_s7 + $0x5e4] ss:$24 sps:$4 sm:$0xff]   ;;  %v9739_v5 = vld [vmem:[%s13775_s7 + $0x5e0] ss:$24 sps:$4 sm:$0xff]  }
 0x228   : > { %5315 = vmatprep.subr.bf16.mxu1 %v9696_v43  ;;  %5384 = vmatprep.subr.bf16.mxu0 %v9680_v38  ;;  %v9754_v31 = vld [vmem:[%s13775_s7 + $0x548] ss:$24 sps:$4 sm:$0xff]   ;;  %v9762_v27 = vld [vmem:[%s13775_s7 + $0x51c] ss:$24 sps:$4 sm:$0xff]   ;;  %v9760_v26 = vld [vmem:[%s13775_s7 + $0x518] ss:$24 sps:$4 sm:$0xff]  }
 0x229   : > { %v9747_v13 = vld [vmem:[%s13775_s7 + $0x5b4] ss:$24 sps:$4 sm:$0xff]   ;;  %v9745_v34 = vld [vmem:[%s13775_s7 + $0x5b0] ss:$24 sps:$4 sm:$0xff]   ;;  %v9753_v38 = vld [vmem:[%s13775_s7 + $0x584] ss:$24 sps:$4 sm:$0xff]  }
 0x22a   : > { %5385 = vmatpush2.bf16.msra.mxu0 %v9678_v40  ;;  %v9768_v43 = vld [vmem:[%s13775_s7 + $0x4ec] ss:$24 sps:$4 sm:$0xff]   ;;  %v9751_v40 = vld [vmem:[%s13775_s7 + $0x580] ss:$24 sps:$4 sm:$0xff]  }
 0x22b   : > { %5316 = vmatpush1.bf16.msra.mxu1 %v9694_v39  ;;  %5386 = vmatprep.subr.bf16.mxu0 %v9686_v42  ;;  %v9766_v39 = vld [vmem:[%s13775_s7 + $0x4e8] ss:$24 sps:$4 sm:$0xff]   ;;  %v9759_v42 = vld [vmem:[%s13775_s7 + $0x554] ss:$24 sps:$4 sm:$0xff]  }
 0x22c   : > { %5317 = vmatprep.subr.bf16.mxu1 %v9702_v41  ;;  %v9774_v41 = vld [vmem:[%s13775_s7 + $0x4bc] ss:$24 sps:$4 sm:$0xff]  }
 0x22e   : > { %5387 = vmatpush2.bf16.msra.mxu0 %v9684_v53  ;;  %v9757_v53 = vld [vmem:[%s13775_s7 + $0x550] ss:$24 sps:$4 sm:$0xff]  }
 0x22f   : > { %5318 = vmatpush1.bf16.msra.mxu1 %v9700_v45  ;;  %5442 = vmatprep.subr.bf16.mxu0 %v9693_v46  ;;  %v9772_v45 = vld [vmem:[%s13775_s7 + $0x4b8] ss:$24 sps:$4 sm:$0xff]   ;;  %v9765_v46 = vld [vmem:[%s13775_s7 + $0x524] ss:$24 sps:$4 sm:$0xff]  }
 0x230   : > { %5319 = vmatprep.subr.bf16.mxu1 %v9708_v35  ;;  %v9780_v35 = vld [vmem:[%s13775_s7 + $0x48c] ss:$24 sps:$4 sm:$0xff]  }
 0x231   : > { %5389 = vmatmul.mubr.bf16.vlgmr.msra.gmra.mxu0 %v12248_v21 }
 0x232   : > { %5443 = vmatpush1.bf16.msra.mxu0 %v9691_v49  ;;  %5474 = vmatprep.mubr.bf16.mxu0 %v11994_v30  ;;  %v9703_v30 = vld [vmem:[%s13775_s7 + $0x400] ss:$24 sps:$4 sm:$0xff]  }
 0x233   : > { %5320 = vmatpush1.bf16.msra.mxu1 %v9706_v47  ;;  %5444 = vmatprep.subr.bf16.mxu0 %v9699_v20  ;;  %v9778_v47 = vld [vmem:[%s13775_s7 + $0x488] ss:$24 sps:$4 sm:$0xff]   ;;  %v9786_v20 = vld [vmem:[%s13775_s7 + $0x164] ss:$24 sps:$4 sm:$0xff]  }
 0x234   : > { %5321 = vmatprep.subr.bf16.mxu1 %v9714_v23  ;;  %v9763_v49 = vld [vmem:[%s13775_s7 + $0x520] ss:$24 sps:$4 sm:$0xff]   ;;  %v9771_v23 = vld [vmem:[%s13775_s7 + $0x4f4] ss:$24 sps:$4 sm:$0xff]  }
 0x236   : > { %5445 = vmatpush1.bf16.msra.mxu0 %v9697_v50  ;;  %v9769_v50 = vld [vmem:[%s13775_s7 + $0x4f0] ss:$24 sps:$4 sm:$0xff]  }
 0x237   : > { %5322 = vmatpush1.bf16.msra.mxu1 %v9712_v44  ;;  %5446 = vmatprep.subr.bf16.mxu0 %v9705_v51  ;;  %v9784_v44 = vld [vmem:[%s13775_s7 + $0x160] ss:$24 sps:$4 sm:$0xff]   ;;  %v9777_v51 = vld [vmem:[%s13775_s7 + $0x4c4] ss:$24 sps:$4 sm:$0xff]  }
 0x238   : > { %5323 = vmatprep.subr.bf16.mxu1 %v9720_v4  ;;  %v9789_v4 = vld [vmem:[%s13775_s7 + $0x134] ss:$24 sps:$4 sm:$0xff]  }
 0x23a   : > { %5447 = vmatpush1.bf16.msra.mxu0 %v9703_v30  ;;  %v9775_v30 = vld [vmem:[%s13775_s7 + $0x4c0] ss:$24 sps:$4 sm:$0xff]  }
 0x23b   : > { %5324 = vmatpush1.bf16.msra.mxu1 %v9718_v52  ;;  %5448 = vmatprep.subr.bf16.mxu0 %v9711_v54  ;;  %v9787_v52 = vld [vmem:[%s13775_s7 + $0x130] ss:$24 sps:$4 sm:$0xff]   ;;  %v9783_v54 = vld [vmem:[%s13775_s7 + $0x494] ss:$24 sps:$4 sm:$0xff]  }
 0x23c   : > { %5325 = vmatprep.subr.bf16.mxu1 %v9726_v7  ;;  %v9792_v7 = vld [vmem:[%s13775_s7 + $0x104] ss:$24 sps:$4 sm:$0xff]  }
 0x23e   : > { %5449 = vmatpush1.bf16.msra.mxu0 %v9709_v61  ;;  %v9795_v61 = vld [vmem:[%s13775_s7 + $0xd4] ss:$24 sps:$4 sm:$0xff]  }
 0x23f   : > { %5326 = vmatpush1.bf16.msra.mxu1 %v9724_v59  ;;  %5450 = vmatprep.subr.bf16.mxu0 %v9717_v62  ;;  %v9781_v59 = vld [vmem:[%s13775_s7 + $0x490] ss:$24 sps:$4 sm:$0xff]  }
 0x240   : > { %5327 = vmatprep.subr.bf16.mxu1 %v9732_v55  ;;  %v9855_v55 = vld [vmem:[%s13779_s11 + $0x154] ss:$24 sps:$4 sm:$0xff]   ;;  %v9793_v62 = vld [vmem:[%s13775_s7 + $0xd0] ss:$24 sps:$4 sm:$0xff]  }
 0x242   : > { %5451 = vmatpush1.bf16.msra.mxu0 %v9715_v2  ;;  %v9853_v2 = vld [vmem:[%s13779_s11 + $0x150] ss:$24 sps:$4 sm:$0xff]  }
 0x243   : > { %5328 = vmatpush1.bf16.msra.mxu1 %v9730_v63  ;;  %5452 = vmatprep.subr.bf16.mxu0 %v9723_v3  ;;  %v9798_v63 = vld [vmem:[%s13775_s7 + $0xa4] ss:$24 sps:$4 sm:$0xff]   ;;  %v9796_v3 = vld [vmem:[%s13775_s7 + $0xa0] ss:$24 sps:$4 sm:$0xff]  }
 0x244   : > { %5329 = vmatprep.subr.bf16.mxu1 %v9738_v6  ;;  %v9861_v6 = vld [vmem:[%s13779_s11 + $0x124] ss:$24 sps:$4 sm:$0xff]  }
 0x246   : > { %5453 = vmatpush1.bf16.msra.mxu0 %v9721_v11  ;;  %v9859_v11 = vld [vmem:[%s13779_s11 + $0x120] ss:$24 sps:$4 sm:$0xff]  }
 0x247   : > { %5330 = vmatpush2.bf16.msra.mxu1 %v9736_v8  ;;  %5454 = vmatprep.subr.bf16.mxu0 %v9729_v37  ;;  %v9801_v8 = vld [vmem:[%s13775_s7 + $0x74] ss:$24 sps:$4 sm:$0xff]   ;;  %v9804_v37 = vld [vmem:[%s13775_s7 + $0x44] ss:$24 sps:$4 sm:$0xff]  }
 0x248   : > { %5331 = vmatprep.subr.bf16.mxu1 %v9744_v14  ;;  %v9799_v14 = vld [vmem:[%s13775_s7 + $0x70] ss:$24 sps:$4 sm:$0xff]  }
 0x24a   : > { %5455 = vmatpush1.bf16.msra.mxu0 %v9727_v19  ;;  %v9873_v19 = vld [vmem:[%s13779_s11 + $0xc4] ss:$24 sps:$4 sm:$0xff]  }
 0x24b   : > { %5332 = vmatpush2.bf16.msra.mxu1 %v9742_v16  ;;  %5456 = vmatprep.subr.bf16.mxu0 %v9735_v9  ;;  %v9865_v16 = vld [vmem:[%s13779_s11 + $0xf0] ss:$24 sps:$4 sm:$0xff]   ;;  %v9807_v9 = vld [vmem:[%s13775_s7 + $0x14] ss:$24 sps:$4 sm:$0xff]  }
 0x24c   : > { %5333 = vmatprep.subr.bf16.mxu1 %v9750_v12  ;;  %v9802_v12 = vld [vmem:[%s13775_s7 + $0x40] ss:$24 sps:$4 sm:$0xff]  }
 0x24e   : > { %5457 = vmatpush1.bf16.msra.mxu0 %v9733_v25  ;;  %v9879_v25 = vld [vmem:[%s13779_s11 + $0x94] ss:$24 sps:$4 sm:$0xff]  }
 0x24f   : > { %5334 = vmatpush2.bf16.msra.mxu1 %v9748_v22  ;;  %5458 = vmatprep.subr.bf16.mxu0 %v9741_v10  ;;  %v9871_v22 = vld [vmem:[%s13779_s11 + $0xc0] ss:$24 sps:$4 sm:$0xff]   ;;  %v9810_v10 = vld [vmem:[%s13775_s7 + $0x2e4] ss:$24 sps:$4 sm:$0xff]  }
 0x250   : > { %5335 = vmatprep.subr.bf16.mxu1 %v9756_v15  ;;  %v9805_v15 = vld [vmem:[%s13775_s7 + $0x10] ss:$24 sps:$4 sm:$0xff]  }
 0x252   : > { %5459 = vmatpush2.bf16.msra.mxu0 %v9739_v5  ;;  %v9885_v5 = vld [vmem:[%s13779_s11 + $0x64] ss:$24 sps:$4 sm:$0xff]  }
 0x253   : > { %5336 = vmatpush2.bf16.msra.mxu1 %v9754_v31  ;;  %5460 = vmatprep.subr.bf16.mxu0 %v9747_v13  ;;  %v9877_v31 = vld [vmem:[%s13779_s11 + $0x90] ss:$24 sps:$4 sm:$0xff]   ;;  %v9813_v13 = vld [vmem:[%s13775_s7 + $0x2b4] ss:$24 sps:$4 sm:$0xff]  }
 0x254   : > { %5337 = vmatprep.subr.bf16.mxu1 %v9762_v27  ;;  %v9808_v27 = vld [vmem:[%s13775_s7 + $0x2e0] ss:$24 sps:$4 sm:$0xff]  }
 0x256   : > { %5461 = vmatpush2.bf16.msra.mxu0 %v9745_v34  ;;  %v9891_v34 = vld [vmem:[%s13779_s11 + $0x34] ss:$24 sps:$4 sm:$0xff]  }
 0x257   : > { %5338 = vmatpush2.bf16.msra.mxu1 %v9760_v26  ;;  %5462 = vmatprep.subr.bf16.mxu0 %v9753_v38  ;;  %v9883_v26 = vld [vmem:[%s13779_s11 + $0x60] ss:$24 sps:$4 sm:$0xff]   ;;  %v9816_v38 = vld [vmem:[%s13775_s7 + $0x284] ss:$24 sps:$4 sm:$0xff]  }
 0x258   : > { %5339 = vmatprep.subr.bf16.mxu1 %v9768_v43  ;;  %v9811_v43 = vld [vmem:[%s13775_s7 + $0x2b0] ss:$24 sps:$4 sm:$0xff]  }
 0x25a   : > { %5463 = vmatpush2.bf16.msra.mxu0 %v9751_v40  ;;  %v9897_v40 = vld [vmem:[%s13779_s11 + $0x4] ss:$24 sps:$4 sm:$0xff]  }
 0x25b   : > { %5340 = vmatpush2.bf16.msra.mxu1 %v9766_v39  ;;  %5464 = vmatprep.subr.bf16.mxu0 %v9759_v42  ;;  %v9889_v39 = vld [vmem:[%s13779_s11 + $0x30] ss:$24 sps:$4 sm:$0xff]   ;;  %v9819_v42 = vld [vmem:[%s13775_s7 + $0x254] ss:$24 sps:$4 sm:$0xff]  }
 0x25c   : > { %5341 = vmatprep.subr.bf16.mxu1 %v9774_v41  ;;  %v9814_v41 = vld [vmem:[%s13775_s7 + $0x280] ss:$24 sps:$4 sm:$0xff]  }
 0x25e   : > { %5465 = vmatpush2.bf16.msra.mxu0 %v9757_v53  ;;  %v9903_v53 = vld [vmem:[%s13779_s11 + $0x2d4] ss:$24 sps:$4 sm:$0xff]  }
 0x25f   : > { %5342 = vmatpush2.bf16.msra.mxu1 %v9772_v45  ;;  %5466 = vmatprep.subr.bf16.mxu0 %v9765_v46  ;;  %v9895_v45 = vld [vmem:[%s13779_s11] ss:$24 sps:$4 sm:$0xff]   ;;  %v9822_v46 = vld [vmem:[%s13775_s7 + $0x224] ss:$24 sps:$4 sm:$0xff]  }
 0x260   : > { %5343 = vmatprep.subr.bf16.mxu1 %v9780_v35  ;;  %v9817_v35 = vld [vmem:[%s13775_s7 + $0x250] ss:$24 sps:$4 sm:$0xff]  }
 0x262   : > { %5467 = vmatpush2.bf16.msra.mxu0 %v9763_v49  ;;  %v9909_v49 = vld [vmem:[%s13779_s11 + $0x2a4] ss:$24 sps:$4 sm:$0xff]  }
 0x263   : > { %5344 = vmatpush2.bf16.msra.mxu1 %v9778_v47  ;;  %5468 = vmatprep.subr.bf16.mxu0 %v9771_v23  ;;  %v9901_v47 = vld [vmem:[%s13779_s11 + $0x2d0] ss:$24 sps:$4 sm:$0xff]   ;;  %v9825_v23 = vld [vmem:[%s13775_s7 + $0x1f4] ss:$24 sps:$4 sm:$0xff]  }
 0x264   : > { %5399 = vmatprep.subr.bf16.mxu1 %v9786_v20  ;;  %v9820_v20 = vld [vmem:[%s13775_s7 + $0x220] ss:$24 sps:$4 sm:$0xff]  }
 0x266   : > { %5346 = vmatmul.mubr.bf16.vlgmr.msra.gmra.mxu1 %v12005_v32  ;;  %5469 = vmatpush2.bf16.msra.mxu0 %v9769_v50  ;;  %v9912_v50 = vld [vmem:[%s13779_s11 + $0x274] ss:$24 sps:$4 sm:$0xff]  }
 0x267   : > { %5400 = vmatpush1.bf16.msra.mxu1 %v9784_v44  ;;  %5431 = vmatprep.mubr.bf16.mxu1 %v11788_v17  ;;  %v9790_v17 = vld [vmem:[%s13775_s7 + $0x100] ss:$24 sps:$4 sm:$0xff]  }
 0x268   : > { %5401 = vmatprep.subr.bf16.mxu1 %v9789_v4  ;;  %5470 = vmatprep.subr.bf16.mxu0 %v9777_v51  ;;  %v9907_v44 = vld [vmem:[%s13779_s11 + $0x2a0] ss:$24 sps:$4 sm:$0xff]   ;;  %v9823_v4 = vld [vmem:[%s13775_s7 + $0x1f0] ss:$24 sps:$4 sm:$0xff]   ;;  %v9828_v51 = vld [vmem:[%s13775_s7 + $0x1c4] ss:$24 sps:$4 sm:$0xff]  }
 0x26a   : > { %5471 = vmatpush2.bf16.msra.mxu0 %v9775_v30  ;;  %v9916_v30 = vld [vmem:[%s13779_s11 + $0x244] ss:$24 sps:$4 sm:$0xff]  }
 0x26b   : > { %5402 = vmatpush1.bf16.msra.mxu1 %v9787_v52  ;;  %5472 = vmatprep.subr.bf16.mxu0 %v9783_v54  ;;  %v9910_v52 = vld [vmem:[%s13779_s11 + $0x270] ss:$24 sps:$4 sm:$0xff]   ;;  %v9831_v54 = vld [vmem:[%s13775_s7 + $0x194] ss:$24 sps:$4 sm:$0xff]  }
 0x26c   : > { %5403 = vmatprep.subr.bf16.mxu1 %v9792_v7  ;;  %v9826_v7 = vld [vmem:[%s13775_s7 + $0x1c0] ss:$24 sps:$4 sm:$0xff]  }
 0x26e   : > { %5473 = vmatpush2.bf16.msra.mxu0 %v9781_v59  ;;  %v9919_v59 = vld [vmem:[%s13779_s11 + $0x214] ss:$24 sps:$4 sm:$0xff]  }
 0x26f   : > { %5404 = vmatpush1.bf16.msra.mxu1 %v9790_v17  ;;  %7654 = vmatprep.subr.bf16.mxu0 %v9855_v55  ;;  %v9914_v17 = vld [vmem:[%s13779_s11 + $0x240] ss:$24 sps:$4 sm:$0xff]   ;;  %v9834_v55 = vld [vmem:[%s13775_s7 + $0x764] ss:$24 sps:$4 sm:$0xff]  }
 0x270   : > { %5405 = vmatprep.subr.bf16.mxu1 %v9795_v61  ;;  %v9829_v61 = vld [vmem:[%s13775_s7 + $0x190] ss:$24 sps:$4 sm:$0xff]  }
 0x271   : > { %5475 = vmatmul.mubr.bf16.vlgmr.msra.gmra.mxu0 %v12005_v32  ;;  %v9867_v32 = vld [vmem:[%s13779_s11 + $0xf4] ss:$24 sps:$4 sm:$0xff]  }
 0x272   : > { %7655 = vmatpush1.bf16.msra.mxu0 %v9853_v2  ;;  %v9832_v2 = vld [vmem:[%s13775_s7 + $0x760] ss:$24 sps:$4 sm:$0xff]  }
 0x273   : > { %5406 = vmatpush1.bf16.msra.mxu1 %v9793_v62  ;;  %7656 = vmatprep.subr.bf16.mxu0 %v9861_v6  ;;  %v9917_v62 = vld [vmem:[%s13779_s11 + $0x210] ss:$24 sps:$4 sm:$0xff]   ;;  %v9837_v6 = vld [vmem:[%s13775_s7 + $0x734] ss:$24 sps:$4 sm:$0xff]  }
 0x274   : > { %5407 = vmatprep.subr.bf16.mxu1 %v9798_v63  ;;  %v9922_v63 = vld [vmem:[%s13779_s11 + $0x1e4] ss:$24 sps:$4 sm:$0xff]  }
 0x276   : > { %7657 = vmatpush1.bf16.msra.mxu0 %v9859_v11  ;;  %v9835_v11 = vld [vmem:[%s13775_s7 + $0x730] ss:$24 sps:$4 sm:$0xff]  }
 0x277   : > { %5408 = vmatpush1.bf16.msra.mxu1 %v9796_v3  ;;  %7658 = vmatprep.subr.bf16.mxu0 %v9867_v32  ;;  %v9920_v3 = vld [vmem:[%s13779_s11 + $0x1e0] ss:$24 sps:$4 sm:$0xff]   ;;  %v9840_v32 = vld [vmem:[%s13775_s7 + $0x704] ss:$24 sps:$4 sm:$0xff]  }
 0x278   : > { %5409 = vmatprep.subr.bf16.mxu1 %v9801_v8  ;;  %v9925_v8 = vld [vmem:[%s13779_s11 + $0x1b4] ss:$24 sps:$4 sm:$0xff]  }
 0x27a   : > { %7659 = vmatpush1.bf16.msra.mxu0 %v9865_v16  ;;  %v9926_v16 = vld [vmem:[%s13779_s11 + $0x180] ss:$24 sps:$4 sm:$0xff]  }
 0x27b   : > { %5410 = vmatpush1.bf16.msra.mxu1 %v9799_v14  ;;  %7660 = vmatprep.subr.bf16.mxu0 %v9873_v19  ;;  %v9923_v14 = vld [vmem:[%s13779_s11 + $0x1b0] ss:$24 sps:$4 sm:$0xff]  }
 0x27c   : > { %5411 = vmatprep.subr.bf16.mxu1 %v9804_v37  ;;  %v9843_v37 = vld [vmem:[%s13775_s7 + $0x6d4] ss:$24 sps:$4 sm:$0xff]   ;;  %v9841_v19 = vld [vmem:[%s13775_s7 + $0x6d0] ss:$24 sps:$4 sm:$0xff]  }
 0x27e   : > { %7661 = vmatpush1.bf16.msra.mxu0 %v9871_v22  ;;  %v9849_v22 = vld [vmem:[%s13775_s7 + $0x674] ss:$24 sps:$4 sm:$0xff]  }
 0x27f   : > { %5412 = vmatpush1.bf16.msra.mxu1 %v9802_v12  ;;  %7662 = vmatprep.subr.bf16.mxu0 %v9879_v25  ;;  %v9846_v12 = vld [vmem:[%s13775_s7 + $0x6a4] ss:$24 sps:$4 sm:$0xff]   ;;  %v9847_v25 = vld [vmem:[%s13775_s7 + $0x670] ss:$24 sps:$4 sm:$0xff]  }
 0x280   : > { %5413 = vmatprep.subr.bf16.mxu1 %v9807_v9  ;;  %v9844_v9 = vld [vmem:[%s13775_s7 + $0x6a0] ss:$24 sps:$4 sm:$0xff]  }
 0x282   : > { %7663 = vmatpush1.bf16.msra.mxu0 %v9877_v31  ;;  %v9858_v31 = vld [vmem:[%s13775_s7 + $0x614] ss:$24 sps:$4 sm:$0xff]  }
 0x283   : > { %5414 = vmatpush1.bf16.msra.mxu1 %v9805_v15  ;;  %7664 = vmatprep.subr.bf16.mxu0 %v9885_v5  ;;  %v9852_v15 = vld [vmem:[%s13775_s7 + $0x644] ss:$24 sps:$4 sm:$0xff]   ;;  %v9856_v5 = vld [vmem:[%s13775_s7 + $0x610] ss:$24 sps:$4 sm:$0xff]  }
 0x284   : > { %5415 = vmatprep.subr.bf16.mxu1 %v9810_v10  ;;  %v9850_v10 = vld [vmem:[%s13775_s7 + $0x640] ss:$24 sps:$4 sm:$0xff]  }
 0x286   : > { %7665 = vmatpush1.bf16.msra.mxu0 %v9883_v26  ;;  %v9870_v26 = vld [vmem:[%s13775_s7 + $0x8b4] ss:$24 sps:$4 sm:$0xff]  }
 0x287   : > { %5416 = vmatpush2.bf16.msra.mxu1 %v9808_v27  ;;  %7666 = vmatprep.subr.bf16.mxu0 %v9891_v34  ;;  %v9864_v27 = vld [vmem:[%s13775_s7 + $0x8e4] ss:$24 sps:$4 sm:$0xff]   ;;  %v9868_v34 = vld [vmem:[%s13775_s7 + $0x8b0] ss:$24 sps:$4 sm:$0xff]  }
 0x288   : > { %5417 = vmatprep.subr.bf16.mxu1 %v9813_v13  ;;  %v9862_v13 = vld [vmem:[%s13775_s7 + $0x8e0] ss:$24 sps:$4 sm:$0xff]  }
 0x28a   : > { %7667 = vmatpush1.bf16.msra.mxu0 %v9889_v39  ;;  %v9882_v39 = vld [vmem:[%s13775_s7 + $0x854] ss:$24 sps:$4 sm:$0xff]  }
 0x28b   : > { %5418 = vmatpush2.bf16.msra.mxu1 %v9811_v43  ;;  %7668 = vmatprep.subr.bf16.mxu0 %v9897_v40  ;;  %v9876_v43 = vld [vmem:[%s13775_s7 + $0x884] ss:$24 sps:$4 sm:$0xff]   ;;  %v9880_v40 = vld [vmem:[%s13775_s7 + $0x850] ss:$24 sps:$4 sm:$0xff]  }
 0x28c   : > { %5419 = vmatprep.subr.bf16.mxu1 %v9816_v38  ;;  %v9874_v38 = vld [vmem:[%s13775_s7 + $0x880] ss:$24 sps:$4 sm:$0xff]  }
 0x28e   : > { %7669 = vmatpush1.bf16.msra.mxu0 %v9895_v45  ;;  %v9894_v45 = vld [vmem:[%s13775_s7 + $0x7f4] ss:$24 sps:$4 sm:$0xff]  }
 0x28f   : > { %5420 = vmatpush2.bf16.msra.mxu1 %v9814_v41  ;;  %7670 = vmatprep.subr.bf16.mxu0 %v9903_v53  ;;  %v9888_v41 = vld [vmem:[%s13775_s7 + $0x824] ss:$24 sps:$4 sm:$0xff]   ;;  %v9892_v53 = vld [vmem:[%s13775_s7 + $0x7f0] ss:$24 sps:$4 sm:$0xff]  }
 0x290   : > { %5421 = vmatprep.subr.bf16.mxu1 %v9819_v42  ;;  %v9886_v42 = vld [vmem:[%s13775_s7 + $0x820] ss:$24 sps:$4 sm:$0xff]  }
 0x292   : > { %7671 = vmatpush2.bf16.msra.mxu0 %v9901_v47  ;;  %v9898_v47 = vld [vmem:[%s13775_s7 + $0x7c0] ss:$24 sps:$4 sm:$0xff]  }
 0x293   : > { %5422 = vmatpush2.bf16.msra.mxu1 %v9817_v35  ;;  %7672 = vmatprep.subr.bf16.mxu0 %v9909_v49  ;;  %v5175_v35 = vpop.f32.mrf.mxu1  ;;  %v12743_v49 = vld [vmem:[%s13776_s8] sm:$0x3f] }
 0x294   : > { %5423 = vmatprep.subr.bf16.mxu1 %v9822_v46  ;;  %v9900_v46 = vld [vmem:[%s13775_s7 + $0x7c4] ss:$24 sps:$4 sm:$0xff]  }
 0x296   : > { %7673 = vmatpush2.bf16.msra.mxu0 %v9907_v44  ;;  %v9906_v44 = vld [vmem:[%s13775_s7 + $0x794] ss:$24 sps:$4 sm:$0xff]  }
 0x297   : > { %5424 = vmatpush2.bf16.msra.mxu1 %v9820_v20  ;;  %7674 = vmatprep.subr.bf16.mxu0 %v9912_v50  ;;  %v5177_v20 = vpop.f32.mrf.mxu1  ;;  %v12751_v50 = vld [vmem:[%s13777_s9] sm:$0xff] }
 0x298   : > { %5425 = vmatprep.subr.bf16.mxu1 %v9825_v23  ;;  %v5218_v23 = vpop.f32.mrf.mxu0 }
 0x29a   : > { %7675 = vmatpush2.bf16.msra.mxu0 %v9910_v52  ;;  %v5179_v52 = vpop.f32.mrf.mxu1 }
 0x29b   : > { %5426 = vmatpush2.bf16.msra.mxu1 %v9823_v4  ;;  %7676 = vmatprep.subr.bf16.mxu0 %v9916_v30  ;;  %v3674_v4 = vrot.slane %v12743_v49, %v10593_v0  ;;  %v5220_v30 = vpop.f32.mrf.mxu0 }
 0x29c   : > { %5427 = vmatprep.subr.bf16.mxu1 %v9828_v51  ;;  %v9904_v51 = vld [vmem:[%s13775_s7 + $0x790] ss:$24 sps:$4 sm:$0xff]  }
 0x29e   : > { %7677 = vmatpush2.bf16.msra.mxu0 %v9914_v17  ;;  %v3678_v17 = vrot.slane %v12743_v49, %v10596_v1 }
 0x29f   : > { %5428 = vmatpush2.bf16.msra.mxu1 %v9826_v7  ;;  %7678 = vmatprep.subr.bf16.mxu0 %v9919_v59  ;;  %v5629_v7 = vrot.slane %v12751_v50, %v10574_v57  ;;  %v5176_v59 = vadd.f32 %v5175_v35, %v3674_v4 }
 0x2a0   : > { %5429 = vmatprep.subr.bf16.mxu1 %v9831_v54  ;;  %v9931_v54 = vld [vmem:[%s13779_s11 + $0x454] ss:$24 sps:$4 sm:$0xff]  }
 0x2a2   : > { %7679 = vmatpush2.bf16.msra.mxu0 %v9917_v62  ;;  %v5222_v62 = vpop.f32.mrf.mxu0 }
 0x2a3   : > { %5430 = vmatpush2.bf16.msra.mxu1 %v9829_v61  ;;  %7680 = vmatprep.subr.bf16.mxu0 %v9922_v63  ;;  %v9929_v61 = vld [vmem:[%s13779_s11 + $0x450] ss:$24 sps:$4 sm:$0xff]   ;;  %v5637_v63 = vcombine.high %v5629_v7, %v5629_v7 }
 0x2a4   : > { %5485 = vmatprep.subr.bf16.mxu1 %v9834_v55  ;;  %v5181_v55 = vpop.f32.mrf.mxu1 }
 0x2a6   : > { %5432 = vmatmul.mubr.bf16.vlgmr.msra.gmra.mxu1 %v11790_v48  ;;  %7681 = vmatpush2.bf16.msra.mxu0 %v9920_v3  ;;  %v9928_v48 = vld [vmem:[%s13779_s11 + $0x184] ss:$24 sps:$4 sm:$0xff]   ;;  %v5701_v3 = vshrl.u32 %v5629_v7, 16 }
 0x2a7   : > { %5486 = vmatpush1.bf16.msra.mxu1 %v9832_v2  ;;  %5517 = vmatprep.mubr.bf16.mxu1 %v12239_v33  ;;  %v9838_v33 = vld [vmem:[%s13775_s7 + $0x700] ss:$24 sps:$4 sm:$0xff]   ;;  %v9934_v2 = vld [vmem:[%s13779_s11 + $0x424] ss:$24 sps:$4 sm:$0xff]  }
 0x2a8   : > { %5487 = vmatprep.subr.bf16.mxu1 %v9837_v6  ;;  %7682 = vmatprep.subr.bf16.mxu0 %v9925_v8  ;;  %v5219_v6 = vadd.f32 %v5218_v23, %v5176_v59  ;;  %v12774_v8 = vld [vmem:[%s13778_s10] sm:$0x3f] }
 0x2aa   : > { %7683 = vmatpush2.bf16.msra.mxu0 %v9923_v14  ;;  %v5180_v14 = vadd.f32 %v5179_v52, %v3674_v4 }
 0x2ab   : > { %5488 = vmatpush1.bf16.msra.mxu1 %v9835_v11  ;;  %7684 = vmatprep.subr.bf16.mxu0 %v9928_v48  ;;  %v5178_v11 = vadd.f32 %v5177_v20, %v3678_v17 }
 0x2ac   : > { %5489 = vmatprep.subr.bf16.mxu1 %v9840_v32 }
 0x2ae   : > { %7685 = vmatpush2.bf16.msra.mxu0 %v9926_v16  ;;  %v5224_v16 = vpop.f32.mrf.mxu0 }
 0x2af   : > { %5490 = vmatpush1.bf16.msra.mxu1 %v9838_v33  ;;  %v9932_v33 = vld [vmem:[%s13779_s11 + $0x420] ss:$24 sps:$4 sm:$0xff]  }
 0x2b0   : > { %5491 = vmatprep.subr.bf16.mxu1 %v9843_v37  ;;  %v5221_v37 = vadd.f32 %v5220_v30, %v5178_v11  ;;  %v9938_v30 = vld [vmem:[%s13779_s11 + $0x3c0] ss:$24 sps:$4 sm:$0xff]  }
 0x2b3   : > { %5492 = vmatpush1.bf16.msra.mxu1 %v9841_v19 }
 0x2b4   : > { %5493 = vmatprep.subr.bf16.mxu1 %v9846_v12  ;;  %v5708_v12 = vshrl.u32 %v5637_v63, 16 }
 0x2b7   : > { %5494 = vmatpush1.bf16.msra.mxu1 %v9844_v9  ;;  %v5806_v9 = vrot.slane %v12774_v8, %v10577_v58 }
 0x2b8   : > { %5495 = vmatprep.subr.bf16.mxu1 %v9849_v22  ;;  %v5182_v22 = vadd.f32 %v5181_v55, %v3678_v17 }
 0x2b9   : > { %v12810_v59 = vrot.slane %v5806_v9, %v10577_v58 }
 0x2bb   : > { %5496 = vmatpush1.bf16.msra.mxu1 %v9847_v25  ;;  %v5223_v25 = vadd.f32 %v5222_v62, %v5180_v14 }
 0x2bc   : > { %5497 = vmatprep.subr.bf16.mxu1 %v9852_v15  ;;  %v12785_v15 = vpack.i.b16 %v5629_v7, %v5629_v7 }
 0x2be   : > { %v5764_v17 = vrot.slane %v12785_v15, %v10596_v1 }
 0x2bf   : > { %5498 = vmatpush1.bf16.msra.mxu1 %v9850_v10  ;;  %v5702_v10 = vpack.i.b16 %v5701_v3, %v5701_v3 }
 0x2c0   : > { %5499 = vmatprep.subr.bf16.mxu1 %v9858_v31 }
 0x2c3   : > { %5500 = vmatpush1.bf16.msra.mxu1 %v9856_v5 }
 0x2c4   : > { %5501 = vmatprep.subr.bf16.mxu1 %v9864_v27 }
 0x2c7   : > { %5502 = vmatpush2.bf16.msra.mxu1 %v9862_v13  ;;  %v12787_v13 = vpack.i.b16 %v5637_v63, %v5637_v63 }
 0x2c8   : > { %5503 = vmatprep.subr.bf16.mxu1 %v9870_v26  ;;  %v5225_v26 = vadd.f32 %v5224_v16, %v5182_v22  ;;  %v9941_v16 = vld [vmem:[%s13779_s11 + $0x390] ss:$24 sps:$4 sm:$0xff]   ;;  %v9946_v22 = vld [vmem:[%s13779_s11 + $0x364] ss:$24 sps:$4 sm:$0xff]  }
 0x2c9   : > { %v5660_v23 = vrot.slane %v12787_v13, %v10593_v0 }
 0x2cb   : > { %5504 = vmatpush2.bf16.msra.mxu1 %v9868_v34 }
 0x2cc   : > { %5505 = vmatprep.subr.bf16.mxu1 %v9876_v43  ;;  %v9935_v43 = vld [vmem:[%s13779_s11 + $0x3f0] ss:$24 sps:$4 sm:$0xff]  }
 0x2cf   : > { %5506 = vmatpush2.bf16.msra.mxu1 %v9874_v38 }
 0x2d0   : > { %5507 = vmatprep.subr.bf16.mxu1 %v9882_v39  ;;  %v5709_v39 = vpack.i.b16 %v5708_v12, %v5708_v12 }
 0x2d2   : > { %v5714_v7 = vrot.slane %v5709_v39, %v10593_v0  ;;  %v5847_v39 = vpack.i.b16 %v12810_v59, %v12810_v59 }
 0x2d3   : > { %5508 = vmatpush2.bf16.msra.mxu1 %v9880_v40  ;;  %v5814_v40 = vcombine.high %v5806_v9, %v5806_v9 }
 0x2d4   : > { %5509 = vmatprep.subr.bf16.mxu1 %v9888_v41  ;;  %v9940_v41 = vld [vmem:[%s13779_s11 + $0x3c4] ss:$24 sps:$4 sm:$0xff]  }
 0x2d7   : > { %5510 = vmatpush2.bf16.msra.mxu1 %v9886_v42 }
 0x2d8   : > { %5511 = vmatprep.subr.bf16.mxu1 %v9894_v45  ;;  %v5653_v45 = vrot.slane %v12785_v15, %v10593_v0 }
 0x2db   : > { %5512 = vmatpush2.bf16.msra.mxu1 %v9892_v53  ;;  %v5707_v53 = vrot.slane %v5702_v10, %v10593_v0 }
 0x2dc   : > { %5513 = vmatprep.subr.bf16.mxu1 %v9900_v46 }
 0x2df   : > { %5514 = vmatpush2.bf16.msra.mxu1 %v9898_v47 }
 0x2e0   : > { %5515 = vmatprep.subr.bf16.mxu1 %v9906_v44 }
 0x2e3   : > { %5516 = vmatpush2.bf16.msra.mxu1 %v9904_v51 }
 0x2e4   : > { %7697 = vmatprep.subr.bf16.mxu1 %v9931_v54  ;;  %v12805_v54 = vrot.slane %v5814_v40, %v10577_v58  ;;  %v9944_v40 = vld [vmem:[%s13779_s11 + $0x360] ss:$24 sps:$4 sm:$0xff]  }
 0x2e6   : > { %5518 = vmatmul.mubr.bf16.vlgmr.msra.gmra.mxu1 %v12248_v21  ;;  %v5261_v32 = vpop.f32.mrf.mxu1  ;;  %v9937_v21 = vld [vmem:[%s13779_s11 + $0x3f4] ss:$24 sps:$4 sm:$0xff]  }
 0x2e7   : > { %v5262_v48 = vadd.f32 %v5261_v32, %v5219_v6  ;;  %7698 = vmatpush1.bf16.msra.mxu1 %v9929_v61  ;;  %v9943_v61 = vld [vmem:[%s13779_s11 + $0x394] ss:$24 sps:$4 sm:$0xff]  }
 0x2e8   : > { %v5263_v19 = vpop.f32.mrf.mxu1  ;;  %7699 = vmatprep.subr.bf16.mxu1 %v9934_v2 }
 0x2e9   : > { %v5528_v31 = vmax.f32 %v5262_v48, 0.0  ;;  %v5264_v5 = vadd.f32 %v5263_v19, %v5221_v37 }
 0x2ea   : > { %v5265_v27 = vpop.f32.mrf.mxu1 }
 0x2eb   : > { %v5266_v34 = vadd.f32 %v5265_v27, %v5223_v25  ;;  %7700 = vmatpush1.bf16.msra.mxu1 %v9932_v33  ;;  %v5540_v46 = vrot.slane %v5528_v31, 7  ;;  %v5576_v47 = vrot.slane %v5528_v31, 1  ;;  %v5529_v20 = vmax.f32 %v5264_v5, 0.0 }
 0x2ec   : > { %v5267_v38 = vpop.f32.mrf.mxu1  ;;  %7701 = vmatprep.subr.bf16.mxu1 %v9937_v21 }
 0x2ed   : > { %v5534_v42 = vmax.f32 %v5266_v34, 0.0  ;;  %v5268_v35 = vadd.f32 %v5267_v38, %v5225_v26  ;;  %v5541_v6 = vrot.slane %v5529_v20, 7  ;;  %v5577_v14 = vrot.slane %v5529_v20, 1 }
 0x2ee   : > { %v5768_v26 = vrot.slane %v12787_v13, %v10596_v1  ;;  %v5854_v34 = vpack.i.b16 %v12805_v54, %v12805_v54  ;;  %v9949_v13 = vld [vmem:[%s13779_s11 + $0x334] ss:$24 sps:$4 sm:$0xff]  }
 0x2ef   : > { %v5546_v44 = vrot.slane %v5534_v42, 7  ;;  %v5582_v4 = vrot.slane %v5534_v42, 1  ;;  %v5695_v51 = vpack.c.bf16 %v5534_v42, %v5528_v31  ;;  %v5535_v52 = vmax.f32 %v5268_v35, 0.0  ;;  %7702 = vmatpush1.bf16.msra.mxu1 %v9935_v43 }
 0x2f0   : > { %7703 = vmatprep.subr.bf16.mxu1 %v9940_v41 }
 0x2f1   : > { %v5552_v55 = vsel %vm516_vm1, %v5540_v46, %v5546_v44  ;;  %v5558_v62 = vsel %vm516_vm1, %v5546_v44, %v5540_v46  ;;  %v5588_v63 = vsel %vm557_vm3, %v5576_v47, %v5582_v4  ;;  %v5594_v2 = vsel %vm557_vm3, %v5582_v4, %v5576_v47  ;;  %v9947_v44 = vld [vmem:[%s13779_s11 + $0x330] ss:$24 sps:$4 sm:$0xff]  }
 0x2f2   : > { %v5564_v3 = vsel %vm10568_vm0, %v5558_v62, 0.0  ;;  %v5606_v11 = vsel %vm10582_vm2, %v5594_v2, 0.0  ;;  %v5547_v32 = vrot.slane %v5535_v52, 7  ;;  %v5743_v33 = vmul.bf16 %v5707_v53, %v5695_v51  ;;  %v9958_v62 = vld [vmem:[%s13779_s11 + $0x5a4] ss:$24 sps:$4 sm:$0xff]  }
 0x2f3   : > { %v5614_v48 = vpack.c.bf16 %v5552_v55, %v5564_v3  ;;  %v5583_v37 = vrot.slane %v5535_v52, 1  ;;  %7704 = vmatpush1.bf16.msra.mxu1 %v9938_v30  ;;  %v5755_v19 = vpack.c.bf16 %v5606_v11, %v5588_v63  ;;  %v5696_v21 = vpack.c.bf16 %v5535_v52, %v5529_v20  ;;  %v9950_v30 = vld [vmem:[%s13779_s11 + $0x300] ss:$24 sps:$4 sm:$0xff]   ;;  %v9953_v55 = vld [vmem:[%s13779_s11 + $0x5d0] ss:$24 sps:$4 sm:$0xff]  }
 0x2f4   : > { %v5553_v12 = vsel %vm516_vm1, %v5541_v6, %v5547_v32  ;;  %v5559_v9 = vsel %vm516_vm1, %v5547_v32, %v5541_v6  ;;  %7705 = vmatprep.subr.bf16.mxu1 %v9943_v61  ;;  %v5859_v46 = vrot.slane %v5854_v34, %v10593_v0  ;;  %v5852_v20 = vrot.slane %v5847_v39, %v10593_v0  ;;  %v10027_v61 = vld [vmem:[%s13779_s11 + $0x754] ss:$24 sps:$4 sm:$0xff]   ;;  %v10031_v63 = vld [vmem:[%s13779_s11 + $0x720] ss:$24 sps:$4 sm:$0xff]   ;;  %v10033_v2 = vld [vmem:[%s13779_s11 + $0x724] ss:$24 sps:$4 sm:$0xff]  }
 0x2f5   : > { %v5689_v25 = vmul.bf16 %v5653_v45, %v5614_v48  ;;  %v5565_v15 = vsel %vm10568_vm0, %v5559_v9, 0.0  ;;  %v5589_v10 = vsel %vm557_vm3, %v5577_v14, %v5583_v37  ;;  %v5595_v31 = vsel %vm557_vm3, %v5583_v37, %v5577_v14  ;;  %7740 = vmatprep.subr.bf16.mxu0 %v10027_v61  ;;  %v9956_v6 = vld [vmem:[%s13779_s11 + $0x5a0] ss:$24 sps:$4 sm:$0xff]   ;;  %v9961_v3 = vld [vmem:[%s13779_s11 + $0x574] ss:$24 sps:$4 sm:$0xff]  }
 0x2f6   : > { %v5615_v5 = vpack.c.bf16 %v5553_v12, %v5565_v15  ;;  %v5607_v27 = vsel %vm10582_vm2, %v5595_v31, 0.0  ;;  %v5744_v41 = vmul.bf16 %v5714_v7, %v5696_v21  ;;  %v5785_v45 = vmul.bf16 %v5764_v17, %v5755_v19  ;;  %v9955_v7 = vld [vmem:[%s13779_s11 + $0x5d4] ss:$24 sps:$4 sm:$0xff]   ;;  %v10025_v17 = vld [vmem:[%s13779_s11 + $0x750] ss:$24 sps:$4 sm:$0xff]  }
 0x2f7   : > { %v5749_v43 = vadd.bf16 %v5743_v33, %v5689_v25  ;;  %v5756_v38 = vpack.c.bf16 %v5607_v27, %v5589_v10  ;;  %7706 = vmatpush1.bf16.msra.mxu1 %v9941_v16  ;;  %v10037_v11 = vld [vmem:[%s13779_s11 + $0x6f0] ss:$24 sps:$4 sm:$0xff]   ;;  %v10039_v32 = vld [vmem:[%s13779_s11 + $0x6f4] ss:$24 sps:$4 sm:$0xff]   ;;  %v9964_v48 = vld [vmem:[%s13779_s11 + $0x544] ss:$24 sps:$4 sm:$0xff]   ;;  %v5304_v10 = vpop.f32.mrf.mxu0 }
 0x2f8   : > { %v5690_v42 = vmul.bf16 %v5660_v23, %v5615_v5  ;;  %7707 = vmatprep.subr.bf16.mxu1 %v9946_v22  ;;  %v9952_v23 = vld [vmem:[%s13779_s11 + $0x304] ss:$24 sps:$4 sm:$0xff]   ;;  %v9959_v14 = vld [vmem:[%s13779_s11 + $0x570] ss:$24 sps:$4 sm:$0xff]   ;;  %v10043_v33 = vld [vmem:[%s13779_s11 + $0x6c0] ss:$24 sps:$4 sm:$0xff]  }
 0x2f9   : > { %v5786_v35 = vmul.bf16 %v5768_v26, %v5756_v38  ;;  %v5791_v47 = vadd.bf16 %v5785_v45, %v5749_v43  ;;  %v10045_v37 = vld [vmem:[%s13779_s11 + $0x6c4] ss:$24 sps:$4 sm:$0xff]   ;;  %v9962_v16 = vld [vmem:[%s13779_s11 + $0x540] ss:$24 sps:$4 sm:$0xff]   ;;  %v9967_v19 = vld [vmem:[%s13779_s11 + $0x514] ss:$24 sps:$4 sm:$0xff]   ;;  %v5306_v34 = vpop.f32.mrf.mxu0  ;;  %v5622_v38 = vcombine.high %v12751_v50, %v12751_v50 }
 0x2fa   : > { %v5750_v53 = vadd.bf16 %v5744_v41, %v5690_v42  ;;  %v10049_v12 = vld [vmem:[%s13779_s11 + $0x690] ss:$24 sps:$4 sm:$0xff]   ;;  %v10051_v9 = vld [vmem:[%s13779_s11 + $0x694] ss:$24 sps:$4 sm:$0xff]   ;;  %v9970_v22 = vld [vmem:[%s13779_s11 + $0x4e4] ss:$24 sps:$4 sm:$0xff]  }
 0x2fb   : > { %7708 = vmatpush1.bf16.msra.mxu1 %v9944_v40  ;;  %v12867_v52 = vadd.bf16 %v5852_v20, %v5791_v47  ;;  %v9965_v21 = vld [vmem:[%s13779_s11 + $0x510] ss:$24 sps:$4 sm:$0xff]   ;;  %v10055_v25 = vld [vmem:[%s13779_s11 + $0x660] ss:$24 sps:$4 sm:$0xff]   ;;  %v10057_v15 = vld [vmem:[%s13779_s11 + $0x664] ss:$24 sps:$4 sm:$0xff]   ;;  %v5308_v42 = vpop.f32.mrf.mxu0 }
 0x2fc   : > { %v5792_v4 = vadd.bf16 %v5786_v35, %v5750_v53  ;;  %7709 = vmatprep.subr.bf16.mxu1 %v9949_v13  ;;  %v9968_v31 = vld [vmem:[%s13779_s11 + $0x4e0] ss:$24 sps:$4 sm:$0xff]   ;;  %v9973_v5 = vld [vmem:[%s13779_s11 + $0x4b4] ss:$24 sps:$4 sm:$0xff]   ;;  %v10061_v27 = vld [vmem:[%s13779_s11 + $0x630] ss:$24 sps:$4 sm:$0xff]   ;;  %v5636_v13 = vrot.slane %v5622_v38, %v10574_v57  ;;  %v3686_v57 = vrot.slane %v12743_v49, %v11891_v29 }
 0x2fd   : > { %v10063_v26 = vld [vmem:[%s13779_s11 + $0x634] ss:$24 sps:$4 sm:$0xff]   ;;  %v9971_v43 = vld [vmem:[%s13779_s11 + $0x4b0] ss:$24 sps:$4 sm:$0xff]   ;;  %v9976_v39 = vld [vmem:[%s13779_s11 + $0x484] ss:$24 sps:$4 sm:$0xff]   ;;  %v5310_v47 = vpop.f32.mrf.mxu0 }
 0x2fe   : > { %v12865_v51 = vadd.bf16 %v5859_v46, %v5792_v4  ;;  %v10067_v40 = vld [vmem:[%s13779_s11 + $0x600] ss:$24 sps:$4 sm:$0xff]   ;;  %v10069_v41 = vld [vmem:[%s13779_s11 + $0x604] ss:$24 sps:$4 sm:$0xff]   ;;  %v10073_v53 = vld [vmem:[%s13779_s11 + $0x8d0] ss:$24 sps:$4 sm:$0xff]   ;;  %v3682_v46 = vrot.slane %v12743_v49, %v11888_v28 }
 0x2ff   : > { %7710 = vmatpush1.bf16.msra.mxu1 %v9947_v44  ;;  %v9974_v50 = vld [vmem:[%s13779_s11 + $0x480] ss:$24 sps:$4 sm:$0xff]   ;;  %v9979_v45 = vld [vmem:[%s13779_s11 + $0x15c] ss:$24 sps:$4 sm:$0xff]   ;;  %v5390_v20 = vpop.f32.mrf.mxu0  ;;  %v5638_v44 = vcombine.high %v5636_v13, %v5636_v13 }
 0x300   : > { %7686 = vmatprep.mubr.bf16.mxu0 %v12865_v51  ;;  %7711 = vmatprep.subr.bf16.mxu1 %v9952_v23  ;;  %v10075_v35 = vld [vmem:[%s13779_s11 + $0x8d4] ss:$24 sps:$4 sm:$0xff]   ;;  %v10079_v4 = vld [vmem:[%s13779_s11 + $0x8a0] ss:$24 sps:$4 sm:$0xff]   ;;  %v10081_v23 = vld [vmem:[%s13779_s11 + $0x8a4] ss:$24 sps:$4 sm:$0xff]  }
 0x301   : > { %7687 = vmatmul.mubr.bf16.vlgmr.msra.gmra.mxu0 %v12867_v52  ;;  %v5392_v61 = vpop.f32.mrf.mxu0 }
 0x302   : > { %7741 = vmatpush1.bf16.msra.mxu0 %v10025_v17  ;;  %v5307_v17 = vadd.f32 %v5306_v34, %v3686_v57 }
 0x303   : > { %7712 = vmatpush1.bf16.msra.mxu1 %v9950_v30  ;;  %7742 = vmatprep.subr.bf16.mxu0 %v10033_v2  ;;  %v5305_v30 = vadd.f32 %v5304_v10, %v3682_v46  ;;  %v5722_v2 = vshrl.u32 %v5638_v44, 16 }
 0x304   : > { %7713 = vmatprep.subr.bf16.mxu1 %v9955_v7 }
 0x306   : > { %7743 = vmatpush1.bf16.msra.mxu0 %v10031_v63 }
 0x307   : > { %7714 = vmatpush2.bf16.msra.mxu1 %v9953_v55  ;;  %7744 = vmatprep.subr.bf16.mxu0 %v10039_v32 }
 0x308   : > { %7715 = vmatprep.subr.bf16.mxu1 %v9958_v62  ;;  %v5715_v62 = vshrl.u32 %v5636_v13, 16 }
 0x30a   : > { %7745 = vmatpush1.bf16.msra.mxu0 %v10037_v11 }
 0x30b   : > { %7716 = vmatpush2.bf16.msra.mxu1 %v9956_v6  ;;  %7746 = vmatprep.subr.bf16.mxu0 %v10045_v37  ;;  %v5309_v6 = vadd.f32 %v5308_v42, %v3682_v46  ;;  %v5716_v37 = vpack.i.b16 %v5715_v62, %v5715_v62  ;;  %v5844_v42 = vcombine.high %v12810_v59, %v12810_v59 }
 0x30c   : > { %7717 = vmatprep.subr.bf16.mxu1 %v9961_v3 }
 0x30d   : > { %v5721_v34 = vrot.slane %v5716_v37, %v10593_v0  ;;  %v5861_v62 = vpack.i.b16 %v5844_v42, %v5844_v42 }
 0x30e   : > { %7747 = vmatpush1.bf16.msra.mxu0 %v10043_v33 }
 0x30f   : > { %7718 = vmatpush2.bf16.msra.mxu1 %v9959_v14  ;;  %7748 = vmatprep.subr.bf16.mxu0 %v10051_v9  ;;  %v5394_v14 = vpop.f32.mrf.mxu0  ;;  %v5311_v9 = vadd.f32 %v5310_v47, %v3686_v57 }
 0x310   : > { %7719 = vmatprep.subr.bf16.mxu1 %v9964_v48 }
 0x312   : > { %7749 = vmatpush1.bf16.msra.mxu0 %v10049_v12  ;;  %v10087_v12 = vld [vmem:[%s13779_s11 + $0x874] ss:$24 sps:$4 sm:$0xff]  }
 0x313   : > { %7720 = vmatpush2.bf16.msra.mxu1 %v9962_v16  ;;  %7750 = vmatprep.subr.bf16.mxu0 %v10057_v15  ;;  %v12992_v16 = vpack.i.b16 %v5638_v44, %v5638_v44 }
 0x314   : > { %7721 = vmatprep.subr.bf16.mxu1 %v9967_v19  ;;  %v10085_v19 = vld [vmem:[%s13779_s11 + $0x870] ss:$24 sps:$4 sm:$0xff]  }
 0x315   : > { %v5776_v38 = vrot.slane %v12992_v16, %v10596_v1 }
 0x316   : > { %7751 = vmatpush1.bf16.msra.mxu0 %v10055_v25 }
 0x317   : > { %7722 = vmatpush2.bf16.msra.mxu1 %v9965_v21  ;;  %7752 = vmatprep.subr.bf16.mxu0 %v10063_v26 }
 0x318   : > { %7723 = vmatprep.subr.bf16.mxu1 %v9970_v22  ;;  %v5723_v22 = vpack.i.b16 %v5722_v2, %v5722_v2 }
 0x31a   : > { %7753 = vmatpush1.bf16.msra.mxu0 %v10061_v27  ;;  %v5396_v27 = vpop.f32.mrf.mxu0 }
 0x31b   : > { %7724 = vmatpush2.bf16.msra.mxu1 %v9968_v31  ;;  %7754 = vmatprep.subr.bf16.mxu0 %v10069_v41  ;;  %v5845_v41 = vcombine.high %v12805_v54, %v12805_v54 }
 0x31c   : > { %7725 = vmatprep.subr.bf16.mxu1 %v9973_v5  ;;  %v5662_v5 = vpack.i.b16 %v5636_v13, %v5636_v13 }
 0x31d   : > { %v5868_v37 = vpack.i.b16 %v5845_v41, %v5845_v41 }
 0x31e   : > { %7755 = vmatpush1.bf16.msra.mxu0 %v10067_v40  ;;  %v5728_v40 = vrot.slane %v5723_v22, %v10593_v0  ;;  %v5667_v47 = vrot.slane %v5662_v5, %v10593_v0  ;;  %v5772_v57 = vrot.slane %v5662_v5, %v10596_v1  ;;  %v10099_v22 = vld [vmem:[%s13779_s11 + $0x814] ss:$24 sps:$4 sm:$0xff]  }
 0x31f   : > { %7726 = vmatpush2.bf16.msra.mxu1 %v9971_v43  ;;  %7756 = vmatprep.subr.bf16.mxu0 %v10075_v35  ;;  %v5674_v43 = vrot.slane %v12992_v16, %v10593_v0  ;;  %v5873_v41 = vrot.slane %v5868_v37, %v10593_v0  ;;  %v10015_v37 = vld [vmem:[%s13779_s11 + $0x21c] ss:$24 sps:$4 sm:$0xff]  }
 0x320   : > { %7727 = vmatprep.subr.bf16.mxu1 %v9976_v39 }
 0x322   : > { %7757 = vmatpush2.bf16.msra.mxu0 %v10073_v53 }
 0x323   : > { %7728 = vmatpush2.bf16.msra.mxu1 %v9974_v50  ;;  %7758 = vmatprep.subr.bf16.mxu0 %v10081_v23 }
 0x324   : > { %7783 = vmatprep.subr.bf16.mxu1 %v9979_v45 }
 0x326   : > { %v5347_v7 = vpop.f32.mrf.mxu1  ;;  %7759 = vmatpush2.bf16.msra.mxu0 %v10079_v4 }
 0x327   : > { %v5348_v55 = vadd.f32 %v5347_v7, %v5305_v30  ;;  %7760 = vmatprep.subr.bf16.mxu0 %v10087_v12 }
 0x328   : > { %v5349_v63 = vpop.f32.mrf.mxu1 }
 0x329   : > { %v5391_v3 = vadd.f32 %v5390_v20, %v5348_v55  ;;  %v5350_v11 = vadd.f32 %v5349_v63, %v5307_v17  ;;  %v10093_v63 = vld [vmem:[%s13779_s11 + $0x844] ss:$24 sps:$4 sm:$0xff]  }
 0x32a   : > { %v5351_v32 = vpop.f32.mrf.mxu1  ;;  %7761 = vmatpush2.bf16.msra.mxu0 %v10085_v19 }
 0x32b   : > { %v5393_v48 = vadd.f32 %v5392_v61, %v5350_v11  ;;  %v5352_v33 = vadd.f32 %v5351_v32, %v5309_v6  ;;  %v5530_v25 = vmax.f32 %v5391_v3, 0.0  ;;  %v10091_v32 = vld [vmem:[%s13779_s11 + $0x840] ss:$24 sps:$4 sm:$0xff]   ;;  %7762 = vmatprep.subr.bf16.mxu0 %v10093_v63 }
 0x32c   : > { %v5353_v21 = vpop.f32.mrf.mxu1  ;;  %v9998_v63 = vld [vmem:[%s13779_s11 + $0x8] ss:$24 sps:$4 sm:$0xff]  }
 0x32d   : > { %v5395_v15 = vadd.f32 %v5394_v14, %v5352_v33  ;;  %v5531_v10 = vmax.f32 %v5393_v48, 0.0  ;;  %v5354_v31 = vadd.f32 %v5353_v21, %v5311_v9  ;;  %v5542_v50 = vrot.slane %v5530_v25, 7  ;;  %v10097_v21 = vld [vmem:[%s13779_s11 + $0x810] ss:$24 sps:$4 sm:$0xff]  }
 0x32e   : > { %v5578_v13 = vrot.slane %v5530_v25, 1  ;;  %7763 = vmatpush2.bf16.msra.mxu0 %v10091_v32  ;;  %v10009_v32 = vld [vmem:[%s13779_s11 + $0x27c] ss:$24 sps:$4 sm:$0xff]  }
 0x32f   : > { %v5536_v26 = vmax.f32 %v5395_v15, 0.0  ;;  %v5397_v39 = vadd.f32 %v5396_v27, %v5354_v31  ;;  %v5543_v35 = vrot.slane %v5531_v10, 7  ;;  %v5579_v17 = vrot.slane %v5531_v10, 1  ;;  %7764 = vmatprep.subr.bf16.mxu0 %v10099_v22  ;;  %v10024_v22 = vld [vmem:[%s13779_s11 + $0x18c] ss:$24 sps:$4 sm:$0xff]  }
 0x330   : > { %v5866_v15 = vrot.slane %v5861_v62, %v10593_v0  ;;  %v10000_v62 = vld [vmem:[%s13779_s11 + $0xc] ss:$24 sps:$4 sm:$0xff]  }
 0x331   : > { %v5548_v45 = vrot.slane %v5536_v26, 7  ;;  %v5584_v53 = vrot.slane %v5536_v26, 1  ;;  %v5537_v46 = vmax.f32 %v5397_v39, 0.0  ;;  %v5697_v30 = vpack.c.bf16 %v5536_v26, %v5530_v25  ;;  %v10105_v26 = vld [vmem:[%s13779_s11 + $0x7e4] ss:$24 sps:$4 sm:$0xff]  }
 0x332   : > { %7765 = vmatpush2.bf16.msra.mxu0 %v10097_v21  ;;  %v10019_v21 = vld [vmem:[%s13779_s11 + $0x1b8] ss:$24 sps:$4 sm:$0xff]  }
 0x333   : > { %v5554_v20 = vsel %vm516_vm1, %v5542_v50, %v5548_v45  ;;  %v5560_v44 = vsel %vm516_vm1, %v5548_v45, %v5542_v50  ;;  %v5590_v54 = vsel %vm557_vm3, %v5578_v13, %v5584_v53  ;;  %v5596_v59 = vsel %vm557_vm3, %v5584_v53, %v5578_v13  ;;  %v10103_v50 = vld [vmem:[%s13779_s11 + $0x7e0] ss:$24 sps:$4 sm:$0xff]   ;;  %7766 = vmatprep.subr.bf16.mxu0 %v10105_v26  ;;  %v9982_v53 = vld [vmem:[%s13779_s11 + $0x12c] ss:$24 sps:$4 sm:$0xff]  }
 0x334   : > { %v5566_v4 = vsel %vm10568_vm0, %v5560_v44, 0.0  ;;  %v5608_v23 = vsel %vm10582_vm2, %v5596_v59, 0.0  ;;  %v5549_v7 = vrot.slane %v5537_v46, 7  ;;  %v5585_v55 = vrot.slane %v5537_v46, 1  ;;  %v10124_v44 = vld [vmem:[%s13779_s11 + $0x45c] ss:$24 sps:$4 sm:$0xff]  }
 0x335   : > { %v5616_v61 = vpack.c.bf16 %v5554_v20, %v5566_v4  ;;  %v5757_v2 = vpack.c.bf16 %v5608_v23, %v5590_v54  ;;  %v5698_v11 = vpack.c.bf16 %v5537_v46, %v5531_v10  ;;  %v5745_v16 = vmul.bf16 %v5721_v34, %v5697_v30  ;;  %v10117_v46 = vld [vmem:[%s13779_s11 + $0x784] ss:$24 sps:$4 sm:$0xff]   ;;  %v10115_v20 = vld [vmem:[%s13779_s11 + $0x780] ss:$24 sps:$4 sm:$0xff]  }
 0x336   : > { %v5555_v6 = vsel %vm516_vm1, %v5543_v35, %v5549_v7  ;;  %v5561_v3 = vsel %vm516_vm1, %v5549_v7, %v5543_v35  ;;  %v5591_v48 = vsel %vm557_vm3, %v5579_v17, %v5585_v55  ;;  %v5597_v33 = vsel %vm557_vm3, %v5585_v55, %v5579_v17  ;;  %7767 = vmatpush2.bf16.msra.mxu0 %v10103_v50  ;;  %v10109_v35 = vld [vmem:[%s13779_s11 + $0x7b0] ss:$24 sps:$4 sm:$0xff]   ;;  %v9988_v59 = vld [vmem:[%s13779_s11 + $0xcc] ss:$24 sps:$4 sm:$0xff]   ;;  %v9991_v23 = vld [vmem:[%s13779_s11 + $0x9c] ss:$24 sps:$4 sm:$0xff]  }
 0x337   : > { %v5567_v14 = vsel %vm10568_vm0, %v5561_v3, 0.0  ;;  %v5609_v19 = vsel %vm10582_vm2, %v5597_v33, 0.0  ;;  %v5691_v9 = vmul.bf16 %v5667_v47, %v5616_v61  ;;  %v5746_v10 = vmul.bf16 %v5728_v40, %v5698_v11  ;;  %v9980_v47 = vld [vmem:[%s13779_s11 + $0x128] ss:$24 sps:$4 sm:$0xff]   ;;  %v9983_v54 = vld [vmem:[%s13779_s11 + $0xf8] ss:$24 sps:$4 sm:$0xff]  }
 0x338   : > { %v5617_v12 = vpack.c.bf16 %v5555_v6, %v5567_v14  ;;  %v5758_v25 = vpack.c.bf16 %v5609_v19, %v5591_v48  ;;  %v5787_v27 = vmul.bf16 %v5772_v57, %v5757_v2  ;;  %v9985_v57 = vld [vmem:[%s13779_s11 + $0xfc] ss:$24 sps:$4 sm:$0xff]   ;;  %v9986_v4 = vld [vmem:[%s13779_s11 + $0xc8] ss:$24 sps:$4 sm:$0xff]   ;;  %v9989_v30 = vld [vmem:[%s13779_s11 + $0x98] ss:$24 sps:$4 sm:$0xff]  }
 0x339   : > { %v5751_v5 = vadd.bf16 %v5745_v16, %v5691_v9  ;;  %v9994_v7 = vld [vmem:[%s13779_s11 + $0x6c] ss:$24 sps:$4 sm:$0xff]   ;;  %v9992_v17 = vld [vmem:[%s13779_s11 + $0x68] ss:$24 sps:$4 sm:$0xff]   ;;  %v9997_v61 = vld [vmem:[%s13779_s11 + $0x3c] ss:$24 sps:$4 sm:$0xff]  }
 0x33a   : > { %v5692_v31 = vmul.bf16 %v5674_v43, %v5617_v12  ;;  %v5788_v39 = vmul.bf16 %v5776_v38, %v5758_v25  ;;  %v10111_v43 = vld [vmem:[%s13779_s11 + $0x7b4] ss:$24 sps:$4 sm:$0xff]   ;;  %v9977_v38 = vld [vmem:[%s13779_s11 + $0x158] ss:$24 sps:$4 sm:$0xff]   ;;  %v10004_v11 = vld [vmem:[%s13779_s11 + $0x2a8] ss:$24 sps:$4 sm:$0xff]  }
 0x33b   : > { %v5793_v42 = vadd.bf16 %v5787_v27, %v5751_v5  ;;  %7768 = vmatprep.subr.bf16.mxu0 %v10111_v43  ;;  %v9995_v55 = vld [vmem:[%s13779_s11 + $0x38] ss:$24 sps:$4 sm:$0xff]   ;;  %v10003_v2 = vld [vmem:[%s13779_s11 + $0x2dc] ss:$24 sps:$4 sm:$0xff]   ;;  %v10006_v3 = vld [vmem:[%s13779_s11 + $0x2ac] ss:$24 sps:$4 sm:$0xff]  }
 0x33c   : > { %v5752_v34 = vadd.bf16 %v5746_v10, %v5692_v31  ;;  %7769 = vmatpush2.bf16.msra.mxu0 %v10109_v35  ;;  %v10001_v6 = vld [vmem:[%s13779_s11 + $0x2d8] ss:$24 sps:$4 sm:$0xff]   ;;  %v10012_v48 = vld [vmem:[%s13779_s11 + $0x24c] ss:$24 sps:$4 sm:$0xff]   ;;  %v10010_v33 = vld [vmem:[%s13779_s11 + $0x248] ss:$24 sps:$4 sm:$0xff]  }
 0x33d   : > { %v13059_v13 = vadd.bf16 %v5866_v15, %v5793_v42  ;;  %7770 = vmatprep.subr.bf16.mxu0 %v10117_v46  ;;  %v10007_v14 = vld [vmem:[%s13779_s11 + $0x278] ss:$24 sps:$4 sm:$0xff]   ;;  %v10018_v19 = vld [vmem:[%s13779_s11 + $0x1ec] ss:$24 sps:$4 sm:$0xff]   ;;  %v10016_v12 = vld [vmem:[%s13779_s11 + $0x1e8] ss:$24 sps:$4 sm:$0xff]  }
 0x33e   : > { %v5794_v40 = vadd.bf16 %v5788_v39, %v5752_v34  ;;  %v10013_v16 = vld [vmem:[%s13779_s11 + $0x218] ss:$24 sps:$4 sm:$0xff]   ;;  %v10021_v9 = vld [vmem:[%s13779_s11 + $0x1bc] ss:$24 sps:$4 sm:$0xff]   ;;  %v10022_v25 = vld [vmem:[%s13779_s11 + $0x188] ss:$24 sps:$4 sm:$0xff]  }
 0x33f   : > { %v10030_v15 = vld [vmem:[%s13779_s11 + $0x75c] ss:$24 sps:$4 sm:$0xff]   ;;  %v10028_v10 = vld [vmem:[%s13779_s11 + $0x758] ss:$24 sps:$4 sm:$0xff]   ;;  %v10036_v31 = vld [vmem:[%s13779_s11 + $0x72c] ss:$24 sps:$4 sm:$0xff]  }
 0x340   : > { %v13061_v45 = vadd.bf16 %v5873_v41, %v5794_v40  ;;  %7771 = vmatpush2.bf16.msra.mxu0 %v10115_v20  ;;  %v10034_v5 = vld [vmem:[%s13779_s11 + $0x728] ss:$24 sps:$4 sm:$0xff]   ;;  %v10042_v27 = vld [vmem:[%s13779_s11 + $0x6fc] ss:$24 sps:$4 sm:$0xff]   ;;  %v10040_v26 = vld [vmem:[%s13779_s11 + $0x6f8] ss:$24 sps:$4 sm:$0xff]  }
 0x341   : > { %7826 = vmatprep.subr.bf16.mxu0 %v10124_v44  ;;  %v10048_v34 = vld [vmem:[%s13779_s11 + $0x6cc] ss:$24 sps:$4 sm:$0xff]   ;;  %v10046_v39 = vld [vmem:[%s13779_s11 + $0x6c8] ss:$24 sps:$4 sm:$0xff]   ;;  %v10054_v41 = vld [vmem:[%s13779_s11 + $0x69c] ss:$24 sps:$4 sm:$0xff]   ;;  %v5476_v44 = vpop.f32.mrf.mxu0 }
 0x342   : > { %7729 = vmatprep.mubr.bf16.mxu1 %v13061_v45  ;;  %v10052_v42 = vld [vmem:[%s13779_s11 + $0x698] ss:$24 sps:$4 sm:$0xff]   ;;  %v10060_v50 = vld [vmem:[%s13779_s11 + $0x66c] ss:$24 sps:$4 sm:$0xff]   ;;  %v10058_v43 = vld [vmem:[%s13779_s11 + $0x668] ss:$24 sps:$4 sm:$0xff]  }
 0x343   : > { %7730 = vmatmul.mubr.bf16.vlgmr.msra.gmra.mxu1 %v13059_v13  ;;  %v10066_v40 = vld [vmem:[%s13779_s11 + $0x63c] ss:$24 sps:$4 sm:$0xff]   ;;  %v10072_v35 = vld [vmem:[%s13779_s11 + $0x60c] ss:$24 sps:$4 sm:$0xff]  }
 0x344   : > { %7784 = vmatpush1.bf16.msra.mxu1 %v9977_v38  ;;  %7815 = vmatprep.mubr.bf16.mxu1 %v12865_v51  ;;  %v10078_v20 = vld [vmem:[%s13779_s11 + $0x8dc] ss:$24 sps:$4 sm:$0xff]  }
 0x345   : > { %7785 = vmatprep.subr.bf16.mxu1 %v9982_v53  ;;  %v10064_v53 = vld [vmem:[%s13779_s11 + $0x638] ss:$24 sps:$4 sm:$0xff]  }
 0x348   : > { %7786 = vmatpush1.bf16.msra.mxu1 %v9980_v47  ;;  %v10070_v47 = vld [vmem:[%s13779_s11 + $0x608] ss:$24 sps:$4 sm:$0xff]  }
 0x349   : > { %7787 = vmatprep.subr.bf16.mxu1 %v9985_v57  ;;  %v3690_v57 = vrot.slane %v12743_v49, %v12123_v18 }
 0x34c   : > { %7788 = vmatpush1.bf16.msra.mxu1 %v9983_v54  ;;  %v8710_v54 = vld.sshfl [vmem:[%s13777_s9 + $0x8] sm:$0x33 pattern:$0x76325410] }
 0x34d   : > { %7789 = vmatprep.subr.bf16.mxu1 %v9988_v59  ;;  %v3694_v59 = vrot.slane %v12743_v49, %v12129_v24  ;;  %v10082_v49 = vld [vmem:[%s13779_s11 + $0x8a8] ss:$24 sps:$4 sm:$0xff]  }
 0x350   : > { %7790 = vmatpush1.bf16.msra.mxu1 %v9986_v4 }
 0x351   : > { %7791 = vmatprep.subr.bf16.mxu1 %v9991_v23  ;;  %v10076_v23 = vld [vmem:[%s13779_s11 + $0x8d8] ss:$24 sps:$4 sm:$0xff]  }
 0x354   : > { %7792 = vmatpush1.bf16.msra.mxu1 %v9989_v30 }
 0x355   : > { %7793 = vmatprep.subr.bf16.mxu1 %v9994_v7  ;;  %v10084_v7 = vld [vmem:[%s13779_s11 + $0x8ac] ss:$24 sps:$4 sm:$0xff]  }
 0x358   : > { %7794 = vmatpush1.bf16.msra.mxu1 %v9992_v17  ;;  %v5478_v17 = vpop.f32.mrf.mxu0 }
 0x359   : > { %7795 = vmatprep.subr.bf16.mxu1 %v9997_v61  ;;  %v5646_v61 = vcombine.high %v8710_v54, %v8710_v54 }
 0x35c   : > { %7796 = vmatpush1.bf16.msra.mxu1 %v9995_v55 }
 0x35d   : > { %7797 = vmatprep.subr.bf16.mxu1 %v10000_v62 }
 0x360   : > { %7798 = vmatpush1.bf16.msra.mxu1 %v9998_v63  ;;  %v5799_v63 = vcombine.high %v12774_v8, %v12774_v8  ;;  %v10088_v8 = vld [vmem:[%s13779_s11 + $0x878] ss:$24 sps:$4 sm:$0xff]  }
 0x361   : > { %7799 = vmatprep.subr.bf16.mxu1 %v10003_v2 }
 0x364   : > { %7800 = vmatpush2.bf16.msra.mxu1 %v10001_v6 }
 0x365   : > { %7801 = vmatprep.subr.bf16.mxu1 %v10006_v3  ;;  %v10090_v3 = vld [vmem:[%s13779_s11 + $0x87c] ss:$24 sps:$4 sm:$0xff]  }
 0x366   : > { %v5433_v38 = vpop.f32.mrf.mxu1 }
 0x367   : > { %v5434_v30 = vadd.f32 %v5433_v38, %v3690_v57 }
 0x368   : > { %7802 = vmatpush2.bf16.msra.mxu1 %v10004_v11  ;;  %v5435_v46 = vpop.f32.mrf.mxu1  ;;  %v5729_v11 = vshrl.u32 %v8710_v54, 16 }
 0x369   : > { %7803 = vmatprep.subr.bf16.mxu1 %v10009_v32  ;;  %v5436_v55 = vadd.f32 %v5435_v46, %v3694_v59  ;;  %v5477_v6 = vadd.f32 %v5476_v44, %v5434_v30  ;;  %v5480_v32 = vpop.f32.mrf.mxu0 }
 0x36a   : > { %v5437_v4 = vpop.f32.mrf.mxu1 }
 0x36b   : > { %v5438_v2 = vadd.f32 %v5437_v4, %v3690_v57 }
 0x36c   : > { %7804 = vmatpush2.bf16.msra.mxu1 %v10007_v14  ;;  %v5439_v62 = vpop.f32.mrf.mxu1 }
 0x36d   : > { %7805 = vmatprep.subr.bf16.mxu1 %v10012_v48  ;;  %v5736_v48 = vshrl.u32 %v5646_v61, 16 }
 0x370   : > { %7806 = vmatpush2.bf16.msra.mxu1 %v10010_v33  ;;  %v5440_v33 = vadd.f32 %v5439_v62, %v3694_v59 }
 0x371   : > { %7807 = vmatprep.subr.bf16.mxu1 %v10015_v37 }
 0x374   : > { %7808 = vmatpush2.bf16.msra.mxu1 %v10013_v16  ;;  %v5479_v16 = vadd.f32 %v5478_v17, %v5436_v55 }
 0x375   : > { %7809 = vmatprep.subr.bf16.mxu1 %v10018_v19 }
 0x378   : > { %7810 = vmatpush2.bf16.msra.mxu1 %v10016_v12  ;;  %v5813_v12 = vrot.slane %v5799_v63, %v10577_v58 }
 0x379   : > { %7811 = vmatprep.subr.bf16.mxu1 %v10021_v9  ;;  %v5481_v9 = vadd.f32 %v5480_v32, %v5438_v2  ;;  %v10108_v2 = vld [vmem:[%s13779_s11 + $0x7ec] ss:$24 sps:$4 sm:$0xff]  }
 0x37c   : > { %7812 = vmatpush2.bf16.msra.mxu1 %v10019_v21  ;;  %v13248_v21 = vpack.i.b16 %v8710_v54, %v8710_v54 }
 0x37d   : > { %7813 = vmatprep.subr.bf16.mxu1 %v10024_v22  ;;  %v5730_v22 = vpack.i.b16 %v5729_v11, %v5729_v11 }
 0x37e   : > { %v5780_v17 = vrot.slane %v13248_v21, %v10596_v1 }
 0x37f   : > { %v5735_v38 = vrot.slane %v5730_v22, %v10593_v0 }
 0x380   : > { %7814 = vmatpush2.bf16.msra.mxu1 %v10022_v25  ;;  %v10096_v25 = vld [vmem:[%s13779_s11 + $0x84c] ss:$24 sps:$4 sm:$0xff]  }
 0x381   : > { %7869 = vmatprep.subr.bf16.mxu1 %v10030_v15  ;;  %v5482_v15 = vpop.f32.mrf.mxu0 }
 0x383   : > { %7816 = vmatmul.mubr.bf16.vlgmr.msra.gmra.mxu1 %v12867_v52 }
 0x384   : > { %7870 = vmatpush1.bf16.msra.mxu1 %v10028_v10 }
 0x385   : > { %7871 = vmatprep.subr.bf16.mxu1 %v10036_v31 }
 0x388   : > { %7872 = vmatpush1.bf16.msra.mxu1 %v10034_v5 }
 0x389   : > { %7873 = vmatprep.subr.bf16.mxu1 %v10042_v27  ;;  %v5737_v27 = vpack.i.b16 %v5736_v48, %v5736_v48 }
 0x38c   : > { %7874 = vmatpush1.bf16.msra.mxu1 %v10040_v26 }
 0x38d   : > { %7875 = vmatprep.subr.bf16.mxu1 %v10048_v34  ;;  %v5483_v34 = vadd.f32 %v5482_v15, %v5440_v33  ;;  %v10114_v15 = vld [vmem:[%s13779_s11 + $0x7bc] ss:$24 sps:$4 sm:$0xff]  }
 0x390   : > { %7876 = vmatpush1.bf16.msra.mxu1 %v10046_v39 }
 0x391   : > { %7877 = vmatprep.subr.bf16.mxu1 %v10054_v41  ;;  %v10094_v41 = vld [vmem:[%s13779_s11 + $0x848] ss:$24 sps:$4 sm:$0xff]  }
 0x394   : > { %7878 = vmatpush1.bf16.msra.mxu1 %v10052_v42  ;;  %v13256_v42 = vpack.i.b16 %v5646_v61, %v5646_v61  ;;  %v5829_v61 = vrot.slane %v5813_v12, %v10577_v58 }
 0x395   : > { %7879 = vmatprep.subr.bf16.mxu1 %v10060_v50  ;;  %v5815_v50 = vcombine.high %v5813_v12, %v5813_v12  ;;  %v10106_v12 = vld [vmem:[%s13779_s11 + $0x7e8] ss:$24 sps:$4 sm:$0xff]  }
 0x396   : > { %v5688_v30 = vrot.slane %v13256_v42, %v10593_v0 }
 0x398   : > { %7880 = vmatpush1.bf16.msra.mxu1 %v10058_v43 }
 0x399   : > { %7881 = vmatprep.subr.bf16.mxu1 %v10066_v40  ;;  %v5681_v40 = vrot.slane %v13248_v21, %v10593_v0 }
 0x39c   : > { %7882 = vmatpush1.bf16.msra.mxu1 %v10064_v53 }
 0x39d   : > { %7883 = vmatprep.subr.bf16.mxu1 %v10072_v35  ;;  %v10102_v35 = vld [vmem:[%s13779_s11 + $0x81c] ss:$24 sps:$4 sm:$0xff]  }
 0x3a0   : > { %7884 = vmatpush1.bf16.msra.mxu1 %v10070_v47 }
 0x3a1   : > { %7885 = vmatprep.subr.bf16.mxu1 %v10078_v20  ;;  %v5742_v20 = vrot.slane %v5737_v27, %v10593_v0 }
 0x3a4   : > { %7886 = vmatpush2.bf16.msra.mxu1 %v10076_v23  ;;  %v10100_v23 = vld [vmem:[%s13779_s11 + $0x818] ss:$24 sps:$4 sm:$0xff]  }
 0x3a5   : > { %7887 = vmatprep.subr.bf16.mxu1 %v10084_v7  ;;  %v5843_v7 = vrot.slane %v5815_v50, %v10577_v58 }
 0x3a6   : > { %v5519_v14 = vpop.f32.mrf.mxu1 }
 0x3a7   : > { %v5520_v37 = vadd.f32 %v5519_v14, %v5477_v6  ;;  %v5882_v56 = vpack.i.b16 %v5843_v7, %v5843_v7  ;;  %v10131_v7 = vld [vmem:[%s13779_s11 + $0x430] ss:$24 sps:$4 sm:$0xff]  }
 0x3a8   : > { %7888 = vmatpush2.bf16.msra.mxu1 %v10082_v49  ;;  %v5521_v19 = vpop.f32.mrf.mxu1 }
 0x3a9   : > { %7889 = vmatprep.subr.bf16.mxu1 %v10090_v3  ;;  %v5532_v10 = vmax.f32 %v5520_v37, 0.0  ;;  %v5522_v31 = vadd.f32 %v5521_v19, %v5479_v16 }
 0x3aa   : > { %v5523_v5 = vpop.f32.mrf.mxu1 }
 0x3ab   : > { %v5524_v26 = vadd.f32 %v5523_v5, %v5481_v9  ;;  %v5544_v46 = vrot.slane %v5532_v10, 7  ;;  %v5580_v47 = vrot.slane %v5532_v10, 1  ;;  %v5533_v57 = vmax.f32 %v5522_v31, 0.0 }
 0x3ac   : > { %7890 = vmatpush2.bf16.msra.mxu1 %v10088_v8  ;;  %v5525_v39 = vpop.f32.mrf.mxu1  ;;  %v5784_v5 = vrot.slane %v13256_v42, %v10596_v1  ;;  %v5887_v42 = vrot.slane %v5882_v56, %v10593_v0  ;;  %v10176_v56 = vld [vmem:[%s13779_s11 + $0x5a8] ss:$24 sps:$4 sm:$0xff]  }
 0x3ad   : > { %v5538_v43 = vmax.f32 %v5524_v26, 0.0  ;;  %v5526_v53 = vadd.f32 %v5525_v39, %v5483_v34  ;;  %7891 = vmatprep.subr.bf16.mxu1 %v10096_v25  ;;  %v5545_v6 = vrot.slane %v5533_v57, 7  ;;  %v5581_v32 = vrot.slane %v5533_v57, 1 }
 0x3ae   : > { %v5875_v34 = vpack.i.b16 %v5829_v61, %v5829_v61  ;;  %v10134_v61 = vld [vmem:[%s13779_s11 + $0x3f8] ss:$24 sps:$4 sm:$0xff]  }
 0x3af   : > { %v5550_v44 = vrot.slane %v5538_v43, 7  ;;  %v5586_v54 = vrot.slane %v5538_v43, 1  ;;  %v5699_v59 = vpack.c.bf16 %v5538_v43, %v5532_v10  ;;  %v5539_v4 = vmax.f32 %v5526_v53, 0.0 }
 0x3b0   : > { %7892 = vmatpush2.bf16.msra.mxu1 %v10094_v41  ;;  %v5880_v53 = vrot.slane %v5875_v34, %v10593_v0  ;;  %v10187_v34 = vld [vmem:[%s13779_s11 + $0x584] ss:$24 sps:$4 sm:$0xff]  }
 0x3b1   : > { %v5556_v55 = vsel %vm516_vm1, %v5544_v46, %v5550_v44  ;;  %v5562_v62 = vsel %vm516_vm1, %v5550_v44, %v5544_v46  ;;  %v5592_v49 = vsel %vm557_vm3, %v5580_v47, %v5586_v54  ;;  %v5598_v63 = vsel %vm557_vm3, %v5586_v54, %v5580_v47  ;;  %7893 = vmatprep.subr.bf16.mxu1 %v10102_v35  ;;  %v10118_v35 = vld [vmem:[%s13779_s11 + $0x788] ss:$24 sps:$4 sm:$0xff]   ;;  %v10127_v44 = vld [vmem:[%s13779_s11 + $0x464] ss:$24 sps:$4 sm:$0xff]  }
 0x3b2   : > { %v5568_v58 = vsel %vm10568_vm0, %v5562_v62, 0.0  ;;  %v5610_v3 = vsel %vm10582_vm2, %v5598_v63, 0.0  ;;  %v5551_v11 = vrot.slane %v5539_v4, 7  ;;  %v5747_v48 = vmul.bf16 %v5735_v38, %v5699_v59  ;;  %v10125_v54 = vld [vmem:[%s13779_s11 + $0x460] ss:$24 sps:$4 sm:$0xff]  }
 0x3b3   : > { %v5618_v14 = vpack.c.bf16 %v5556_v55, %v5568_v58  ;;  %v5587_v33 = vrot.slane %v5539_v4, 1  ;;  %v5759_v37 = vpack.c.bf16 %v5610_v3, %v5592_v49  ;;  %v5700_v8 = vpack.c.bf16 %v5539_v4, %v5533_v57  ;;  %v10122_v57 = vld [vmem:[%s13779_s11 + $0x458] ss:$24 sps:$4 sm:$0xff]   ;;  %v10130_v59 = vld [vmem:[%s13779_s11 + $0x42c] ss:$24 sps:$4 sm:$0xff]  }
 0x3b4   : > { %v5557_v16 = vsel %vm516_vm1, %v5545_v6, %v5551_v11  ;;  %v5563_v19 = vsel %vm516_vm1, %v5551_v11, %v5545_v6  ;;  %7894 = vmatpush2.bf16.msra.mxu1 %v10100_v23  ;;  %v10133_v4 = vld [vmem:[%s13779_s11 + $0x434] ss:$24 sps:$4 sm:$0xff]   ;;  %v10128_v23 = vld [vmem:[%s13779_s11 + $0x428] ss:$24 sps:$4 sm:$0xff]   ;;  %v10151_v6 = vld [vmem:[%s13779_s11 + $0x3a4] ss:$24 sps:$4 sm:$0xff]  }
 0x3b5   : > { %v5693_v9 = vmul.bf16 %v5681_v40, %v5618_v14  ;;  %v5569_v21 = vsel %vm10568_vm0, %v5563_v19, 0.0  ;;  %v5593_v22 = vsel %vm557_vm3, %v5581_v32, %v5587_v33  ;;  %v5599_v25 = vsel %vm557_vm3, %v5587_v33, %v5581_v32  ;;  %7895 = vmatprep.subr.bf16.mxu1 %v10108_v2  ;;  %v10137_v55 = vld [vmem:[%s13779_s11 + $0x400] ss:$24 sps:$4 sm:$0xff]   ;;  %v10145_v62 = vld [vmem:[%s13779_s11 + $0x3d4] ss:$24 sps:$4 sm:$0xff]  }
 0x3b6   : > { %v5619_v10 = vpack.c.bf16 %v5557_v16, %v5569_v21  ;;  %v5611_v31 = vsel %vm10582_vm2, %v5599_v25, 0.0  ;;  %v5748_v39 = vmul.bf16 %v5742_v20, %v5700_v8  ;;  %v5789_v50 = vmul.bf16 %v5780_v17, %v5759_v37  ;;  %v10139_v17 = vld [vmem:[%s13779_s11 + $0x404] ss:$24 sps:$4 sm:$0xff]   ;;  %v10140_v49 = vld [vmem:[%s13779_s11 + $0x3c8] ss:$24 sps:$4 sm:$0xff]  }
 0x3b7   : > { %v5753_v27 = vadd.bf16 %v5747_v48, %v5693_v9  ;;  %v5760_v26 = vpack.c.bf16 %v5611_v31, %v5593_v22  ;;  %v10148_v63 = vld [vmem:[%s13779_s11 + $0x39c] ss:$24 sps:$4 sm:$0xff]   ;;  %v10143_v2 = vld [vmem:[%s13779_s11 + $0x3d0] ss:$24 sps:$4 sm:$0xff]   ;;  %v10154_v3 = vld [vmem:[%s13779_s11 + $0x36c] ss:$24 sps:$4 sm:$0xff]  }
 0x3b8   : > { %7896 = vmatpush2.bf16.msra.mxu1 %v10106_v12  ;;  %v5694_v41 = vmul.bf16 %v5688_v30, %v5619_v10  ;;  %v10136_v30 = vld [vmem:[%s13779_s11 + $0x3fc] ss:$24 sps:$4 sm:$0xff]   ;;  %v10146_v58 = vld [vmem:[%s13779_s11 + $0x398] ss:$24 sps:$4 sm:$0xff]   ;;  %v10152_v14 = vld [vmem:[%s13779_s11 + $0x368] ss:$24 sps:$4 sm:$0xff]  }
 0x3b9   : > { %7897 = vmatprep.subr.bf16.mxu1 %v10114_v15  ;;  %v5790_v40 = vmul.bf16 %v5784_v5, %v5760_v26  ;;  %v5795_v38 = vadd.bf16 %v5789_v50, %v5753_v27  ;;  %v10149_v11 = vld [vmem:[%s13779_s11 + $0x3a0] ss:$24 sps:$4 sm:$0xff]   ;;  %v10157_v32 = vld [vmem:[%s13779_s11 + $0x374] ss:$24 sps:$4 sm:$0xff]   ;;  %v10155_v33 = vld [vmem:[%s13779_s11 + $0x370] ss:$24 sps:$4 sm:$0xff]  }
 0x3ba   : > { %v5754_v43 = vadd.bf16 %v5748_v39, %v5694_v41  ;;  %v10160_v48 = vld [vmem:[%s13779_s11 + $0x33c] ss:$24 sps:$4 sm:$0xff]   ;;  %v10158_v16 = vld [vmem:[%s13779_s11 + $0x338] ss:$24 sps:$4 sm:$0xff]   ;;  %v10166_v19 = vld [vmem:[%s13779_s11 + $0x30c] ss:$24 sps:$4 sm:$0xff]  }
 0x3bb   : > { %v13325_v20 = vadd.bf16 %v5880_v53, %v5795_v38  ;;  %v10163_v37 = vld [vmem:[%s13779_s11 + $0x344] ss:$24 sps:$4 sm:$0xff]   ;;  %v10161_v8 = vld [vmem:[%s13779_s11 + $0x340] ss:$24 sps:$4 sm:$0xff]   ;;  %v10169_v12 = vld [vmem:[%s13779_s11 + $0x314] ss:$24 sps:$4 sm:$0xff]  }
 0x3bc   : > { %7898 = vmatpush2.bf16.msra.mxu1 %v10112_v36  ;;  %v5796_v46 = vadd.bf16 %v5790_v40, %v5754_v43  ;;  %v10164_v9 = vld [vmem:[%s13779_s11 + $0x308] ss:$24 sps:$4 sm:$0xff]   ;;  %v10172_v21 = vld [vmem:[%s13779_s11 + $0x5dc] ss:$24 sps:$4 sm:$0xff]   ;;  %v10170_v15 = vld [vmem:[%s13779_s11 + $0x5d8] ss:$24 sps:$4 sm:$0xff]  }
 0x3bd   : > { %7899 = vmatprep.subr.bf16.mxu1 %v10120_v60  ;;  %v10167_v22 = vld [vmem:[%s13779_s11 + $0x310] ss:$24 sps:$4 sm:$0xff]   ;;  %v10175_v25 = vld [vmem:[%s13779_s11 + $0x5e4] ss:$24 sps:$4 sm:$0xff]   ;;  %v10173_v31 = vld [vmem:[%s13779_s11 + $0x5e0] ss:$24 sps:$4 sm:$0xff]  }
 0x3be   : > { %v13320_v47 = vadd.bf16 %v5887_v42, %v5796_v46  ;;  %v10178_v10 = vld [vmem:[%s13779_s11 + $0x5ac] ss:$24 sps:$4 sm:$0xff]   ;;  %v10184_v27 = vld [vmem:[%s13779_s11 + $0x57c] ss:$24 sps:$4 sm:$0xff]   ;;  %v10179_v26 = vld [vmem:[%s13779_s11 + $0x5b0] ss:$24 sps:$4 sm:$0xff]  }
 0x3bf   : > { %v10181_v5 = vld [vmem:[%s13779_s11 + $0x5b4] ss:$24 sps:$4 sm:$0xff]   ;;  %v10182_v39 = vld [vmem:[%s13779_s11 + $0x578] ss:$24 sps:$4 sm:$0xff]   ;;  %v10188_v50 = vld [vmem:[%s13779_s11 + $0x548] ss:$24 sps:$4 sm:$0xff]  }
 0x3c0   : > { %7900 = vmatpush2.bf16.msra.mxu1 %v10118_v35  ;;  %7772 = vmatprep.mubr.bf16.mxu0 %v13320_v47  ;;  %v10190_v36 = vld [vmem:[%s13779_s11 + $0x54c] ss:$24 sps:$4 sm:$0xff]   ;;  %v10185_v41 = vld [vmem:[%s13779_s11 + $0x580] ss:$24 sps:$4 sm:$0xff]   ;;  %v10196_v43 = vld [vmem:[%s13779_s11 + $0x51c] ss:$24 sps:$4 sm:$0xff]  }
 0x3c1   : > { %7901 = vmatprep.mubr.bf16.mxu1 %v13320_v47  ;;  %7773 = vmatmul.mubr.bf16.vlgmr.msra.gmra.mxu0 %v13325_v20  ;;  %v10193_v60 = vld [vmem:[%s13779_s11 + $0x554] ss:$24 sps:$4 sm:$0xff]   ;;  %v10191_v40 = vld [vmem:[%s13779_s11 + $0x550] ss:$24 sps:$4 sm:$0xff]   ;;  %v10199_v42 = vld [vmem:[%s13779_s11 + $0x524] ss:$24 sps:$4 sm:$0xff]  }
 0x3c2   : > { %7827 = vmatpush1.bf16.msra.mxu0 %v10122_v57  ;;  %7858 = vmatprep.mubr.bf16.mxu0 %v13061_v45  ;;  %v10194_v38 = vld [vmem:[%s13779_s11 + $0x518] ss:$24 sps:$4 sm:$0xff]   ;;  %v10202_v53 = vld [vmem:[%s13779_s11 + $0x4ec] ss:$24 sps:$4 sm:$0xff]   ;;  %v10200_v57 = vld [vmem:[%s13779_s11 + $0x4e8] ss:$24 sps:$4 sm:$0xff]  }
 0x3c3   : > { %7902 = vmatmul.mubr.bf16.vlgmr.msra.gmra.mxu1 %v13325_v20  ;;  %7955 = vmatprep.subr.bf16.mxu1 %v10127_v44  ;;  %v10197_v35 = vld [vmem:[%s13779_s11 + $0x520] ss:$24 sps:$4 sm:$0xff]   ;;  %v10205_v46 = vld [vmem:[%s13779_s11 + $0x4f4] ss:$24 sps:$4 sm:$0xff]  }
 0x3c4   : > { %7956 = vmatpush1.bf16.msra.mxu1 %v10125_v54  ;;  %7987 = vmatprep.mubr.bf16.mxu1 %v13061_v45  ;;  %v10142_v45 = vld [vmem:[%s13779_s11 + $0x3cc] ss:$24 sps:$4 sm:$0xff]   ;;  %v10208_v44 = vld [vmem:[%s13779_s11 + $0x4bc] ss:$24 sps:$4 sm:$0xff]   ;;  %v10203_v54 = vld [vmem:[%s13779_s11 + $0x4f0] ss:$24 sps:$4 sm:$0xff]  }
 0x3c5   : > { %7828 = vmatprep.subr.bf16.mxu0 %v10130_v59  ;;  %7957 = vmatprep.subr.bf16.mxu1 %v10133_v4  ;;  %v10211_v59 = vld [vmem:[%s13779_s11 + $0x4c4] ss:$24 sps:$4 sm:$0xff]   ;;  %v10206_v4 = vld [vmem:[%s13779_s11 + $0x4b8] ss:$24 sps:$4 sm:$0xff]  }
 0x3c6   : > { %7829 = vmatpush1.bf16.msra.mxu0 %v10128_v23  ;;  %v10214_v23 = vld [vmem:[%s13779_s11 + $0x48c] ss:$24 sps:$4 sm:$0xff]  }
 0x3c7   : > { %7830 = vmatprep.subr.bf16.mxu0 %v10136_v30  ;;  %v10209_v30 = vld [vmem:[%s13779_s11 + $0x4c0] ss:$24 sps:$4 sm:$0xff]  }
 0x3c8   : > { %7958 = vmatpush1.bf16.msra.mxu1 %v10131_v7  ;;  %v10217_v7 = vld [vmem:[%s13779_s11 + $0x494] ss:$24 sps:$4 sm:$0xff]  }
 0x3c9   : > { %7959 = vmatprep.subr.bf16.mxu1 %v10139_v17  ;;  %v10212_v17 = vld [vmem:[%s13779_s11 + $0x488] ss:$24 sps:$4 sm:$0xff]  }
 0x3ca   : > { %7831 = vmatpush1.bf16.msra.mxu0 %v10134_v61  ;;  %v10220_v61 = vld [vmem:[%s13779_s11 + $0x164] ss:$24 sps:$4 sm:$0xff]  }
 0x3cb   : > { %7832 = vmatprep.subr.bf16.mxu0 %v10142_v45  ;;  %v10215_v45 = vld [vmem:[%s13779_s11 + $0x490] ss:$24 sps:$4 sm:$0xff]  }
 0x3cc   : > { %7960 = vmatpush1.bf16.msra.mxu1 %v10137_v55  ;;  %v10218_v55 = vld [vmem:[%s13779_s11 + $0x160] ss:$24 sps:$4 sm:$0xff]  }
 0x3cd   : > { %7961 = vmatprep.subr.bf16.mxu1 %v10145_v62  ;;  %v10223_v62 = vld [vmem:[%s13779_s11 + $0x134] ss:$24 sps:$4 sm:$0xff]  }
 0x3ce   : > { %7833 = vmatpush1.bf16.msra.mxu0 %v10140_v49  ;;  %v10221_v49 = vld [vmem:[%s13779_s11 + $0x130] ss:$24 sps:$4 sm:$0xff]  }
 0x3cf   : > { %7834 = vmatprep.subr.bf16.mxu0 %v10148_v63  ;;  %v10226_v63 = vld [vmem:[%s13779_s11 + $0x104] ss:$24 sps:$4 sm:$0xff]  }
 0x3d0   : > { %7962 = vmatpush1.bf16.msra.mxu1 %v10143_v2  ;;  %v10224_v2 = vld [vmem:[%s13779_s11 + $0x100] ss:$24 sps:$4 sm:$0xff]  }
 0x3d1   : > { %7963 = vmatprep.subr.bf16.mxu1 %v10151_v6  ;;  %v10232_v6 = vld [vmem:[%s13779_s11 + $0xa4] ss:$24 sps:$4 sm:$0xff]  }
 0x3d2   : > { %7835 = vmatpush1.bf16.msra.mxu0 %v10146_v58  ;;  %v10230_v58 = vld [vmem:[%s13779_s11 + $0xa0] ss:$24 sps:$4 sm:$0xff]  }
 0x3d3   : > { %7836 = vmatprep.subr.bf16.mxu0 %v10154_v3  ;;  %v10235_v3 = vld [vmem:[%s13779_s11 + $0x74] ss:$24 sps:$4 sm:$0xff]  }
 0x3d4   : > { %7964 = vmatpush1.bf16.msra.mxu1 %v10149_v11  ;;  %v10233_v11 = vld [vmem:[%s13779_s11 + $0x70] ss:$24 sps:$4 sm:$0xff]  }
 0x3d5   : > { %7965 = vmatprep.subr.bf16.mxu1 %v10157_v32  ;;  %v10238_v32 = vld [vmem:[%s13779_s11 + $0x44] ss:$24 sps:$4 sm:$0xff]  }
 0x3d6   : > { %7837 = vmatpush1.bf16.msra.mxu0 %v10152_v14  ;;  %v10236_v14 = vld [vmem:[%s13779_s11 + $0x40] ss:$24 sps:$4 sm:$0xff]  }
 0x3d7   : > { %7838 = vmatprep.subr.bf16.mxu0 %v10160_v48  ;;  %v10241_v48 = vld [vmem:[%s13779_s11 + $0x14] ss:$24 sps:$4 sm:$0xff]  }
 0x3d8   : > { %7966 = vmatpush1.bf16.msra.mxu1 %v10155_v33  ;;  %v10239_v33 = vld [vmem:[%s13779_s11 + $0x10] ss:$24 sps:$4 sm:$0xff]  }
 0x3d9   : > { %7967 = vmatprep.subr.bf16.mxu1 %v10163_v37  ;;  %v10244_v37 = vld [vmem:[%s13779_s11 + $0x2e4] ss:$24 sps:$4 sm:$0xff]  }
 0x3da   : > { %7839 = vmatpush1.bf16.msra.mxu0 %v10158_v16  ;;  %v10242_v16 = vld [vmem:[%s13779_s11 + $0x2e0] ss:$24 sps:$4 sm:$0xff]  }
 0x3db   : > { %7840 = vmatprep.subr.bf16.mxu0 %v10166_v19  ;;  %v10247_v19 = vld [vmem:[%s13779_s11 + $0x2b4] ss:$24 sps:$4 sm:$0xff]  }
 0x3dc   : > { %7968 = vmatpush1.bf16.msra.mxu1 %v10161_v8  ;;  %v10245_v8 = vld [vmem:[%s13779_s11 + $0x2b0] ss:$24 sps:$4 sm:$0xff]  }
 0x3dd   : > { %7969 = vmatprep.subr.bf16.mxu1 %v10169_v12  ;;  %v10250_v12 = vld [vmem:[%s13779_s11 + $0x284] ss:$24 sps:$4 sm:$0xff]  }
 0x3de   : > { %7841 = vmatpush1.bf16.msra.mxu0 %v10164_v9  ;;  %v10248_v9 = vld [vmem:[%s13779_s11 + $0x280] ss:$24 sps:$4 sm:$0xff]  }
 0x3df   : > { %7842 = vmatprep.subr.bf16.mxu0 %v10172_v21  ;;  %v10253_v21 = vld [vmem:[%s13779_s11 + $0x254] ss:$24 sps:$4 sm:$0xff]  }
 0x3e0   : > { %7970 = vmatpush1.bf16.msra.mxu1 %v10167_v22  ;;  %v10251_v22 = vld [vmem:[%s13779_s11 + $0x250] ss:$24 sps:$4 sm:$0xff]  }
 0x3e1   : > { %7971 = vmatprep.subr.bf16.mxu1 %v10175_v25  ;;  %v10256_v25 = vld [vmem:[%s13779_s11 + $0x224] ss:$24 sps:$4 sm:$0xff]  }
 0x3e2   : > { %7843 = vmatpush2.bf16.msra.mxu0 %v10170_v15  ;;  %v10254_v15 = vld [vmem:[%s13779_s11 + $0x220] ss:$24 sps:$4 sm:$0xff]  }
 0x3e3   : > { %7844 = vmatprep.subr.bf16.mxu0 %v10178_v10  ;;  %v10259_v10 = vld [vmem:[%s13779_s11 + $0x1f4] ss:$24 sps:$4 sm:$0xff]  }
 0x3e4   : > { %7972 = vmatpush2.bf16.msra.mxu1 %v10173_v31  ;;  %v10257_v31 = vld [vmem:[%s13779_s11 + $0x1f0] ss:$24 sps:$4 sm:$0xff]  }
 0x3e5   : > { %7973 = vmatprep.subr.bf16.mxu1 %v10181_v5  ;;  %v10262_v5 = vld [vmem:[%s13779_s11 + $0x1c4] ss:$24 sps:$4 sm:$0xff]  }
 0x3e6   : > { %7845 = vmatpush2.bf16.msra.mxu0 %v10176_v56  ;;  %v10260_v56 = vld [vmem:[%s13779_s11 + $0x1c0] ss:$24 sps:$4 sm:$0xff]  }
 0x3e7   : > { %7846 = vmatprep.subr.bf16.mxu0 %v10184_v27  ;;  %v10265_v27 = vld [vmem:[%s13779_s11 + $0x194] ss:$24 sps:$4 sm:$0xff]  }
 0x3e8   : > { %7974 = vmatpush2.bf16.msra.mxu1 %v10179_v26  ;;  %v10263_v26 = vld [vmem:[%s13779_s11 + $0x190] ss:$24 sps:$4 sm:$0xff]  }
 0x3e9   : > { %7975 = vmatprep.subr.bf16.mxu1 %v10187_v34  ;;  %v10268_v34 = vld [vmem:[%s13779_s11 + $0x764] ss:$24 sps:$4 sm:$0xff]  }
 0x3ea   : > { %7847 = vmatpush2.bf16.msra.mxu0 %v10182_v39  ;;  %v10266_v39 = vld [vmem:[%s13779_s11 + $0x760] ss:$24 sps:$4 sm:$0xff]  }
 0x3eb   : > { %7848 = vmatprep.subr.bf16.mxu0 %v10190_v36  ;;  %v10271_v36 = vld [vmem:[%s13779_s11 + $0x734] ss:$24 sps:$4 sm:$0xff]  }
 0x3ec   : > { %7976 = vmatpush2.bf16.msra.mxu1 %v10185_v41  ;;  %v10269_v41 = vld [vmem:[%s13779_s11 + $0x730] ss:$24 sps:$4 sm:$0xff]  }
 0x3ed   : > { %7977 = vmatprep.subr.bf16.mxu1 %v10193_v60  ;;  %v10274_v60 = vld [vmem:[%s13779_s11 + $0x704] ss:$24 sps:$4 sm:$0xff]  }
 0x3ee   : > { %7849 = vmatpush2.bf16.msra.mxu0 %v10188_v50  ;;  %v10272_v50 = vld [vmem:[%s13779_s11 + $0x700] ss:$24 sps:$4 sm:$0xff]  }
 0x3ef   : > { %7850 = vmatprep.subr.bf16.mxu0 %v10196_v43  ;;  %v10280_v43 = vld [vmem:[%s13779_s11 + $0x6a4] ss:$24 sps:$4 sm:$0xff]  }
 0x3f0   : > { %7978 = vmatpush2.bf16.msra.mxu1 %v10191_v40  ;;  %v10278_v40 = vld [vmem:[%s13779_s11 + $0x6a0] ss:$24 sps:$4 sm:$0xff]  }
 0x3f1   : > { %7979 = vmatprep.subr.bf16.mxu1 %v10199_v42  ;;  %v10283_v42 = vld [vmem:[%s13779_s11 + $0x674] ss:$24 sps:$4 sm:$0xff]  }
 0x3f2   : > { %7851 = vmatpush2.bf16.msra.mxu0 %v10194_v38  ;;  %v10281_v38 = vld [vmem:[%s13779_s11 + $0x670] ss:$24 sps:$4 sm:$0xff]  }
 0x3f3   : > { %7852 = vmatprep.subr.bf16.mxu0 %v10202_v53  ;;  %v10286_v53 = vld [vmem:[%s13779_s11 + $0x644] ss:$24 sps:$4 sm:$0xff]  }
 0x3f4   : > { %7980 = vmatpush2.bf16.msra.mxu1 %v10197_v35  ;;  %v10284_v35 = vld [vmem:[%s13779_s11 + $0x640] ss:$24 sps:$4 sm:$0xff]  }
 0x3f5   : > { %7981 = vmatprep.subr.bf16.mxu1 %v10205_v46  ;;  %v10289_v46 = vld [vmem:[%s13779_s11 + $0x614] ss:$24 sps:$4 sm:$0xff]  }
 0x3f6   : > { %7853 = vmatpush2.bf16.msra.mxu0 %v10200_v57  ;;  %v10287_v57 = vld [vmem:[%s13779_s11 + $0x610] ss:$24 sps:$4 sm:$0xff]  }
 0x3f7   : > { %7854 = vmatprep.subr.bf16.mxu0 %v10208_v44  ;;  %v10292_v44 = vld [vmem:[%s13779_s11 + $0x8e4] ss:$24 sps:$4 sm:$0xff]  }
 0x3f8   : > { %7982 = vmatpush2.bf16.msra.mxu1 %v10203_v54  ;;  %v10290_v54 = vld [vmem:[%s13779_s11 + $0x8e0] ss:$24 sps:$4 sm:$0xff]  }
 0x3f9   : > { %7983 = vmatprep.subr.bf16.mxu1 %v10211_v59  ;;  %v10295_v59 = vld [vmem:[%s13779_s11 + $0x8b4] ss:$24 sps:$4 sm:$0xff]  }
 0x3fa   : > { %7855 = vmatpush2.bf16.msra.mxu0 %v10206_v4  ;;  %v10293_v4 = vld [vmem:[%s13779_s11 + $0x8b0] ss:$24 sps:$4 sm:$0xff]  }
 0x3fb   : > { %7856 = vmatprep.subr.bf16.mxu0 %v10214_v23  ;;  %v10298_v23 = vld [vmem:[%s13779_s11 + $0x884] ss:$24 sps:$4 sm:$0xff]  }
 0x3fc   : > { %7984 = vmatpush2.bf16.msra.mxu1 %v10209_v30  ;;  %v10296_v30 = vld [vmem:[%s13779_s11 + $0x880] ss:$24 sps:$4 sm:$0xff]  }
 0x3fd   : > { %7985 = vmatprep.subr.bf16.mxu1 %v10217_v7  ;;  %v10301_v7 = vld [vmem:[%s13779_s11 + $0x854] ss:$24 sps:$4 sm:$0xff]  }
 0x3fe   : > { %7857 = vmatpush2.bf16.msra.mxu0 %v10212_v17  ;;  %v10299_v17 = vld [vmem:[%s13779_s11 + $0x850] ss:$24 sps:$4 sm:$0xff]  }
 0x3ff   : > { %7912 = vmatprep.subr.bf16.mxu0 %v10220_v61  ;;  %v10304_v61 = vld [vmem:[%s13779_s11 + $0x824] ss:$24 sps:$4 sm:$0xff]  }
 0x400   : > { %7986 = vmatpush2.bf16.msra.mxu1 %v10215_v45  ;;  %v10302_v45 = vld [vmem:[%s13779_s11 + $0x820] ss:$24 sps:$4 sm:$0xff]  }
 0x401   : > { %7859 = vmatmul.mubr.bf16.vlgmr.msra.gmra.mxu0 %v13059_v13 }
 0x402   : > { %7913 = vmatpush1.bf16.msra.mxu0 %v10218_v55  ;;  %7944 = vmatprep.mubr.bf16.mxu0 %v12865_v51  ;;  %v10229_v51 = vld [vmem:[%s13779_s11 + $0xd4] ss:$24 sps:$4 sm:$0xff]  }
 0x403   : > { %7988 = vmatmul.mubr.bf16.vlgmr.msra.gmra.mxu1 %v13059_v13  ;;  %7914 = vmatprep.subr.bf16.mxu0 %v10223_v62  ;;  %v10227_v13 = vld [vmem:[%s13779_s11 + $0xd0] ss:$24 sps:$4 sm:$0xff]   ;;  %v10307_v55 = vld [vmem:[%s13779_s11 + $0x7f4] ss:$24 sps:$4 sm:$0xff]  }
 0x404   : > { %v10305_v62 = vld [vmem:[%s13779_s11 + $0x7f0] ss:$24 sps:$4 sm:$0xff]  }
 0x406   : > { %7915 = vmatpush1.bf16.msra.mxu0 %v10221_v49  ;;  %v7688_v49 = vpop.f32.mrf.mxu0 }
 0x407   : > { %7916 = vmatprep.subr.bf16.mxu0 %v10226_v63  ;;  %v10310_v63 = vld [vmem:[%s13779_s11 + $0x7c4] ss:$24 sps:$4 sm:$0xff]  }
 0x40a   : > { %7917 = vmatpush1.bf16.msra.mxu0 %v10224_v2  ;;  %v10308_v2 = vld [vmem:[%s13779_s11 + $0x7c0] ss:$24 sps:$4 sm:$0xff]  }
 0x40b   : > { %7918 = vmatprep.subr.bf16.mxu0 %v10229_v51  ;;  %v13713_v51 = vld [vmem:[%s13780_s12] sm:$0x3f] }
 0x40e   : > { %7919 = vmatpush1.bf16.msra.mxu0 %v10227_v13  ;;  %v7690_v13 = vpop.f32.mrf.mxu0 }
 0x40f   : > { %7920 = vmatprep.subr.bf16.mxu0 %v10232_v6  ;;  %v7731_v6 = vpop.f32.mrf.mxu1 }
 0x412   : > { %7921 = vmatpush1.bf16.msra.mxu0 %v10230_v58  ;;  %v10313_v58 = vld [vmem:[%s13779_s11 + $0x794] ss:$24 sps:$4 sm:$0xff]  }
 0x413   : > { %7922 = vmatprep.subr.bf16.mxu0 %v10235_v3  ;;  %v6187_v3 = vrot.slane %v13713_v51, %v10593_v0 }
 0x416   : > { %7923 = vmatpush1.bf16.msra.mxu0 %v10233_v11  ;;  %v10311_v11 = vld [vmem:[%s13779_s11 + $0x790] ss:$24 sps:$4 sm:$0xff]  }
 0x417   : > { %7924 = vmatprep.subr.bf16.mxu0 %v10238_v32  ;;  %v7692_v32 = vpop.f32.mrf.mxu0 }
 0x41a   : > { %7925 = vmatpush1.bf16.msra.mxu0 %v10236_v14  ;;  %v7733_v14 = vpop.f32.mrf.mxu1 }
 0x41b   : > { %7926 = vmatprep.subr.bf16.mxu0 %v10241_v48  ;;  %v6191_v48 = vrot.slane %v13713_v51, %v10596_v1 }
 0x41e   : > { %7927 = vmatpush1.bf16.msra.mxu0 %v10239_v33  ;;  %v7689_v33 = vadd.f32 %v7688_v49, %v6187_v3 }
 0x41f   : > { %7928 = vmatprep.subr.bf16.mxu0 %v10244_v37  ;;  %v7694_v37 = vpop.f32.mrf.mxu0 }
 0x422   : > { %7929 = vmatpush2.bf16.msra.mxu0 %v10242_v16  ;;  %v7735_v16 = vpop.f32.mrf.mxu1 }
 0x423   : > { %7930 = vmatprep.subr.bf16.mxu0 %v10247_v19  ;;  %v7691_v19 = vadd.f32 %v7690_v13, %v6191_v48 }
 0x426   : > { %7931 = vmatpush2.bf16.msra.mxu0 %v10245_v8  ;;  %v7732_v8 = vadd.f32 %v7731_v6, %v7689_v33 }
 0x427   : > { %7932 = vmatprep.subr.bf16.mxu0 %v10250_v12  ;;  %v7693_v12 = vadd.f32 %v7692_v32, %v6187_v3  ;;  %v10322_v3 = vld [vmem:[%s10563_s29 + $0x40] sm:$0xff] }
 0x42a   : > { %7933 = vmatpush2.bf16.msra.mxu0 %v10248_v9  ;;  %v7734_v9 = vadd.f32 %v7733_v14, %v7691_v19  ;;  %v10323_v14 = vld [vmem:[%s10563_s29 + $0x48] sm:$0xff] }
 0x42b   : > { %7934 = vmatprep.subr.bf16.mxu0 %v10253_v21 }
 0x42e   : > { %7935 = vmatpush2.bf16.msra.mxu0 %v10251_v22  ;;  %v7737_v22 = vpop.f32.mrf.mxu1 }
 0x42f   : > { %7936 = vmatprep.subr.bf16.mxu0 %v10256_v25  ;;  %v7695_v25 = vadd.f32 %v7694_v37, %v6191_v48 }
 0x432   : > { %7937 = vmatpush2.bf16.msra.mxu0 %v10254_v15  ;;  %v7736_v15 = vadd.f32 %v7735_v16, %v7693_v12  ;;  %v6203_v16 = vrot.slane %v13713_v51, %v12123_v18 }
 0x433   : > { %7938 = vmatprep.subr.bf16.mxu0 %v10259_v10 }
 0x436   : > { %7939 = vmatpush2.bf16.msra.mxu0 %v10257_v31 }
 0x437   : > { %7940 = vmatprep.subr.bf16.mxu0 %v10262_v5 }
 0x43a   : > { %7941 = vmatpush2.bf16.msra.mxu0 %v10260_v56  ;;  %v7738_v56 = vadd.f32 %v7737_v22, %v7695_v25 }
 0x43b   : > { %7942 = vmatprep.subr.bf16.mxu0 %v10265_v27  ;;  %v10317_v27 = vld [vmem:[%s10563_s29 + $0x8] sm:$0xff] }
 0x43e   : > { %7943 = vmatpush2.bf16.msra.mxu0 %v10263_v26 }
 0x43f   : > { %7998 = vmatprep.subr.bf16.mxu0 %v10268_v34 }
 0x441   : > { %7945 = vmatmul.mubr.bf16.vlgmr.msra.gmra.mxu0 %v12867_v52  ;;  %v10277_v52 = vld [vmem:[%s13779_s11 + $0x6d4] ss:$24 sps:$4 sm:$0xff]  }
 0x442   : > { %7999 = vmatpush1.bf16.msra.mxu0 %v10266_v39  ;;  %8030 = vmatprep.mubr.bf16.mxu0 %v13320_v47  ;;  %v10275_v47 = vld [vmem:[%s13779_s11 + $0x6d0] ss:$24 sps:$4 sm:$0xff]  }
 0x443   : > { %8000 = vmatprep.subr.bf16.mxu0 %v10271_v36  ;;  %v10318_v36 = vld [vmem:[%s10563_s29 + $0x30] sm:$0xff] }
 0x446   : > { %8001 = vmatpush1.bf16.msra.mxu0 %v10269_v41 }
 0x447   : > { %8002 = vmatprep.subr.bf16.mxu0 %v10274_v60 }
 0x44a   : > { %8003 = vmatpush1.bf16.msra.mxu0 %v10272_v50  ;;  %v10319_v50 = vld [vmem:[%s10563_s29 + $0x38] sm:$0xff] }
 0x44b   : > { %8004 = vmatprep.subr.bf16.mxu0 %v10277_v52 }
 0x44e   : > { %8005 = vmatpush1.bf16.msra.mxu0 %v10275_v47  ;;  %v7817_v47 = vpop.f32.mrf.mxu1 }
 0x44f   : > { %8006 = vmatprep.subr.bf16.mxu0 %v10280_v43 }
 0x450   : > { %v7819_v43 = vpop.f32.mrf.mxu1 }
 0x452   : > { %8007 = vmatpush1.bf16.msra.mxu0 %v10278_v40  ;;  %v7821_v40 = vpop.f32.mrf.mxu1 }
 0x453   : > { %8008 = vmatprep.subr.bf16.mxu0 %v10283_v42 }
 0x454   : > { %v7823_v42 = vpop.f32.mrf.mxu1 }
 0x456   : > { %8009 = vmatpush1.bf16.msra.mxu0 %v10281_v38  ;;  %v6195_v38 = vrot.slane %v13713_v51, %v11888_v28 }
 0x457   : > { %8010 = vmatprep.subr.bf16.mxu0 %v10286_v53 }
 0x45a   : > { %8011 = vmatpush1.bf16.msra.mxu0 %v10284_v35  ;;  %v6199_v35 = vrot.slane %v13713_v51, %v11891_v29 }
 0x45b   : > { %8012 = vmatprep.subr.bf16.mxu0 %v10289_v46  ;;  %v7818_v46 = vadd.f32 %v7817_v47, %v6195_v38 }
 0x45c   : > { %v7824_v28 = vadd.f32 %v7823_v42, %v6199_v35 }
 0x45e   : > { %8013 = vmatpush1.bf16.msra.mxu0 %v10287_v57 }
 0x45f   : > { %8014 = vmatprep.subr.bf16.mxu0 %v10292_v44 }
 0x462   : > { %8015 = vmatpush2.bf16.msra.mxu0 %v10290_v54  ;;  %v7820_v54 = vadd.f32 %v7819_v43, %v6199_v35 }
 0x463   : > { %8016 = vmatprep.subr.bf16.mxu0 %v10295_v59 }
 0x466   : > { %8017 = vmatpush2.bf16.msra.mxu0 %v10293_v4 }
 0x467   : > { %8018 = vmatprep.subr.bf16.mxu0 %v10298_v23  ;;  %v7822_v23 = vadd.f32 %v7821_v40, %v6195_v38  ;;  %v10327_v40 = vld [vmem:[%s10563_s29 + $0x58] sm:$0xff] }
 0x46a   : > { %8019 = vmatpush2.bf16.msra.mxu0 %v10296_v30 }
 0x46b   : > { %8020 = vmatprep.subr.bf16.mxu0 %v10301_v7 }
 0x46e   : > { %8021 = vmatpush2.bf16.msra.mxu0 %v10299_v17 }
 0x46f   : > { %8022 = vmatprep.subr.bf16.mxu0 %v10304_v61 }
 0x472   : > { %8023 = vmatpush2.bf16.msra.mxu0 %v10302_v45  ;;  %v10320_v45 = vld [vmem:[%s10563_s29 + $0x10] sm:$0xff] }
 0x473   : > { %8024 = vmatprep.subr.bf16.mxu0 %v10307_v55 }
 0x476   : > { %8025 = vmatpush2.bf16.msra.mxu0 %v10305_v62 }
 0x477   : > { %8026 = vmatprep.subr.bf16.mxu0 %v10310_v63  ;;  %v10321_v63 = vld [vmem:[%s10563_s29 + $0x18] sm:$0xff] }
 0x47a   : > { %8027 = vmatpush2.bf16.msra.mxu0 %v10308_v2 }
 0x47b   : > { %8028 = vmatprep.subr.bf16.mxu0 %v10313_v58 }
 0x47e   : > { %8029 = vmatpush2.bf16.msra.mxu0 %v10311_v11 }
 0x481   : > { %8031 = vmatmul.mubr.bf16.vlgmr.msra.gmra.mxu0 %v13325_v20  ;;  %v7774_v0 = vpop.f32.mrf.mxu0  ;;  %v10316_v20 = vld [vmem:[%s10563_s29] sm:$0xff] }
 0x482   : > { %v7775_v21 = vadd.f32 %v7774_v0, %v7732_v8  ;;  %v6207_v8 = vrot.slane %v13713_v51, %v12129_v24 }
 0x483   : > { %v7776_v1 = vpop.f32.mrf.mxu0  ;;  %v7903_v53 = vpop.f32.mrf.mxu1 }
 0x484   : > { %v8041_v10 = vadd.f32 %v10316_v20, %v7775_v21  ;;  %v7777_v31 = vadd.f32 %v7776_v1, %v7734_v9 }
 0x485   : > { %v7778_v5 = vpop.f32.mrf.mxu0  ;;  %v7905_v57 = vpop.f32.mrf.mxu1 }
 0x486   : > { %8053 = vst [vmem:[%s13731_s19] sm:$0xff] %v8041_v10  ;;  %v8042_v26 = vadd.f32 %v10317_v27, %v7777_v31  ;;  %v7779_v34 = vadd.f32 %v7778_v5, %v7736_v15 }
 0x487   : > { %v7780_v39 = vpop.f32.mrf.mxu0  ;;  %v7907_v17 = vpop.f32.mrf.mxu1 }
 0x488   : > { %8054 = vst [vmem:[%s13731_s19 + $0x8] sm:$0xff] %v8042_v26  ;;  %v8047_v41 = vadd.f32 %v10318_v36, %v7779_v34  ;;  %v7781_v60 = vadd.f32 %v7780_v39, %v7738_v56  ;;  %v10324_v56 = vld [vmem:[%s10563_s29 + $0x20] sm:$0xff]  ;;  %v10325_v39 = vld [vmem:[%s10563_s29 + $0x28] sm:$0xff] }
 0x489   : > { %v7909_v58 = vpop.f32.mrf.mxu1 }
 0x48a   : > { %8059 = vst [vmem:[%s13731_s19 + $0x30] sm:$0xff] %v8047_v41  ;;  %v8048_v52 = vadd.f32 %v10319_v50, %v7781_v60 }
 0x48c   : > { %8060 = vst [vmem:[%s13731_s19 + $0x38] sm:$0xff] %v8048_v52  ;;  %v10326_v52 = vld [vmem:[%s10563_s29 + $0x50] sm:$0xff] }
 0x4c1   : > { %v7860_v44 = vpop.f32.mrf.mxu0 }
 0x4c2   : > { %v7861_v59 = vadd.f32 %v7860_v44, %v7818_v46 }
 0x4c3   : > { %v7862_v4 = vpop.f32.mrf.mxu0  ;;  %v7989_v19 = vpop.f32.mrf.mxu1 }
 0x4c4   : > { %v7904_v30 = vadd.f32 %v7903_v53, %v7861_v59  ;;  %v7863_v7 = vadd.f32 %v7862_v4, %v7820_v54 }
 0x4c5   : > { %v7864_v61 = vpop.f32.mrf.mxu0  ;;  %v7991_v9 = vpop.f32.mrf.mxu1 }
 0x4c6   : > { %v8043_v29 = vadd.f32 %v10320_v45, %v7904_v30  ;;  %v7906_v55 = vadd.f32 %v7905_v57, %v7863_v7  ;;  %v7865_v62 = vadd.f32 %v7864_v61, %v7822_v23 }
 0x4c7   : > { %v7866_v49 = vpop.f32.mrf.mxu0  ;;  %v7993_v15 = vpop.f32.mrf.mxu1 }
 0x4c8   : > { %8055 = vst [vmem:[%s13731_s19 + $0x10] sm:$0xff] %v8043_v29  ;;  %v8044_v2 = vadd.f32 %v10321_v63, %v7906_v55  ;;  %v7908_v13 = vadd.f32 %v7907_v17, %v7865_v62  ;;  %v7867_v6 = vadd.f32 %v7866_v49, %v7824_v28 }
 0x4c9   : > { %v7995_v26 = vpop.f32.mrf.mxu1 }
 0x4ca   : > { %8056 = vst [vmem:[%s13731_s19 + $0x18] sm:$0xff] %v8044_v2  ;;  %v8049_v11 = vadd.f32 %v10322_v3, %v7908_v13  ;;  %v7910_v32 = vadd.f32 %v7909_v58, %v7867_v6 }
 0x4cc   : > { %8061 = vst [vmem:[%s13731_s19 + $0x40] sm:$0xff] %v8049_v11  ;;  %v8050_v48 = vadd.f32 %v10323_v14, %v7910_v32 }
 0x4ce   : > { %8062 = vst [vmem:[%s13731_s19 + $0x48] sm:$0xff] %v8050_v48 }
 0x501   : > { %v7946_v33 = vpop.f32.mrf.mxu0 }
 0x502   : > { %v7947_v12 = vadd.f32 %v7946_v33, %v6203_v16 }
 0x503   : > { %v7948_v37 = vpop.f32.mrf.mxu0 }
 0x504   : > { %v7949_v21 = vadd.f32 %v7948_v37, %v6207_v8  ;;  %v7990_v25 = vadd.f32 %v7989_v19, %v7947_v12 }
 0x505   : > { %v7950_v0 = vpop.f32.mrf.mxu0 }
 0x506   : > { %v7951_v1 = vadd.f32 %v7950_v0, %v6203_v16  ;;  %v7992_v18 = vadd.f32 %v7991_v9, %v7949_v21 }
 0x507   : > { %v7952_v22 = vpop.f32.mrf.mxu0 }
 0x508   : > { %v7953_v10 = vadd.f32 %v7952_v22, %v6207_v8  ;;  %v7994_v27 = vadd.f32 %v7993_v15, %v7951_v1 }
 0x50a   : > { %v7996_v60 = vadd.f32 %v7995_v26, %v7953_v10 }
 0x541   : > { %v8032_v20 = vpop.f32.mrf.mxu0 }
 0x542   : > { %v8033_v31 = vadd.f32 %v8032_v20, %v7990_v25 }
 0x543   : > { %v8034_v5 = vpop.f32.mrf.mxu0 }
 0x544   : > { %v8045_v24 = vadd.f32 %v10324_v56, %v8033_v31  ;;  %v8035_v51 = vadd.f32 %v8034_v5, %v7992_v18 }
 0x545   : > { %v8036_v34 = vpop.f32.mrf.mxu0 }
 0x546   : > { %8057 = vst [vmem:[%s13731_s19 + $0x20] sm:$0xff] %v8045_v24  ;;  %v8046_v36 = vadd.f32 %v10325_v39, %v8035_v51  ;;  %v8037_v41 = vadd.f32 %v8036_v34, %v7994_v27 }
 0x547   : > { %v8038_v50 = vpop.f32.mrf.mxu0 }
 0x548   : > { %8058 = vst [vmem:[%s13731_s19 + $0x28] sm:$0xff] %v8046_v36  ;;  %v8051_v47 = vadd.f32 %v10326_v52, %v8037_v41  ;;  %v8039_v43 = vadd.f32 %v8038_v50, %v7996_v60 }
 0x54a   : > { %8063 = vst [vmem:[%s13731_s19 + $0x50] sm:$0xff] %v8051_v47  ;;  %v8052_v42 = vadd.f32 %v10327_v40, %v8039_v43 }
 0x54c   : > { %8064 = vst [vmem:[%s13731_s19 + $0x58] sm:$0xff] %v8052_v42 }
 0x54d PF: > { %s23_s25 = sadd.s32 1, %s10335_s25  }
 0x54e   : > { %p20_p4 = scmp.ge.s32.totalorder %s23_s25, 4  }
 0x550   :  { %22 = sbr.rel (!%p20_p4) target bundleno = 1 (0x1), region = 102 }

</bundles_post_ra>
